<compile_context>
chip_gen: v7x
topology: tpu7x:2x2x1
jax: 0.10.0
libtpu: 0.0.40
codegen_flags: <defaults>
</compile_context>

<pallas_src>
import functools

import numpy as np
import jax
import jax.numpy as jnp
from jax.experimental import pallas as pl
from jax.experimental.pallas import tpu as pltpu


# MXU-native operand dtype (bf16 on v5e/v6e/v7x); accumulation stays f32.
_MXU_DTYPE = jnp.bfloat16


def _mxdot(a, b):
    return jnp.dot(a.astype(_MXU_DTYPE), b.astype(_MXU_DTYPE),
                   preferred_element_type=jnp.float32)


# ----------------------------------------------------------------------------
# Entry kernel: start conv (block-diag over time) + static feature encoder +
# skip0 full-time conv, whole batch in one grid step.
# ----------------------------------------------------------------------------

def _entry_kernel(x_ref, sf_ref, wst_ref, bst_ref, wfea_ref, bfea_ref,
                  wsk0_ref, bsk0_ref, h_ref, sk_ref, fea_ref):
    x = x_ref[...]                                            # [B*N, Tt*in_dim]
    h_ref[...] = _mxdot(x, wst_ref[...]) + bst_ref[...]       # [B*N, Tt*Cres]
    sk_ref[...] = _mxdot(x, wsk0_ref[...]) + bsk0_ref[...]    # [B*N, skipC]
    fea_ref[...] = _mxdot(sf_ref[...], wfea_ref[...]) + bfea_ref[...]   # [N, st]


def entry_stage(x_flat, static_feat, p):
    M, Kin = x_flat.shape
    N, F = static_feat.shape
    Ch = p["w_start_bd"].shape[1]
    skC = p["w_skip0"].shape[1]
    st = p["w_stfea"].shape[1]
    c2 = lambda i: (0, 0)
    return pl.pallas_call(
        _entry_kernel,
        out_shape=(jax.ShapeDtypeStruct((M, Ch), jnp.float32),
                   jax.ShapeDtypeStruct((M, skC), jnp.float32),
                   jax.ShapeDtypeStruct((N, st), jnp.float32)),
        grid=(1,),
        in_specs=[pl.BlockSpec((M, Kin), c2),
                  pl.BlockSpec((N, F), c2),
                  pl.BlockSpec((Kin, Ch), c2),
                  pl.BlockSpec((1, Ch), c2),
                  pl.BlockSpec((F, st), c2),
                  pl.BlockSpec((1, st), c2),
                  pl.BlockSpec((Kin, skC), c2),
                  pl.BlockSpec((1, skC), c2)],
        out_specs=(pl.BlockSpec((M, Ch), c2),
                   pl.BlockSpec((M, skC), c2),
                   pl.BlockSpec((N, st), c2)),
    )(x_flat, static_feat,
      p["w_start_bd"], p["b_start_bd"].reshape(1, -1),
      p["w_stfea"], p["b_stfea"].reshape(1, -1),
      p["w_skip0"], p["b_skip0"].reshape(1, -1))


# ----------------------------------------------------------------------------
# Fused per-layer kernel: TConv + gate + skip conv + Evolving_GConv time loop +
# residual add + LayerNorm.  All weights and recurrent state stay VMEM-resident.
# ----------------------------------------------------------------------------

def _layer_kernel(x_ref, res_ref, fea_ref,
                  ws2d_ref, bs2d_ref,
                  wband_ref, bband_ref, wsk_ref, bsk_ref,
                  wgru_ref, bgru_ref, wlin_ref, blin_ref,
                  wmlp_ref, bmlp_ref, g_ref, bta_ref,
                  h_out_ref, sk_out_ref,
                  *, Tout, Cc, Cres, H, chunks, gdep, alpha, eps):
    x = x_ref[0]                                              # [N, Tin*Cin]
    N = x.shape[0]

    # ---- 1. dilated temporal conv as ONE banded matmul (contraction = Tin*Cin)
    z = _mxdot(x, wband_ref[...]) + bband_ref[...]            # [N, 2*Tout*Cc]
    fg = Tout * Cc
    gated = jnp.tanh(z[:, :fg]) * jax.nn.sigmoid(z[:, fg:])   # [N, Tout*Cc]

    # ---- 2. skip conv: Conv2d(Cc, skipC, (1, Tout)) == lane-dense matmul
    sk_out_ref[0] = _mxdot(gated, wsk_ref[...]) + bsk_ref[...]

    # ---- 3. Evolving_GConv: whole dy_interval time loop, VMEM-resident state
    h_state = _mxdot(fea_ref[...], ws2d_ref[...]) + bs2d_ref[...]    # [N, H]
    rows = jax.lax.broadcasted_iota(jnp.int32, (N, N), 0)
    cols = jax.lax.broadcasted_iota(jnp.int32, (N, N), 1)
    eye = (rows == cols).astype(jnp.float32)

    wmlp = wmlp_ref[...]                                      # [(gdep+1)*Lm*Cc, Lm*Cres]
    lm_cc = wmlp.shape[0] // (gdep + 1)

    outs = []
    for (s0, L) in chunks:                 # static unroll; chunk count is small
        xc = gated[:, s0 * Cc:(s0 + L) * Cc]                  # [N, L*Cc] lane slice
        inp = xc[:, :Cc]
        for t in range(1, L):
            inp = inp + xc[:, t * Cc:(t + 1) * Cc]
        inp = inp * (1.0 / L)                                 # mean over chunk time

        # GRU graph learner — gi/gh fused into one block-diag MXU pass
        gih = _mxdot(jnp.concatenate([inp, h_state], axis=1),
                     wgru_ref[...]) + bgru_ref[...]           # [N, 6H]
        gi = gih[:, :3 * H]
        gh = gih[:, 3 * H:]
        r = jax.nn.sigmoid(gi[:, :H] + gh[:, :H])
        u = jax.nn.sigmoid(gi[:, H:2 * H] + gh[:, H:2 * H])
        c = jnp.tanh(gi[:, 2 * H:] + r * gh[:, 2 * H:])
        h_state = (1.0 - u) * c + u * h_state                 # [N, H]

        # dynamic adjacency: softmax(relu(tanh(E1 E2^T))); (A + I) / 2 exact norm
        e2 = _mxdot(h_state, wlin_ref[...]) + blin_ref[...]
        logits = jax.lax.dot_general(h_state.astype(_MXU_DTYPE),
                                     e2.astype(_MXU_DTYPE),
                                     (((1,), (1,)), ((), ())),
                                     preferred_element_type=jnp.float32)
        a = jnp.maximum(jnp.tanh(logits), 0.0)
        a = jnp.exp(a - jnp.max(a, axis=-1, keepdims=True))
        adj = a * pl.reciprocal(jnp.sum(a, axis=-1, keepdims=True), approx=True)
        adj = (adj + eye) * 0.5            # softmax rows sum to 1 -> row sum == 2

        # MixProp hops + 1x1 output MLP (block-diag over chunk time, no reshapes)
        hprop = xc
        acc = _mxdot(xc, wmlp[:L * Cc, :L * Cres])
        for d in range(1, gdep + 1):
            hprop = alpha * xc + (1.0 - alpha) * _mxdot(adj, hprop)
            acc = acc + _mxdot(hprop, wmlp[d * lm_cc:d * lm_cc + L * Cc, :L * Cres])
        outs.append(acc + bmlp_ref[:, :L * Cres])
        # dropout (training=False) -> identity

    y = outs[0] if len(outs) == 1 else jnp.concatenate(outs, axis=1)  # [N, Tout*Cres]

    # ---- 4. residual add + LayerNorm over (N, Tout, Cres) per sample, one store
    s = y + res_ref[0]
    denom = 1.0 / float(N * Tout * Cres)
    mu = jnp.sum(jnp.sum(s, axis=1, keepdims=True), axis=0, keepdims=True) * denom
    xc_ = s - mu
    var = jnp.sum(jnp.sum(xc_ * xc_, axis=1, keepdims=True),
                  axis=0, keepdims=True) * denom
    h_out_ref[0] = xc_ * jax.lax.rsqrt(var + eps) * g_ref[...] + bta_ref[...]


def layer_forward(h_flat, res_flat, st_fea, lp, lcfg, cfg):
    B, N, TCin = h_flat.shape
    Tout = lcfg["t_len"]
    Cc = cfg["conv_channels"]
    Cres = cfg["residual_channels"]
    H = cfg["dy_embedding_dim"]
    skipC = cfg["skip_channels"]
    stD = cfg["st_embedding_dim"]
    gdep = lcfg["gcn_depth"]
    Lmax = min(lcfg["dy_interval"], Tout)
    chunks = tuple((s, min(lcfg["dy_interval"], Tout - s))
                   for s in range(0, Tout, lcfg["dy_interval"]))

    c2 = lambda b: (0, 0)
    bmap = lambda b: (b, 0, 0)
    kern = functools.partial(_layer_kernel, Tout=Tout, Cc=Cc, Cres=Cres, H=H,
                             chunks=chunks, gdep=gdep,
                             alpha=float(lcfg["propalpha"]), eps=1e-5)
    return pl.pallas_call(
        kern,
        out_shape=(jax.ShapeDtypeStruct((B, N, Tout * Cres), jnp.float32),
                   jax.ShapeDtypeStruct((B, N, skipC), jnp.float32)),
        grid=(B,),
        in_specs=[pl.BlockSpec((1, N, TCin), bmap),
                  pl.BlockSpec((1, N, Tout * Cres), bmap),
                  pl.BlockSpec((N, stD), c2),
                  pl.BlockSpec((stD, H), c2),
                  pl.BlockSpec((1, H), c2),
                  pl.BlockSpec((TCin, 2 * Tout * Cc), c2),
                  pl.BlockSpec((1, 2 * Tout * Cc), c2),
                  pl.BlockSpec((Tout * Cc, skipC), c2),
                  pl.BlockSpec((1, skipC), c2),
                  pl.BlockSpec((Cc + H, 6 * H), c2),
                  pl.BlockSpec((1, 6 * H), c2),
                  pl.BlockSpec((H, H), c2),
                  pl.BlockSpec((1, H), c2),
                  pl.BlockSpec(((gdep + 1) * Lmax * Cc, Lmax * Cres), c2),
                  pl.BlockSpec((1, Lmax * Cres), c2),
                  pl.BlockSpec((N, Tout * Cres), c2),
                  pl.BlockSpec((N, Tout * Cres), c2)],
        out_specs=(pl.BlockSpec((1, N, Tout * Cres), bmap),
                   pl.BlockSpec((1, N, skipC), bmap)),
        compiler_params=pltpu.CompilerParams(dimension_semantics=("parallel",)),
    )(h_flat, res_flat, st_fea,
      lp["w_s2d"], lp["b_s2d"].reshape(1, -1),
      lp["w_band"], lp["b_band"].reshape(1, -1),
      lp["w_skip"], lp["b_skip"].reshape(1, -1),
      lp["w_gru"], lp["b_gru"].reshape(1, -1),
      lp["w_lin"], lp["b_lin"].reshape(1, -1),
      lp["w_mlpb"], lp["b_mlpb"].reshape(1, -1),
      lp["ln_g"], lp["ln_b"])


# ----------------------------------------------------------------------------
# Head kernel: skipE + ReLU -> 1x1 conv -> ReLU -> 1x1 conv, whole batch fused.
# ----------------------------------------------------------------------------

def _head_kernel(h_ref, ss_ref, wse_ref, bse_ref, w1_ref, b1_ref,
                 w2_ref, b2_ref, o_ref):
    se = _mxdot(h_ref[...], wse_ref[...]) + bse_ref[...]
    s = jnp.maximum(ss_ref[...] + se, 0.0)
    y1 = jnp.maximum(_mxdot(s, w1_ref[...]) + b1_ref[...], 0.0)
    o_ref[...] = _mxdot(y1, w2_ref[...]) + b2_ref[...]


def head_stage(h_flat2d, skip_sum, p):
    M, Kh = h_flat2d.shape
    skC = skip_sum.shape[1]
    E = p["w_out1"].shape[1]
    F = p["w_out2"].shape[1]
    c2 = lambda i: (0, 0)
    return pl.pallas_call(
        _head_kernel,
        out_shape=jax.ShapeDtypeStruct((M, F), jnp.float32),
        grid=(1,),
        in_specs=[pl.BlockSpec((M, Kh), c2),
                  pl.BlockSpec((M, skC), c2),
                  pl.BlockSpec((Kh, skC), c2),
                  pl.BlockSpec((1, skC), c2),
                  pl.BlockSpec((skC, E), c2),
                  pl.BlockSpec((1, E), c2),
                  pl.BlockSpec((E, F), c2),
                  pl.BlockSpec((1, F), c2)],
        out_specs=pl.BlockSpec((M, F), c2),
    )(h_flat2d, skip_sum, p["w_skipE"], p["b_skipE"].reshape(1, -1),
      p["w_out1"], p["b_out1"].reshape(1, -1),
      p["w_out2"], p["b_out2"].reshape(1, -1))


# ----------------------------------------------------------------------------
# Model glue (only a transpose/reshape at the boundaries and tiny skip adds)
# ----------------------------------------------------------------------------

def dmgl_forward(params, x, static_feat, cfg):
    B, in_dim, N, T = x.shape
    assert T == cfg["seq_length"]
    rf = cfg["receptive_field"]
    Cres = cfg["residual_channels"]

    # NCHW -> channel-last, then flatten to lane-dense [B, N, T*C] (once, at entry)
    x = jnp.transpose(x, (0, 2, 3, 1)).astype(jnp.float32)    # [B, N, T, in_dim]
    if T < rf:                          # replicate pad on the left (F.pad 'replicate')
        pad = rf - T
        x = jnp.concatenate([jnp.repeat(x[:, :, :1, :], pad, axis=2), x], axis=2)
    Tt = x.shape[2]
    x_flat = x.reshape(B * N, Tt * in_dim)

    h2d, skip_sum, st_fea = entry_stage(x_flat, static_feat.astype(jnp.float32),
                                        params)
    h = h2d.reshape(B, N, Tt * Cres)

    Tcur = Tt
    for bi, blk in enumerate(params["blocks"]):
        for li, lp in enumerate(blk):
            lcfg = cfg["layers"][bi][li]
            Tout = lcfg["t_len"]
            # residual crop (last Tout steps) done OUTSIDE the kernel, lane slice
            res_flat = h[:, :, (Tcur - Tout) * Cres:]
            h, skip = layer_forward(h, res_flat, st_fea, lp, lcfg, cfg)
            skip_sum = skip_sum + skip.reshape(B * N, -1)   # == cat(skips).sum(3)
            Tcur = Tout

    y2 = head_stage(h.reshape(B * N, Tcur * Cres), skip_sum, params)
    y = y2.reshape(B, N, cfg["pred_len"], cfg["out_dim"]).transpose(0, 2, 1, 3)
    return y                                                 # [B, pred_len, N, out_dim]


# ----------------------------------------------------------------------------
# Static per-layer configuration (kept OUT of the jitted params pytree)
# ----------------------------------------------------------------------------

def build_layer_cfgs(cfg):
    K = cfg["kernel_size"]
    all_blocks = []
    t_in = cfg["total_t_len"]
    for block_id in range(cfg["n_blocks"]):
        if cfg["dilation_exp"] > 1:
            rf_block = int(1 + block_id * (K - 1) *
                           (cfg["dilation_exp"] ** cfg["n_layers"] - 1) /
                           (cfg["dilation_exp"] - 1))
        else:
            rf_block = block_id * cfg["n_layers"] * (K - 1) + 1
        dilation = 1
        layers = []
        for i in range(1, cfg["n_layers"] + 1):
            if cfg["dilation_exp"] > 1:
                rf_i = int(rf_block + (K - 1) *
                           (cfg["dilation_exp"] ** i - 1) / (cfg["dilation_exp"] - 1))
            else:
                rf_i = rf_block + i * (K - 1)
            t_len = cfg["total_t_len"] - rf_i + 1
            layers.append(dict(kernel_size=K, dilation=dilation,
                               t_in=t_in, t_len=t_len,
                               dy_interval=cfg["dy_interval"][i - 1],
                               gcn_depth=cfg["gcn_depth"],
                               propalpha=cfg["propalpha"]))
            t_in = t_len
            dilation *= cfg["dilation_exp"]
        all_blocks.append(layers)
    return all_blocks


# ----------------------------------------------------------------------------
# Deterministic parameter init.  Conv weights are assembled at init time into
# the banded / block-diagonal matmul forms consumed by the kernels.
# ----------------------------------------------------------------------------

def init_params(key, cfg):
    keys = iter(jax.random.split(key, 512))

    def nrm(*shape):
        return np.asarray(0.1 * jax.random.normal(next(keys), shape, jnp.float32))

    Cres, Cc = cfg["residual_channels"], cfg["conv_channels"]
    skipC, endC = cfg["skip_channels"], cfg["end_channels"]
    N, K = cfg["num_nodes"], cfg["kernel_size"]
    st, dy = cfg["st_embedding_dim"], cfg["dy_embedding_dim"]
    gdep = cfg["gcn_depth"]
    Tt, rf = cfg["total_t_len"], cfg["receptive_field"]
    in_dim = cfg["in_dim"]

    # start conv expanded to block-diag over time -> one lane-dense GEMM at entry
    w_start = nrm(in_dim, Cres)
    b_start = nrm(Cres)
    w_start_bd = np.zeros((Tt * in_dim, Tt * Cres), np.float32)
    for t in range(Tt):
        w_start_bd[t * in_dim:(t + 1) * in_dim, t * Cres:(t + 1) * Cres] = w_start
    b_start_bd = np.tile(b_start, Tt)

    params = {
        "w_start_bd": jnp.asarray(w_start_bd), "b_start_bd": jnp.asarray(b_start_bd),
        "w_stfea": jnp.asarray(nrm(cfg["fc_dim"], st)), "b_stfea": jnp.asarray(nrm(st)),
        "w_skip0": jnp.asarray(nrm(Tt * in_dim, skipC)), "b_skip0": jnp.asarray(nrm(skipC)),
        "w_skipE": jnp.asarray(nrm((Tt - rf + 1) * Cres, skipC)),
        "b_skipE": jnp.asarray(nrm(skipC)),
        "w_out1": jnp.asarray(nrm(skipC, endC)), "b_out1": jnp.asarray(nrm(endC)),
        "w_out2": jnp.asarray(nrm(endC, cfg["pred_len"] * cfg["out_dim"])),
        "b_out2": jnp.asarray(nrm(cfg["pred_len"] * cfg["out_dim"])),
        "blocks": [],
    }

    for blk_cfgs in cfg["layers"]:
        layers = []
        for lcfg in blk_cfgs:
            Tin, Tout = lcfg["t_in"], lcfg["t_len"]
            dil = lcfg["dilation"]
            assert Tout == Tin - (K - 1) * dil
            Lmax = min(lcfg["dy_interval"], Tout)

            # filter||gate dilated conv as ONE banded matmul weight
            w_fg = nrm(K * Cres, 2 * Cc)
            b_fg = nrm(2 * Cc)
            w_band = np.zeros((Tin * Cres, 2 * Tout * Cc), np.float32)
            for t in range(Tout):
                for k in range(K):
                    r0 = (t + k * dil) * Cres
                    w_band[r0:r0 + Cres, t * Cc:(t + 1) * Cc] = \
                        w_fg[k * Cres:(k + 1) * Cres, :Cc]
                    w_band[r0:r0 + Cres,
                           Tout * Cc + t * Cc:Tout * Cc + (t + 1) * Cc] = \
                        w_fg[k * Cres:(k + 1) * Cres, Cc:]
            b_band = np.concatenate([np.tile(b_fg[:Cc], Tout),
                                     np.tile(b_fg[Cc:], Tout)])

            # GRU gi/gh fused: block-diagonal [Cc+dy, 6*dy]
            w_ih = nrm(Cc, 3 * dy)
            w_hh = nrm(dy, 3 * dy)
            w_gru = np.zeros((Cc + dy, 6 * dy), np.float32)
            w_gru[:Cc, :3 * dy] = w_ih
            w_gru[Cc:, 3 * dy:] = w_hh
            b_gru = np.concatenate([nrm(3 * dy), nrm(3 * dy)])

            # MixProp output MLP as per-hop block-diagonal over the chunk time axis
            w_mlp = nrm((gdep + 1) * Cc, Cres)
            b_mlp = nrm(Cres)
            w_mlpb = np.zeros(((gdep + 1) * Lmax * Cc, Lmax * Cres), np.float32)
            for d in range(gdep + 1):
                wd = w_mlp[d * Cc:(d + 1) * Cc, :]
                for l in range(Lmax):
                    w_mlpb[d * Lmax * Cc + l * Cc:d * Lmax * Cc + (l + 1) * Cc,
                           l * Cres:(l + 1) * Cres] = wd
            b_mlpb = np.tile(b_mlp, Lmax)

            layers.append({
                "w_band": jnp.asarray(w_band), "b_band": jnp.asarray(b_band),
                "w_skip": jnp.asarray(nrm(Tout * Cc, skipC)),
                "b_skip": jnp.asarray(nrm(skipC)),
                "w_s2d": jnp.asarray(nrm(st, dy)), "b_s2d": jnp.asarray(nrm(dy)),
                "w_gru": jnp.asarray(w_gru), "b_gru": jnp.asarray(b_gru),
                "w_lin": jnp.asarray(nrm(dy, dy)), "b_lin": jnp.asarray(nrm(dy)),
                "w_mlpb": jnp.asarray(w_mlpb), "b_mlpb": jnp.asarray(b_mlpb),
                "ln_g": jnp.ones((N, Tout * Cres), jnp.float32),
                "ln_b": jnp.zeros((N, Tout * Cres), jnp.float32),
            })
        params["blocks"].append(layers)
    return params


# ----------------------------------------------------------------------------
# Main
# ----------------------------------------------------------------------------

if __name__ == "__main__":
    cfg = dict(
        num_nodes=8, seq_length=16, pred_len=4, in_dim=2, out_dim=1,
        n_blocks=1, n_layers=2, conv_channels=8, residual_channels=8,
        skip_channels=16, end_channels=16, kernel_set=[2, 3], dilation_exp=1,
        gcn_depth=2, st_embedding_dim=8, dy_embedding_dim=8,
        dy_interval=[4, 4], fc_dim=8, dropout=0.3, propalpha=0.05,
    )
    K = cfg["kernel_set"][-1]
    cfg["kernel_size"] = K
    if cfg["dilation_exp"] > 1:
        rf = int(1 + cfg["n_blocks"] * (K - 1) *
                 (cfg["dilation_exp"] ** cfg["n_layers"] - 1) /
                 (cfg["dilation_exp"] - 1))
    else:
        rf = cfg["n_blocks"] * cfg["n_layers"] * (K - 1) + 1
    cfg["receptive_field"] = rf
    cfg["total_t_len"] = max(rf, cfg["seq_length"])
    cfg["layers"] = build_layer_cfgs(cfg)

    key = jax.random.PRNGKey(0)
    k_in, k_feat, k_par = jax.random.split(key, 3)
    x = jax.random.normal(
        k_in, (2, cfg["in_dim"], cfg["num_nodes"], cfg["seq_length"]), jnp.float32)
    static_feat = jax.random.normal(
        k_feat, (cfg["num_nodes"], cfg["fc_dim"]), jnp.float32)
    params = init_params(k_par, cfg)

    # cfg (all static Python scalars/lists) is closed over, NOT a jit argument.
    fwd = jax.jit(lambda p, xx, sf: dmgl_forward(p, xx, sf, cfg))
    out = fwd(params, x, static_feat)
    out = jax.block_until_ready(out)
    assert out.shape == (2, cfg["pred_len"], cfg["num_nodes"], cfg["out_dim"]), out.shape
    assert bool(jnp.all(jnp.isfinite(out)))
    print("KERNEL_OK")
</pallas_src>

<mosaic_0001>
module attributes {stable_mosaic.version = 11 : i64} {
  func.func @_entry_kernel(%arg0: i32, %arg1: memref<16x32xf32, #tpu.memory_space<vmem>>, %arg2: memref<8x8xf32, #tpu.memory_space<vmem>>, %arg3: memref<32x128xf32, #tpu.memory_space<vmem>>, %arg4: memref<1x128xf32, #tpu.memory_space<vmem>>, %arg5: memref<8x8xf32, #tpu.memory_space<vmem>>, %arg6: memref<1x8xf32, #tpu.memory_space<vmem>>, %arg7: memref<32x16xf32, #tpu.memory_space<vmem>>, %arg8: memref<1x16xf32, #tpu.memory_space<vmem>>, %arg9: memref<16x128xf32, #tpu.memory_space<vmem>>, %arg10: memref<16x16xf32, #tpu.memory_space<vmem>>, %arg11: memref<8x8xf32, #tpu.memory_space<vmem>>) attributes {dimension_semantics = [#tpu.dimension_semantics<arbitrary>], iteration_bounds = array<i64: 1>, scalar_prefetch = 0 : i64, scratch_operands = 0 : i64, tpu.core_type = #tpu.core_type<tc>, window_params = [{pipeline_mode = #tpu.pipeline_mode<synchronous>, transform_indices = @transform_0, window_bounds = array<i64: 16, 32>}, {pipeline_mode = #tpu.pipeline_mode<synchronous>, transform_indices = @transform_1, window_bounds = array<i64: 8, 8>}, {pipeline_mode = #tpu.pipeline_mode<synchronous>, transform_indices = @transform_2, window_bounds = array<i64: 32, 128>}, {pipeline_mode = #tpu.pipeline_mode<synchronous>, transform_indices = @transform_3, window_bounds = array<i64: 1, 128>}, {pipeline_mode = #tpu.pipeline_mode<synchronous>, transform_indices = @transform_4, window_bounds = array<i64: 8, 8>}, {pipeline_mode = #tpu.pipeline_mode<synchronous>, transform_indices = @transform_5, window_bounds = array<i64: 1, 8>}, {pipeline_mode = #tpu.pipeline_mode<synchronous>, transform_indices = @transform_6, window_bounds = array<i64: 32, 16>}, {pipeline_mode = #tpu.pipeline_mode<synchronous>, transform_indices = @transform_7, window_bounds = array<i64: 1, 16>}, {pipeline_mode = #tpu.pipeline_mode<synchronous>, transform_indices = @transform_8, window_bounds = array<i64: 16, 128>}, {pipeline_mode = #tpu.pipeline_mode<synchronous>, transform_indices = @transform_9, window_bounds = array<i64: 16, 16>}, {pipeline_mode = #tpu.pipeline_mode<synchronous>, transform_indices = @transform_10, window_bounds = array<i64: 8, 8>}]} {
    %c0 = arith.constant 0 : index
    %c0_0 = arith.constant 0 : index
    %0 = vector.load %arg1[%c0, %c0_0] : memref<16x32xf32, #tpu.memory_space<vmem>>, vector<16x32xf32>
    %c0_1 = arith.constant 0 : index
    %c0_2 = arith.constant 0 : index
    %1 = vector.load %arg3[%c0_1, %c0_2] : memref<32x128xf32, #tpu.memory_space<vmem>>, vector<32x128xf32>
    %2 = arith.truncf %0 : vector<16x32xf32> to vector<16x32xbf16>
    %3 = arith.truncf %1 : vector<32x128xf32> to vector<32x128xbf16>
    %cst = arith.constant dense<0.000000e+00> : vector<16x128xf32>
    %4 = tpu.matmul %2, %3, %cst {dimension_numbers = #tpu.dot_dimension_numbers<[1], [0], [0], [1], [0, 0, 1, 1], [], []>} : vector<16x32xbf16>, vector<32x128xbf16>, vector<16x128xf32> -> vector<16x128xf32>
    %c0_3 = arith.constant 0 : index
    %c0_4 = arith.constant 0 : index
    %5 = vector.load %arg4[%c0_3, %c0_4] : memref<1x128xf32, #tpu.memory_space<vmem>>, vector<1x128xf32>
    %6 = vector.broadcast %5 : vector<1x128xf32> to vector<16x128xf32>
    %7 = arith.addf %4, %6 : vector<16x128xf32>
    %c0_5 = arith.constant 0 : index
    %c0_6 = arith.constant 0 : index
    %8 = vector.load %arg9[%c0_5, %c0_6] : memref<16x128xf32, #tpu.memory_space<vmem>>, vector<16x128xf32>
    tpu.vector_store %arg9[%c0_5, %c0_6], %7 {strides = array<i32>} : memref<16x128xf32, #tpu.memory_space<vmem>>, vector<16x128xf32>,
    %c0_7 = arith.constant 0 : index
    %c0_8 = arith.constant 0 : index
    %9 = vector.load %arg7[%c0_7, %c0_8] : memref<32x16xf32, #tpu.memory_space<vmem>>, vector<32x16xf32>
    %10 = arith.truncf %0 : vector<16x32xf32> to vector<16x32xbf16>
    %11 = arith.truncf %9 : vector<32x16xf32> to vector<32x16xbf16>
    %cst_9 = arith.constant dense<0.000000e+00> : vector<16x16xf32>
    %12 = tpu.matmul %10, %11, %cst_9 {dimension_numbers = #tpu.dot_dimension_numbers<[1], [0], [0], [1], [0, 0, 1, 1], [], []>} : vector<16x32xbf16>, vector<32x16xbf16>, vector<16x16xf32> -> vector<16x16xf32>
    %c0_10 = arith.constant 0 : index
    %c0_11 = arith.constant 0 : index
    %13 = vector.load %arg8[%c0_10, %c0_11] : memref<1x16xf32, #tpu.memory_space<vmem>>, vector<1x16xf32>
    %14 = vector.broadcast %13 : vector<1x16xf32> to vector<16x16xf32>
    %15 = arith.addf %12, %14 : vector<16x16xf32>
    %c0_12 = arith.constant 0 : index
    %c0_13 = arith.constant 0 : index
    %16 = vector.load %arg10[%c0_12, %c0_13] : memref<16x16xf32, #tpu.memory_space<vmem>>, vector<16x16xf32>
    tpu.vector_store %arg10[%c0_12, %c0_13], %15 {strides = array<i32>} : memref<16x16xf32, #tpu.memory_space<vmem>>, vector<16x16xf32>,
    %c0_14 = arith.constant 0 : index
    %c0_15 = arith.constant 0 : index
    %17 = vector.load %arg2[%c0_14, %c0_15] : memref<8x8xf32, #tpu.memory_space<vmem>>, vector<8x8xf32>
    %c0_16 = arith.constant 0 : index
    %c0_17 = arith.constant 0 : index
    %18 = vector.load %arg5[%c0_16, %c0_17] : memref<8x8xf32, #tpu.memory_space<vmem>>, vector<8x8xf32>
    %19 = arith.truncf %17 : vector<8x8xf32> to vector<8x8xbf16>
    %20 = arith.truncf %18 : vector<8x8xf32> to vector<8x8xbf16>
    %cst_18 = arith.constant dense<0.000000e+00> : vector<8x8xf32>
    %21 = tpu.matmul %19, %20, %cst_18 {dimension_numbers = #tpu.dot_dimension_numbers<[1], [0], [0], [1], [0, 0, 1, 1], [], []>} : vector<8x8xbf16>, vector<8x8xbf16>, vector<8x8xf32> -> vector<8x8xf32>
    %c0_19 = arith.constant 0 : index
    %c0_20 = arith.constant 0 : index
    %22 = vector.load %arg6[%c0_19, %c0_20] : memref<1x8xf32, #tpu.memory_space<vmem>>, vector<1x8xf32>
    %23 = vector.broadcast %22 : vector<1x8xf32> to vector<8x8xf32>
    %24 = arith.addf %21, %23 : vector<8x8xf32>
    %c0_21 = arith.constant 0 : index
    %c0_22 = arith.constant 0 : index
    %25 = vector.load %arg11[%c0_21, %c0_22] : memref<8x8xf32, #tpu.memory_space<vmem>>, vector<8x8xf32>
    tpu.vector_store %arg11[%c0_21, %c0_22], %24 {strides = array<i32>} : memref<8x8xf32, #tpu.memory_space<vmem>>, vector<8x8xf32>,
    return
  }
  func.func @transform_0(%arg0: i32) -> (i32, i32) {
    %c0_i32 = arith.constant 0 : i32
    %c0_i32_0 = arith.constant 0 : i32
    %c0_i32_1 = arith.constant 0 : i32
    return %c0_i32, %c0_i32_0 : i32, i32
  }
  func.func @transform_1(%arg0: i32) -> (i32, i32) {
    %c0_i32 = arith.constant 0 : i32
    %c0_i32_0 = arith.constant 0 : i32
    %c0_i32_1 = arith.constant 0 : i32
    return %c0_i32, %c0_i32_0 : i32, i32
  }
  func.func @transform_2(%arg0: i32) -> (i32, i32) {
    %c0_i32 = arith.constant 0 : i32
    %c0_i32_0 = arith.constant 0 : i32
    %c0_i32_1 = arith.constant 0 : i32
    return %c0_i32, %c0_i32_0 : i32, i32
  }
  func.func @transform_3(%arg0: i32) -> (i32, i32) {
    %c0_i32 = arith.constant 0 : i32
    %c0_i32_0 = arith.constant 0 : i32
    %c0_i32_1 = arith.constant 0 : i32
    return %c0_i32, %c0_i32_0 : i32, i32
  }
  func.func @transform_4(%arg0: i32) -> (i32, i32) {
    %c0_i32 = arith.constant 0 : i32
    %c0_i32_0 = arith.constant 0 : i32
    %c0_i32_1 = arith.constant 0 : i32
    return %c0_i32, %c0_i32_0 : i32, i32
  }
  func.func @transform_5(%arg0: i32) -> (i32, i32) {
    %c0_i32 = arith.constant 0 : i32
    %c0_i32_0 = arith.constant 0 : i32
    %c0_i32_1 = arith.constant 0 : i32
    return %c0_i32, %c0_i32_0 : i32, i32
  }
  func.func @transform_6(%arg0: i32) -> (i32, i32) {
    %c0_i32 = arith.constant 0 : i32
    %c0_i32_0 = arith.constant 0 : i32
    %c0_i32_1 = arith.constant 0 : i32
    return %c0_i32, %c0_i32_0 : i32, i32
  }
  func.func @transform_7(%arg0: i32) -> (i32, i32) {
    %c0_i32 = arith.constant 0 : i32
    %c0_i32_0 = arith.constant 0 : i32
    %c0_i32_1 = arith.constant 0 : i32
    return %c0_i32, %c0_i32_0 : i32, i32
  }
  func.func @transform_8(%arg0: i32) -> (i32, i32) {
    %c0_i32 = arith.constant 0 : i32
    %c0_i32_0 = arith.constant 0 : i32
    %c0_i32_1 = arith.constant 0 : i32
    return %c0_i32, %c0_i32_0 : i32, i32
  }
  func.func @transform_9(%arg0: i32) -> (i32, i32) {
    %c0_i32 = arith.constant 0 : i32
    %c0_i32_0 = arith.constant 0 : i32
    %c0_i32_1 = arith.constant 0 : i32
    return %c0_i32, %c0_i32_0 : i32, i32
  }
  func.func @transform_10(%arg0: i32) -> (i32, i32) {
    %c0_i32 = arith.constant 0 : i32
    %c0_i32_0 = arith.constant 0 : i32
    %c0_i32_1 = arith.constant 0 : i32
    return %c0_i32, %c0_i32_0 : i32, i32
  }
}

module attributes {stable_mosaic.version = 11 : i64} {
  func.func @_layer_kernel(%arg0: i32, %arg1: memref<1x8x128xf32, #tpu.memory_space<vmem>>, %arg2: memref<1x8x112xf32, #tpu.memory_space<vmem>>, %arg3: memref<8x8xf32, #tpu.memory_space<vmem>>, %arg4: memref<8x8xf32, #tpu.memory_space<vmem>>, %arg5: memref<1x8xf32, #tpu.memory_space<vmem>>, %arg6: memref<128x224xf32, #tpu.memory_space<vmem>>, %arg7: memref<1x224xf32, #tpu.memory_space<vmem>>, %arg8: memref<112x16xf32, #tpu.memory_space<vmem>>, %arg9: memref<1x16xf32, #tpu.memory_space<vmem>>, %arg10: memref<16x48xf32, #tpu.memory_space<vmem>>, %arg11: memref<1x48xf32, #tpu.memory_space<vmem>>, %arg12: memref<8x8xf32, #tpu.memory_space<vmem>>, %arg13: memref<1x8xf32, #tpu.memory_space<vmem>>, %arg14: memref<96x32xf32, #tpu.memory_space<vmem>>, %arg15: memref<1x32xf32, #tpu.memory_space<vmem>>, %arg16: memref<8x112xf32, #tpu.memory_space<vmem>>, %arg17: memref<8x112xf32, #tpu.memory_space<vmem>>, %arg18: memref<1x8x112xf32, #tpu.memory_space<vmem>>, %arg19: memref<1x8x16xf32, #tpu.memory_space<vmem>>) attributes {dimension_semantics = [#tpu.dimension_semantics<parallel>], iteration_bounds = array<i64: 2>, scalar_prefetch = 0 : i64, scratch_operands = 0 : i64, tpu.core_type = #tpu.core_type<tc>, window_params = [{transform_indices = @transform_0, window_bounds = array<i64: 1, 8, 128>}, {transform_indices = @transform_1, window_bounds = array<i64: 1, 8, 112>}, {pipeline_mode = #tpu.pipeline_mode<synchronous>, transform_indices = @transform_2, window_bounds = array<i64: 8, 8>}, {pipeline_mode = #tpu.pipeline_mode<synchronous>, transform_indices = @transform_3, window_bounds = array<i64: 8, 8>}, {pipeline_mode = #tpu.pipeline_mode<synchronous>, transform_indices = @transform_4, window_bounds = array<i64: 1, 8>}, {pipeline_mode = #tpu.pipeline_mode<synchronous>, transform_indices = @transform_5, window_bounds = array<i64: 128, 224>}, {pipeline_mode = #tpu.pipeline_mode<synchronous>, transform_indices = @transform_6, window_bounds = array<i64: 1, 224>}, {pipeline_mode = #tpu.pipeline_mode<synchronous>, transform_indices = @transform_7, window_bounds = array<i64: 112, 16>}, {pipeline_mode = #tpu.pipeline_mode<synchronous>, transform_indices = @transform_8, window_bounds = array<i64: 1, 16>}, {pipeline_mode = #tpu.pipeline_mode<synchronous>, transform_indices = @transform_9, window_bounds = array<i64: 16, 48>}, {pipeline_mode = #tpu.pipeline_mode<synchronous>, transform_indices = @transform_10, window_bounds = array<i64: 1, 48>}, {pipeline_mode = #tpu.pipeline_mode<synchronous>, transform_indices = @transform_11, window_bounds = array<i64: 8, 8>}, {pipeline_mode = #tpu.pipeline_mode<synchronous>, transform_indices = @transform_12, window_bounds = array<i64: 1, 8>}, {pipeline_mode = #tpu.pipeline_mode<synchronous>, transform_indices = @transform_13, window_bounds = array<i64: 96, 32>}, {pipeline_mode = #tpu.pipeline_mode<synchronous>, transform_indices = @transform_14, window_bounds = array<i64: 1, 32>}, {pipeline_mode = #tpu.pipeline_mode<synchronous>, transform_indices = @transform_15, window_bounds = array<i64: 8, 112>}, {pipeline_mode = #tpu.pipeline_mode<synchronous>, transform_indices = @transform_16, window_bounds = array<i64: 8, 112>}, {transform_indices = @transform_17, window_bounds = array<i64: 1, 8, 112>}, {transform_indices = @transform_18, window_bounds = array<i64: 1, 8, 16>}]} {
    %c0 = arith.constant 0 : index
    %c0_0 = arith.constant 0 : index
    %c0_1 = arith.constant 0 : index
    %0 = vector.load %arg1[%c0, %c0_0, %c0_1] : memref<1x8x128xf32, #tpu.memory_space<vmem>>, vector<1x8x128xf32>
    %1 = vector.shape_cast %0 : vector<1x8x128xf32> to vector<8x128xf32>
    %c0_2 = arith.constant 0 : index
    %c0_3 = arith.constant 0 : index
    %2 = vector.load %arg6[%c0_2, %c0_3] : memref<128x224xf32, #tpu.memory_space<vmem>>, vector<128x224xf32>
    %3 = arith.truncf %1 : vector<8x128xf32> to vector<8x128xbf16>
    %4 = arith.truncf %2 : vector<128x224xf32> to vector<128x224xbf16>
    %cst = arith.constant dense<0.000000e+00> : vector<8x224xf32>
    %5 = tpu.matmul %3, %4, %cst {dimension_numbers = #tpu.dot_dimension_numbers<[1], [0], [0], [1], [0, 0, 1, 1], [], []>} : vector<8x128xbf16>, vector<128x224xbf16>, vector<8x224xf32> -> vector<8x224xf32>
    %c0_4 = arith.constant 0 : index
    %c0_5 = arith.constant 0 : index
    %6 = vector.load %arg7[%c0_4, %c0_5] : memref<1x224xf32, #tpu.memory_space<vmem>>, vector<1x224xf32>
    %7 = vector.broadcast %6 : vector<1x224xf32> to vector<8x224xf32>
    %8 = arith.addf %5, %7 : vector<8x224xf32>
    %9 = vector.extract_strided_slice %8 {offsets = [0, 0], sizes = [8, 112], strides = [1, 1]} : vector<8x224xf32> to vector<8x112xf32>
    %10 = math.tanh %9 : vector<8x112xf32>
    %11 = vector.extract_strided_slice %8 {offsets = [0, 112], sizes = [8, 112], strides = [1, 1]} : vector<8x224xf32> to vector<8x112xf32>
    %12 = arith.negf %11 : vector<8x112xf32>
    %13 = math.exp %12 : vector<8x112xf32>
    %cst_6 = arith.constant 1.000000e+00 : f32
    %14 = vector.broadcast %cst_6 : f32 to vector<8x112xf32>
    %15 = arith.addf %14, %13 : vector<8x112xf32>
    %16 = arith.divf %14, %15 : vector<8x112xf32>
    %17 = arith.mulf %10, %16 : vector<8x112xf32>
    %c0_7 = arith.constant 0 : index
    %c0_8 = arith.constant 0 : index
    %18 = vector.load %arg8[%c0_7, %c0_8] : memref<112x16xf32, #tpu.memory_space<vmem>>, vector<112x16xf32>
    %19 = arith.truncf %17 : vector<8x112xf32> to vector<8x112xbf16>
    %20 = arith.truncf %18 : vector<112x16xf32> to vector<112x16xbf16>
    %cst_9 = arith.constant dense<0.000000e+00> : vector<8x16xf32>
    %21 = tpu.matmul %19, %20, %cst_9 {dimension_numbers = #tpu.dot_dimension_numbers<[1], [0], [0], [1], [0, 0, 1, 1], [], []>} : vector<8x112xbf16>, vector<112x16xbf16>, vector<8x16xf32> -> vector<8x16xf32>
    %c0_10 = arith.constant 0 : index
    %c0_11 = arith.constant 0 : index
    %22 = vector.load %arg9[%c0_10, %c0_11] : memref<1x16xf32, #tpu.memory_space<vmem>>, vector<1x16xf32>
    %23 = vector.broadcast %22 : vector<1x16xf32> to vector<8x16xf32>
    %24 = arith.addf %21, %23 : vector<8x16xf32>
    %c0_12 = arith.constant 0 : index
    %c0_13 = arith.constant 0 : index
    %c0_14 = arith.constant 0 : index
    %25 = vector.load %arg19[%c0_12, %c0_13, %c0_14] : memref<1x8x16xf32, #tpu.memory_space<vmem>>, vector<1x8x16xf32>
    %26 = vector.shape_cast %25 : vector<1x8x16xf32> to vector<8x16xf32>
    %27 = vector.shape_cast %24 : vector<8x16xf32> to vector<1x8x16xf32>
    tpu.vector_store %arg19[%c0_12, %c0_13, %c0_14], %27 {strides = array<i32>} : memref<1x8x16xf32, #tpu.memory_space<vmem>>, vector<1x8x16xf32>,
    %c0_15 = arith.constant 0 : index
    %c0_16 = arith.constant 0 : index
    %28 = vector.load %arg3[%c0_15, %c0_16] : memref<8x8xf32, #tpu.memory_space<vmem>>, vector<8x8xf32>
    %c0_17 = arith.constant 0 : index
    %c0_18 = arith.constant 0 : index
    %29 = vector.load %arg4[%c0_17, %c0_18] : memref<8x8xf32, #tpu.memory_space<vmem>>, vector<8x8xf32>
    %30 = arith.truncf %28 : vector<8x8xf32> to vector<8x8xbf16>
    %31 = arith.truncf %29 : vector<8x8xf32> to vector<8x8xbf16>
    %cst_19 = arith.constant dense<0.000000e+00> : vector<8x8xf32>
    %32 = tpu.matmul %30, %31, %cst_19 {dimension_numbers = #tpu.dot_dimension_numbers<[1], [0], [0], [1], [0, 0, 1, 1], [], []>} : vector<8x8xbf16>, vector<8x8xbf16>, vector<8x8xf32> -> vector<8x8xf32>
    %c0_20 = arith.constant 0 : index
    %c0_21 = arith.constant 0 : index
    %33 = vector.load %arg5[%c0_20, %c0_21] : memref<1x8xf32, #tpu.memory_space<vmem>>, vector<1x8xf32>
    %34 = vector.broadcast %33 : vector<1x8xf32> to vector<8x8xf32>
    %35 = arith.addf %32, %34 : vector<8x8xf32>
    %36 = tpu.iota {dimensions = array<i32: 0>} : vector<8x8xi32>
    %37 = tpu.iota {dimensions = array<i32: 1>} : vector<8x8xi32>
    %38 = arith.cmpi eq, %36, %37 : vector<8x8xi32>
    %39 = arith.extui %38 : vector<8x8xi1> to vector<8x8xi32>
    %40 = arith.sitofp %39 : vector<8x8xi32> to vector<8x8xf32>
    %c0_22 = arith.constant 0 : index
    %c0_23 = arith.constant 0 : index
    %41 = vector.load %arg14[%c0_22, %c0_23] : memref<96x32xf32, #tpu.memory_space<vmem>>, vector<96x32xf32>
    %42 = vector.extract_strided_slice %17 {offsets = [0, 0], sizes = [8, 32], strides = [1, 1]} : vector<8x112xf32> to vector<8x32xf32>
    %43 = vector.extract_strided_slice %42 {offsets = [0, 0], sizes = [8, 8], strides = [1, 1]} : vector<8x32xf32> to vector<8x8xf32>
    %44 = vector.extract_strided_slice %42 {offsets = [0, 8], sizes = [8, 8], strides = [1, 1]} : vector<8x32xf32> to vector<8x8xf32>
    %45 = arith.addf %43, %44 : vector<8x8xf32>
    %46 = vector.extract_strided_slice %42 {offsets = [0, 16], sizes = [8, 8], strides = [1, 1]} : vector<8x32xf32> to vector<8x8xf32>
    %47 = arith.addf %45, %46 : vector<8x8xf32>
    %48 = vector.extract_strided_slice %42 {offsets = [0, 24], sizes = [8, 8], strides = [1, 1]} : vector<8x32xf32> to vector<8x8xf32>
    %49 = arith.addf %47, %48 : vector<8x8xf32>
    %cst_24 = arith.constant 2.500000e-01 : f32
    %50 = vector.broadcast %cst_24 : f32 to vector<8x8xf32>
    %51 = arith.mulf %49, %50 : vector<8x8xf32>
    %52 = tpu.concatenate %51, %35 in 1 : vector<8x8xf32>, vector<8x8xf32> -> vector<8x16xf32>
    %c0_25 = arith.constant 0 : index
    %c0_26 = arith.constant 0 : index
    %53 = vector.load %arg10[%c0_25, %c0_26] : memref<16x48xf32, #tpu.memory_space<vmem>>, vector<16x48xf32>
    %54 = arith.truncf %52 : vector<8x16xf32> to vector<8x16xbf16>
    %55 = arith.truncf %53 : vector<16x48xf32> to vector<16x48xbf16>
    %cst_27 = arith.constant dense<0.000000e+00> : vector<8x48xf32>
    %56 = tpu.matmul %54, %55, %cst_27 {dimension_numbers = #tpu.dot_dimension_numbers<[1], [0], [0], [1], [0, 0, 1, 1], [], []>} : vector<8x16xbf16>, vector<16x48xbf16>, vector<8x48xf32> -> vector<8x48xf32>
    %c0_28 = arith.constant 0 : index
    %c0_29 = arith.constant 0 : index
    %57 = vector.load %arg11[%c0_28, %c0_29] : memref<1x48xf32, #tpu.memory_space<vmem>>, vector<1x48xf32>
    %58 = vector.broadcast %57 : vector<1x48xf32> to vector<8x48xf32>
    %59 = arith.addf %56, %58 : vector<8x48xf32>
    %60 = vector.extract_strided_slice %59 {offsets = [0, 0], sizes = [8, 24], strides = [1, 1]} : vector<8x48xf32> to vector<8x24xf32>
    %61 = vector.extract_strided_slice %59 {offsets = [0, 24], sizes = [8, 24], strides = [1, 1]} : vector<8x48xf32> to vector<8x24xf32>
    %62 = vector.extract_strided_slice %60 {offsets = [0, 0], sizes = [8, 8], strides = [1, 1]} : vector<8x24xf32> to vector<8x8xf32>
    %63 = vector.extract_strided_slice %61 {offsets = [0, 0], sizes = [8, 8], strides = [1, 1]} : vector<8x24xf32> to vector<8x8xf32>
    %64 = arith.addf %62, %63 : vector<8x8xf32>
    %65 = arith.negf %64 : vector<8x8xf32>
    %66 = math.exp %65 : vector<8x8xf32>
    %cst_30 = arith.constant 1.000000e+00 : f32
    %67 = vector.broadcast %cst_30 : f32 to vector<8x8xf32>
    %68 = arith.addf %67, %66 : vector<8x8xf32>
    %69 = arith.divf %67, %68 : vector<8x8xf32>
    %70 = vector.extract_strided_slice %60 {offsets = [0, 8], sizes = [8, 8], strides = [1, 1]} : vector<8x24xf32> to vector<8x8xf32>
    %71 = vector.extract_strided_slice %61 {offsets = [0, 8], sizes = [8, 8], strides = [1, 1]} : vector<8x24xf32> to vector<8x8xf32>
    %72 = arith.addf %70, %71 : vector<8x8xf32>
    %73 = arith.negf %72 : vector<8x8xf32>
    %74 = math.exp %73 : vector<8x8xf32>
    %cst_31 = arith.constant 1.000000e+00 : f32
    %75 = vector.broadcast %cst_31 : f32 to vector<8x8xf32>
    %76 = arith.addf %75, %74 : vector<8x8xf32>
    %77 = arith.divf %75, %76 : vector<8x8xf32>
    %78 = vector.extract_strided_slice %60 {offsets = [0, 16], sizes = [8, 8], strides = [1, 1]} : vector<8x24xf32> to vector<8x8xf32>
    %79 = vector.extract_strided_slice %61 {offsets = [0, 16], sizes = [8, 8], strides = [1, 1]} : vector<8x24xf32> to vector<8x8xf32>
    %80 = arith.mulf %69, %79 : vector<8x8xf32>
    %81 = arith.addf %78, %80 : vector<8x8xf32>
    %82 = math.tanh %81 : vector<8x8xf32>
    %cst_32 = arith.constant 1.000000e+00 : f32
    %83 = vector.broadcast %cst_32 : f32 to vector<8x8xf32>
    %84 = arith.subf %83, %77 : vector<8x8xf32>
    %85 = arith.mulf %84, %82 : vector<8x8xf32>
    %86 = arith.mulf %77, %35 : vector<8x8xf32>
    %87 = arith.addf %85, %86 : vector<8x8xf32>
    %c0_33 = arith.constant 0 : index
    %c0_34 = arith.constant 0 : index
    %88 = vector.load %arg12[%c0_33, %c0_34] : memref<8x8xf32, #tpu.memory_space<vmem>>, vector<8x8xf32>
    %89 = arith.truncf %87 : vector<8x8xf32> to vector<8x8xbf16>
    %90 = arith.truncf %88 : vector<8x8xf32> to vector<8x8xbf16>
    %cst_35 = arith.constant dense<0.000000e+00> : vector<8x8xf32>
    %91 = tpu.matmul %89, %90, %cst_35 {dimension_numbers = #tpu.dot_dimension_numbers<[1], [0], [0], [1], [0, 0, 1, 1], [], []>} : vector<8x8xbf16>, vector<8x8xbf16>, vector<8x8xf32> -> vector<8x8xf32>
    %c0_36 = arith.constant 0 : index
    %c0_37 = arith.constant 0 : index
    %92 = vector.load %arg13[%c0_36, %c0_37] : memref<1x8xf32, #tpu.memory_space<vmem>>, vector<1x8xf32>
    %93 = vector.broadcast %92 : vector<1x8xf32> to vector<8x8xf32>
    %94 = arith.addf %91, %93 : vector<8x8xf32>
    %95 = arith.truncf %87 : vector<8x8xf32> to vector<8x8xbf16>
    %96 = arith.truncf %94 : vector<8x8xf32> to vector<8x8xbf16>
    %cst_38 = arith.constant dense<0.000000e+00> : vector<8x8xf32>
    %97 = tpu.matmul %95, %96, %cst_38 {dimension_numbers = #tpu.dot_dimension_numbers<[1], [1], [0], [0], [0, 0, 1, 0], [], []>} : vector<8x8xbf16>, vector<8x8xbf16>, vector<8x8xf32> -> vector<8x8xf32>
    %98 = math.tanh %97 : vector<8x8xf32>
    %cst_39 = arith.constant 0.000000e+00 : f32
    %99 = vector.broadcast %cst_39 : f32 to vector<8x8xf32>
    %100 = arith.maximumf %98, %99 : vector<8x8xf32>
    %cst_40 = arith.constant dense<0xFF800000> : vector<8xf32>
    %101 = vector.multi_reduction <maximumf>, %100, %cst_40 [1] : vector<8x8xf32> to vector<8xf32>
    %102 = vector.shape_cast %101 : vector<8xf32> to vector<8x1xf32>
    %103 = vector.broadcast %102 : vector<8x1xf32> to vector<8x8xf32>
    %104 = arith.subf %100, %103 : vector<8x8xf32>
    %105 = math.exp %104 : vector<8x8xf32>
    %cst_41 = arith.constant dense<0.000000e+00> : vector<8xf32>
    %106 = vector.multi_reduction <add>, %105, %cst_41 [1] : vector<8x8xf32> to vector<8xf32>
    %107 = vector.shape_cast %106 : vector<8xf32> to vector<8x1xf32>
    %108 = tpu.reciprocal %107 {approx = true} : vector<8x1xf32> -> vector<8x1xf32>
    %109 = vector.broadcast %108 : vector<8x1xf32> to vector<8x8xf32>
    %110 = arith.mulf %105, %109 : vector<8x8xf32>
    %111 = arith.addf %110, %40 : vector<8x8xf32>
    %cst_42 = arith.constant 5.000000e-01 : f32
    %112 = vector.broadcast %cst_42 : f32 to vector<8x8xf32>
    %113 = arith.mulf %111, %112 : vector<8x8xf32>
    %114 = vector.extract_strided_slice %41 {offsets = [0, 0], sizes = [32, 32], strides = [1, 1]} : vector<96x32xf32> to vector<32x32xf32>
    %115 = arith.truncf %42 : vector<8x32xf32> to vector<8x32xbf16>
    %116 = arith.truncf %114 : vector<32x32xf32> to vector<32x32xbf16>
    %cst_43 = arith.constant dense<0.000000e+00> : vector<8x32xf32>
    %117 = tpu.matmul %115, %116, %cst_43 {dimension_numbers = #tpu.dot_dimension_numbers<[1], [0], [0], [1], [0, 0, 1, 1], [], []>} : vector<8x32xbf16>, vector<32x32xbf16>, vector<8x32xf32> -> vector<8x32xf32>
    %cst_44 = arith.constant 5.000000e-02 : f32
    %118 = vector.broadcast %cst_44 : f32 to vector<8x32xf32>
    %119 = arith.mulf %118, %42 : vector<8x32xf32>
    %120 = arith.truncf %113 : vector<8x8xf32> to vector<8x8xbf16>
    %121 = arith.truncf %42 : vector<8x32xf32> to vector<8x32xbf16>
    %cst_45 = arith.constant dense<0.000000e+00> : vector<8x32xf32>
    %122 = tpu.matmul %120, %121, %cst_45 {dimension_numbers = #tpu.dot_dimension_numbers<[1], [0], [0], [1], [0, 0, 1, 1], [], []>} : vector<8x8xbf16>, vector<8x32xbf16>, vector<8x32xf32> -> vector<8x32xf32>
    %cst_46 = arith.constant 0.949999988 : f32
    %123 = vector.broadcast %cst_46 : f32 to vector<8x32xf32>
    %124 = arith.mulf %123, %122 : vector<8x32xf32>
    %125 = arith.addf %119, %124 : vector<8x32xf32>
    %126 = vector.extract_strided_slice %41 {offsets = [32, 0], sizes = [32, 32], strides = [1, 1]} : vector<96x32xf32> to vector<32x32xf32>
    %127 = arith.truncf %125 : vector<8x32xf32> to vector<8x32xbf16>
    %128 = arith.truncf %126 : vector<32x32xf32> to vector<32x32xbf16>
    %cst_47 = arith.constant dense<0.000000e+00> : vector<8x32xf32>
    %129 = tpu.matmul %127, %128, %cst_47 {dimension_numbers = #tpu.dot_dimension_numbers<[1], [0], [0], [1], [0, 0, 1, 1], [], []>} : vector<8x32xbf16>, vector<32x32xbf16>, vector<8x32xf32> -> vector<8x32xf32>
    %130 = arith.addf %117, %129 : vector<8x32xf32>
    %cst_48 = arith.constant 5.000000e-02 : f32
    %131 = vector.broadcast %cst_48 : f32 to vector<8x32xf32>
    %132 = arith.mulf %131, %42 : vector<8x32xf32>
    %133 = arith.truncf %113 : vector<8x8xf32> to vector<8x8xbf16>
    %134 = arith.truncf %125 : vector<8x32xf32> to vector<8x32xbf16>
    %cst_49 = arith.constant dense<0.000000e+00> : vector<8x32xf32>
    %135 = tpu.matmul %133, %134, %cst_49 {dimension_numbers = #tpu.dot_dimension_numbers<[1], [0], [0], [1], [0, 0, 1, 1], [], []>} : vector<8x8xbf16>, vector<8x32xbf16>, vector<8x32xf32> -> vector<8x32xf32>
    %cst_50 = arith.constant 0.949999988 : f32
    %136 = vector.broadcast %cst_50 : f32 to vector<8x32xf32>
    %137 = arith.mulf %136, %135 : vector<8x32xf32>
    %138 = arith.addf %132, %137 : vector<8x32xf32>
    %139 = vector.extract_strided_slice %41 {offsets = [64, 0], sizes = [32, 32], strides = [1, 1]} : vector<96x32xf32> to vector<32x32xf32>
    %140 = arith.truncf %138 : vector<8x32xf32> to vector<8x32xbf16>
    %141 = arith.truncf %139 : vector<32x32xf32> to vector<32x32xbf16>
    %cst_51 = arith.constant dense<0.000000e+00> : vector<8x32xf32>
    %142 = tpu.matmul %140, %141, %cst_51 {dimension_numbers = #tpu.dot_dimension_numbers<[1], [0], [0], [1], [0, 0, 1, 1], [], []>} : vector<8x32xbf16>, vector<32x32xbf16>, vector<8x32xf32> -> vector<8x32xf32>
    %143 = arith.addf %130, %142 : vector<8x32xf32>
    %c0_52 = arith.constant 0 : index
    %c0_53 = arith.constant 0 : index
    %144 = vector.load %arg15[%c0_52, %c0_53] : memref<1x32xf32, #tpu.memory_space<vmem>>, vector<1x32xf32>
    %145 = vector.broadcast %144 : vector<1x32xf32> to vector<8x32xf32>
    %146 = arith.addf %143, %145 : vector<8x32xf32>
    %147 = vector.extract_strided_slice %17 {offsets = [0, 32], sizes = [8, 32], strides = [1, 1]} : vector<8x112xf32> to vector<8x32xf32>
    %148 = vector.extract_strided_slice %147 {offsets = [0, 0], sizes = [8, 8], strides = [1, 1]} : vector<8x32xf32> to vector<8x8xf32>
    %149 = vector.extract_strided_slice %147 {offsets = [0, 8], sizes = [8, 8], strides = [1, 1]} : vector<8x32xf32> to vector<8x8xf32>
    %150 = arith.addf %148, %149 : vector<8x8xf32>
    %151 = vector.extract_strided_slice %147 {offsets = [0, 16], sizes = [8, 8], strides = [1, 1]} : vector<8x32xf32> to vector<8x8xf32>
    %152 = arith.addf %150, %151 : vector<8x8xf32>
    %153 = vector.extract_strided_slice %147 {offsets = [0, 24], sizes = [8, 8], strides = [1, 1]} : vector<8x32xf32> to vector<8x8xf32>
    %154 = arith.addf %152, %153 : vector<8x8xf32>
    %cst_54 = arith.constant 2.500000e-01 : f32
    %155 = vector.broadcast %cst_54 : f32 to vector<8x8xf32>
    %156 = arith.mulf %154, %155 : vector<8x8xf32>
    %157 = tpu.concatenate %156, %87 in 1 : vector<8x8xf32>, vector<8x8xf32> -> vector<8x16xf32>
    %c0_55 = arith.constant 0 : index
    %c0_56 = arith.constant 0 : index
    %158 = vector.load %arg10[%c0_55, %c0_56] : memref<16x48xf32, #tpu.memory_space<vmem>>, vector<16x48xf32>
    %159 = arith.truncf %157 : vector<8x16xf32> to vector<8x16xbf16>
    %160 = arith.truncf %158 : vector<16x48xf32> to vector<16x48xbf16>
    %cst_57 = arith.constant dense<0.000000e+00> : vector<8x48xf32>
    %161 = tpu.matmul %159, %160, %cst_57 {dimension_numbers = #tpu.dot_dimension_numbers<[1], [0], [0], [1], [0, 0, 1, 1], [], []>} : vector<8x16xbf16>, vector<16x48xbf16>, vector<8x48xf32> -> vector<8x48xf32>
    %c0_58 = arith.constant 0 : index
    %c0_59 = arith.constant 0 : index
    %162 = vector.load %arg11[%c0_58, %c0_59] : memref<1x48xf32, #tpu.memory_space<vmem>>, vector<1x48xf32>
    %163 = vector.broadcast %162 : vector<1x48xf32> to vector<8x48xf32>
    %164 = arith.addf %161, %163 : vector<8x48xf32>
    %165 = vector.extract_strided_slice %164 {offsets = [0, 0], sizes = [8, 24], strides = [1, 1]} : vector<8x48xf32> to vector<8x24xf32>
    %166 = vector.extract_strided_slice %164 {offsets = [0, 24], sizes = [8, 24], strides = [1, 1]} : vector<8x48xf32> to vector<8x24xf32>
    %167 = vector.extract_strided_slice %165 {offsets = [0, 0], sizes = [8, 8], strides = [1, 1]} : vector<8x24xf32> to vector<8x8xf32>
    %168 = vector.extract_strided_slice %166 {offsets = [0, 0], sizes = [8, 8], strides = [1, 1]} : vector<8x24xf32> to vector<8x8xf32>
    %169 = arith.addf %167, %168 : vector<8x8xf32>
    %170 = arith.negf %169 : vector<8x8xf32>
    %171 = math.exp %170 : vector<8x8xf32>
    %cst_60 = arith.constant 1.000000e+00 : f32
    %172 = vector.broadcast %cst_60 : f32 to vector<8x8xf32>
    %173 = arith.addf %172, %171 : vector<8x8xf32>
    %174 = arith.divf %172, %173 : vector<8x8xf32>
    %175 = vector.extract_strided_slice %165 {offsets = [0, 8], sizes = [8, 8], strides = [1, 1]} : vector<8x24xf32> to vector<8x8xf32>
    %176 = vector.extract_strided_slice %166 {offsets = [0, 8], sizes = [8, 8], strides = [1, 1]} : vector<8x24xf32> to vector<8x8xf32>
    %177 = arith.addf %175, %176 : vector<8x8xf32>
    %178 = arith.negf %177 : vector<8x8xf32>
    %179 = math.exp %178 : vector<8x8xf32>
    %cst_61 = arith.constant 1.000000e+00 : f32
    %180 = vector.broadcast %cst_61 : f32 to vector<8x8xf32>
    %181 = arith.addf %180, %179 : vector<8x8xf32>
    %182 = arith.divf %180, %181 : vector<8x8xf32>
    %183 = vector.extract_strided_slice %165 {offsets = [0, 16], sizes = [8, 8], strides = [1, 1]} : vector<8x24xf32> to vector<8x8xf32>
    %184 = vector.extract_strided_slice %166 {offsets = [0, 16], sizes = [8, 8], strides = [1, 1]} : vector<8x24xf32> to vector<8x8xf32>
    %185 = arith.mulf %174, %184 : vector<8x8xf32>
    %186 = arith.addf %183, %185 : vector<8x8xf32>
    %187 = math.tanh %186 : vector<8x8xf32>
    %cst_62 = arith.constant 1.000000e+00 : f32
    %188 = vector.broadcast %cst_62 : f32 to vector<8x8xf32>
    %189 = arith.subf %188, %182 : vector<8x8xf32>
    %190 = arith.mulf %189, %187 : vector<8x8xf32>
    %191 = arith.mulf %182, %87 : vector<8x8xf32>
    %192 = arith.addf %190, %191 : vector<8x8xf32>
    %c0_63 = arith.constant 0 : index
    %c0_64 = arith.constant 0 : index
    %193 = vector.load %arg12[%c0_63, %c0_64] : memref<8x8xf32, #tpu.memory_space<vmem>>, vector<8x8xf32>
    %194 = arith.truncf %192 : vector<8x8xf32> to vector<8x8xbf16>
    %195 = arith.truncf %193 : vector<8x8xf32> to vector<8x8xbf16>
    %cst_65 = arith.constant dense<0.000000e+00> : vector<8x8xf32>
    %196 = tpu.matmul %194, %195, %cst_65 {dimension_numbers = #tpu.dot_dimension_numbers<[1], [0], [0], [1], [0, 0, 1, 1], [], []>} : vector<8x8xbf16>, vector<8x8xbf16>, vector<8x8xf32> -> vector<8x8xf32>
    %c0_66 = arith.constant 0 : index
    %c0_67 = arith.constant 0 : index
    %197 = vector.load %arg13[%c0_66, %c0_67] : memref<1x8xf32, #tpu.memory_space<vmem>>, vector<1x8xf32>
    %198 = vector.broadcast %197 : vector<1x8xf32> to vector<8x8xf32>
    %199 = arith.addf %196, %198 : vector<8x8xf32>
    %200 = arith.truncf %192 : vector<8x8xf32> to vector<8x8xbf16>
    %201 = arith.truncf %199 : vector<8x8xf32> to vector<8x8xbf16>
    %cst_68 = arith.constant dense<0.000000e+00> : vector<8x8xf32>
    %202 = tpu.matmul %200, %201, %cst_68 {dimension_numbers = #tpu.dot_dimension_numbers<[1], [1], [0], [0], [0, 0, 1, 0], [], []>} : vector<8x8xbf16>, vector<8x8xbf16>, vector<8x8xf32> -> vector<8x8xf32>
    %203 = math.tanh %202 : vector<8x8xf32>
    %cst_69 = arith.constant 0.000000e+00 : f32
    %204 = vector.broadcast %cst_69 : f32 to vector<8x8xf32>
    %205 = arith.maximumf %203, %204 : vector<8x8xf32>
    %cst_70 = arith.constant dense<0xFF800000> : vector<8xf32>
    %206 = vector.multi_reduction <maximumf>, %205, %cst_70 [1] : vector<8x8xf32> to vector<8xf32>
    %207 = vector.shape_cast %206 : vector<8xf32> to vector<8x1xf32>
    %208 = vector.broadcast %207 : vector<8x1xf32> to vector<8x8xf32>
    %209 = arith.subf %205, %208 : vector<8x8xf32>
    %210 = math.exp %209 : vector<8x8xf32>
    %cst_71 = arith.constant dense<0.000000e+00> : vector<8xf32>
    %211 = vector.multi_reduction <add>, %210, %cst_71 [1] : vector<8x8xf32> to vector<8xf32>
    %212 = vector.shape_cast %211 : vector<8xf32> to vector<8x1xf32>
    %213 = tpu.reciprocal %212 {approx = true} : vector<8x1xf32> -> vector<8x1xf32>
    %214 = vector.broadcast %213 : vector<8x1xf32> to vector<8x8xf32>
    %215 = arith.mulf %210, %214 : vector<8x8xf32>
    %216 = arith.addf %215, %40 : vector<8x8xf32>
    %cst_72 = arith.constant 5.000000e-01 : f32
    %217 = vector.broadcast %cst_72 : f32 to vector<8x8xf32>
    %218 = arith.mulf %216, %217 : vector<8x8xf32>
    %219 = vector.extract_strided_slice %41 {offsets = [0, 0], sizes = [32, 32], strides = [1, 1]} : vector<96x32xf32> to vector<32x32xf32>
    %220 = arith.truncf %147 : vector<8x32xf32> to vector<8x32xbf16>
    %221 = arith.truncf %219 : vector<32x32xf32> to vector<32x32xbf16>
    %cst_73 = arith.constant dense<0.000000e+00> : vector<8x32xf32>
    %222 = tpu.matmul %220, %221, %cst_73 {dimension_numbers = #tpu.dot_dimension_numbers<[1], [0], [0], [1], [0, 0, 1, 1], [], []>} : vector<8x32xbf16>, vector<32x32xbf16>, vector<8x32xf32> -> vector<8x32xf32>
    %cst_74 = arith.constant 5.000000e-02 : f32
    %223 = vector.broadcast %cst_74 : f32 to vector<8x32xf32>
    %224 = arith.mulf %223, %147 : vector<8x32xf32>
    %225 = arith.truncf %218 : vector<8x8xf32> to vector<8x8xbf16>
    %226 = arith.truncf %147 : vector<8x32xf32> to vector<8x32xbf16>
    %cst_75 = arith.constant dense<0.000000e+00> : vector<8x32xf32>
    %227 = tpu.matmul %225, %226, %cst_75 {dimension_numbers = #tpu.dot_dimension_numbers<[1], [0], [0], [1], [0, 0, 1, 1], [], []>} : vector<8x8xbf16>, vector<8x32xbf16>, vector<8x32xf32> -> vector<8x32xf32>
    %cst_76 = arith.constant 0.949999988 : f32
    %228 = vector.broadcast %cst_76 : f32 to vector<8x32xf32>
    %229 = arith.mulf %228, %227 : vector<8x32xf32>
    %230 = arith.addf %224, %229 : vector<8x32xf32>
    %231 = vector.extract_strided_slice %41 {offsets = [32, 0], sizes = [32, 32], strides = [1, 1]} : vector<96x32xf32> to vector<32x32xf32>
    %232 = arith.truncf %230 : vector<8x32xf32> to vector<8x32xbf16>
    %233 = arith.truncf %231 : vector<32x32xf32> to vector<32x32xbf16>
    %cst_77 = arith.constant dense<0.000000e+00> : vector<8x32xf32>
    %234 = tpu.matmul %232, %233, %cst_77 {dimension_numbers = #tpu.dot_dimension_numbers<[1], [0], [0], [1], [0, 0, 1, 1], [], []>} : vector<8x32xbf16>, vector<32x32xbf16>, vector<8x32xf32> -> vector<8x32xf32>
    %235 = arith.addf %222, %234 : vector<8x32xf32>
    %cst_78 = arith.constant 5.000000e-02 : f32
    %236 = vector.broadcast %cst_78 : f32 to vector<8x32xf32>
    %237 = arith.mulf %236, %147 : vector<8x32xf32>
    %238 = arith.truncf %218 : vector<8x8xf32> to vector<8x8xbf16>
    %239 = arith.truncf %230 : vector<8x32xf32> to vector<8x32xbf16>
    %cst_79 = arith.constant dense<0.000000e+00> : vector<8x32xf32>
    %240 = tpu.matmul %238, %239, %cst_79 {dimension_numbers = #tpu.dot_dimension_numbers<[1], [0], [0], [1], [0, 0, 1, 1], [], []>} : vector<8x8xbf16>, vector<8x32xbf16>, vector<8x32xf32> -> vector<8x32xf32>
    %cst_80 = arith.constant 0.949999988 : f32
    %241 = vector.broadcast %cst_80 : f32 to vector<8x32xf32>
    %242 = arith.mulf %241, %240 : vector<8x32xf32>
    %243 = arith.addf %237, %242 : vector<8x32xf32>
    %244 = vector.extract_strided_slice %41 {offsets = [64, 0], sizes = [32, 32], strides = [1, 1]} : vector<96x32xf32> to vector<32x32xf32>
    %245 = arith.truncf %243 : vector<8x32xf32> to vector<8x32xbf16>
    %246 = arith.truncf %244 : vector<32x32xf32> to vector<32x32xbf16>
    %cst_81 = arith.constant dense<0.000000e+00> : vector<8x32xf32>
    %247 = tpu.matmul %245, %246, %cst_81 {dimension_numbers = #tpu.dot_dimension_numbers<[1], [0], [0], [1], [0, 0, 1, 1], [], []>} : vector<8x32xbf16>, vector<32x32xbf16>, vector<8x32xf32> -> vector<8x32xf32>
    %248 = arith.addf %235, %247 : vector<8x32xf32>
    %c0_82 = arith.constant 0 : index
    %c0_83 = arith.constant 0 : index
    %249 = vector.load %arg15[%c0_82, %c0_83] : memref<1x32xf32, #tpu.memory_space<vmem>>, vector<1x32xf32>
    %250 = vector.broadcast %249 : vector<1x32xf32> to vector<8x32xf32>
    %251 = arith.addf %248, %250 : vector<8x32xf32>
    %252 = vector.extract_strided_slice %17 {offsets = [0, 64], sizes = [8, 32], strides = [1, 1]} : vector<8x112xf32> to vector<8x32xf32>
    %253 = vector.extract_strided_slice %252 {offsets = [0, 0], sizes = [8, 8], strides = [1, 1]} : vector<8x32xf32> to vector<8x8xf32>
    %254 = vector.extract_strided_slice %252 {offsets = [0, 8], sizes = [8, 8], strides = [1, 1]} : vector<8x32xf32> to vector<8x8xf32>
    %255 = arith.addf %253, %254 : vector<8x8xf32>
    %256 = vector.extract_strided_slice %252 {offsets = [0, 16], sizes = [8, 8], strides = [1, 1]} : vector<8x32xf32> to vector<8x8xf32>
    %257 = arith.addf %255, %256 : vector<8x8xf32>
    %258 = vector.extract_strided_slice %252 {offsets = [0, 24], sizes = [8, 8], strides = [1, 1]} : vector<8x32xf32> to vector<8x8xf32>
    %259 = arith.addf %257, %258 : vector<8x8xf32>
    %cst_84 = arith.constant 2.500000e-01 : f32
    %260 = vector.broadcast %cst_84 : f32 to vector<8x8xf32>
    %261 = arith.mulf %259, %260 : vector<8x8xf32>
    %262 = tpu.concatenate %261, %192 in 1 : vector<8x8xf32>, vector<8x8xf32> -> vector<8x16xf32>
    %c0_85 = arith.constant 0 : index
    %c0_86 = arith.constant 0 : index
    %263 = vector.load %arg10[%c0_85, %c0_86] : memref<16x48xf32, #tpu.memory_space<vmem>>, vector<16x48xf32>
    %264 = arith.truncf %262 : vector<8x16xf32> to vector<8x16xbf16>
    %265 = arith.truncf %263 : vector<16x48xf32> to vector<16x48xbf16>
    %cst_87 = arith.constant dense<0.000000e+00> : vector<8x48xf32>
    %266 = tpu.matmul %264, %265, %cst_87 {dimension_numbers = #tpu.dot_dimension_numbers<[1], [0], [0], [1], [0, 0, 1, 1], [], []>} : vector<8x16xbf16>, vector<16x48xbf16>, vector<8x48xf32> -> vector<8x48xf32>
    %c0_88 = arith.constant 0 : index
    %c0_89 = arith.constant 0 : index
    %267 = vector.load %arg11[%c0_88, %c0_89] : memref<1x48xf32, #tpu.memory_space<vmem>>, vector<1x48xf32>
    %268 = vector.broadcast %267 : vector<1x48xf32> to vector<8x48xf32>
    %269 = arith.addf %266, %268 : vector<8x48xf32>
    %270 = vector.extract_strided_slice %269 {offsets = [0, 0], sizes = [8, 24], strides = [1, 1]} : vector<8x48xf32> to vector<8x24xf32>
    %271 = vector.extract_strided_slice %269 {offsets = [0, 24], sizes = [8, 24], strides = [1, 1]} : vector<8x48xf32> to vector<8x24xf32>
    %272 = vector.extract_strided_slice %270 {offsets = [0, 0], sizes = [8, 8], strides = [1, 1]} : vector<8x24xf32> to vector<8x8xf32>
    %273 = vector.extract_strided_slice %271 {offsets = [0, 0], sizes = [8, 8], strides = [1, 1]} : vector<8x24xf32> to vector<8x8xf32>
    %274 = arith.addf %272, %273 : vector<8x8xf32>
    %275 = arith.negf %274 : vector<8x8xf32>
    %276 = math.exp %275 : vector<8x8xf32>
    %cst_90 = arith.constant 1.000000e+00 : f32
    %277 = vector.broadcast %cst_90 : f32 to vector<8x8xf32>
    %278 = arith.addf %277, %276 : vector<8x8xf32>
    %279 = arith.divf %277, %278 : vector<8x8xf32>
    %280 = vector.extract_strided_slice %270 {offsets = [0, 8], sizes = [8, 8], strides = [1, 1]} : vector<8x24xf32> to vector<8x8xf32>
    %281 = vector.extract_strided_slice %271 {offsets = [0, 8], sizes = [8, 8], strides = [1, 1]} : vector<8x24xf32> to vector<8x8xf32>
    %282 = arith.addf %280, %281 : vector<8x8xf32>
    %283 = arith.negf %282 : vector<8x8xf32>
    %284 = math.exp %283 : vector<8x8xf32>
    %cst_91 = arith.constant 1.000000e+00 : f32
    %285 = vector.broadcast %cst_91 : f32 to vector<8x8xf32>
    %286 = arith.addf %285, %284 : vector<8x8xf32>
    %287 = arith.divf %285, %286 : vector<8x8xf32>
    %288 = vector.extract_strided_slice %270 {offsets = [0, 16], sizes = [8, 8], strides = [1, 1]} : vector<8x24xf32> to vector<8x8xf32>
    %289 = vector.extract_strided_slice %271 {offsets = [0, 16], sizes = [8, 8], strides = [1, 1]} : vector<8x24xf32> to vector<8x8xf32>
    %290 = arith.mulf %279, %289 : vector<8x8xf32>
    %291 = arith.addf %288, %290 : vector<8x8xf32>
    %292 = math.tanh %291 : vector<8x8xf32>
    %cst_92 = arith.constant 1.000000e+00 : f32
    %293 = vector.broadcast %cst_92 : f32 to vector<8x8xf32>
    %294 = arith.subf %293, %287 : vector<8x8xf32>
    %295 = arith.mulf %294, %292 : vector<8x8xf32>
    %296 = arith.mulf %287, %192 : vector<8x8xf32>
    %297 = arith.addf %295, %296 : vector<8x8xf32>
    %c0_93 = arith.constant 0 : index
    %c0_94 = arith.constant 0 : index
    %298 = vector.load %arg12[%c0_93, %c0_94] : memref<8x8xf32, #tpu.memory_space<vmem>>, vector<8x8xf32>
    %299 = arith.truncf %297 : vector<8x8xf32> to vector<8x8xbf16>
    %300 = arith.truncf %298 : vector<8x8xf32> to vector<8x8xbf16>
    %cst_95 = arith.constant dense<0.000000e+00> : vector<8x8xf32>
    %301 = tpu.matmul %299, %300, %cst_95 {dimension_numbers = #tpu.dot_dimension_numbers<[1], [0], [0], [1], [0, 0, 1, 1], [], []>} : vector<8x8xbf16>, vector<8x8xbf16>, vector<8x8xf32> -> vector<8x8xf32>
    %c0_96 = arith.constant 0 : index
    %c0_97 = arith.constant 0 : index
    %302 = vector.load %arg13[%c0_96, %c0_97] : memref<1x8xf32, #tpu.memory_space<vmem>>, vector<1x8xf32>
    %303 = vector.broadcast %302 : vector<1x8xf32> to vector<8x8xf32>
    %304 = arith.addf %301, %303 : vector<8x8xf32>
    %305 = arith.truncf %297 : vector<8x8xf32> to vector<8x8xbf16>
    %306 = arith.truncf %304 : vector<8x8xf32> to vector<8x8xbf16>
    %cst_98 = arith.constant dense<0.000000e+00> : vector<8x8xf32>
    %307 = tpu.matmul %305, %306, %cst_98 {dimension_numbers = #tpu.dot_dimension_numbers<[1], [1], [0], [0], [0, 0, 1, 0], [], []>} : vector<8x8xbf16>, vector<8x8xbf16>, vector<8x8xf32> -> vector<8x8xf32>
    %308 = math.tanh %307 : vector<8x8xf32>
    %cst_99 = arith.constant 0.000000e+00 : f32
    %309 = vector.broadcast %cst_99 : f32 to vector<8x8xf32>
    %310 = arith.maximumf %308, %309 : vector<8x8xf32>
    %cst_100 = arith.constant dense<0xFF800000> : vector<8xf32>
    %311 = vector.multi_reduction <maximumf>, %310, %cst_100 [1] : vector<8x8xf32> to vector<8xf32>
    %312 = vector.shape_cast %311 : vector<8xf32> to vector<8x1xf32>
    %313 = vector.broadcast %312 : vector<8x1xf32> to vector<8x8xf32>
    %314 = arith.subf %310, %313 : vector<8x8xf32>
    %315 = math.exp %314 : vector<8x8xf32>
    %cst_101 = arith.constant dense<0.000000e+00> : vector<8xf32>
    %316 = vector.multi_reduction <add>, %315, %cst_101 [1] : vector<8x8xf32> to vector<8xf32>
    %317 = vector.shape_cast %316 : vector<8xf32> to vector<8x1xf32>
    %318 = tpu.reciprocal %317 {approx = true} : vector<8x1xf32> -> vector<8x1xf32>
    %319 = vector.broadcast %318 : vector<8x1xf32> to vector<8x8xf32>
    %320 = arith.mulf %315, %319 : vector<8x8xf32>
    %321 = arith.addf %320, %40 : vector<8x8xf32>
    %cst_102 = arith.constant 5.000000e-01 : f32
    %322 = vector.broadcast %cst_102 : f32 to vector<8x8xf32>
    %323 = arith.mulf %321, %322 : vector<8x8xf32>
    %324 = vector.extract_strided_slice %41 {offsets = [0, 0], sizes = [32, 32], strides = [1, 1]} : vector<96x32xf32> to vector<32x32xf32>
    %325 = arith.truncf %252 : vector<8x32xf32> to vector<8x32xbf16>
    %326 = arith.truncf %324 : vector<32x32xf32> to vector<32x32xbf16>
    %cst_103 = arith.constant dense<0.000000e+00> : vector<8x32xf32>
    %327 = tpu.matmul %325, %326, %cst_103 {dimension_numbers = #tpu.dot_dimension_numbers<[1], [0], [0], [1], [0, 0, 1, 1], [], []>} : vector<8x32xbf16>, vector<32x32xbf16>, vector<8x32xf32> -> vector<8x32xf32>
    %cst_104 = arith.constant 5.000000e-02 : f32
    %328 = vector.broadcast %cst_104 : f32 to vector<8x32xf32>
    %329 = arith.mulf %328, %252 : vector<8x32xf32>
    %330 = arith.truncf %323 : vector<8x8xf32> to vector<8x8xbf16>
    %331 = arith.truncf %252 : vector<8x32xf32> to vector<8x32xbf16>
    %cst_105 = arith.constant dense<0.000000e+00> : vector<8x32xf32>
    %332 = tpu.matmul %330, %331, %cst_105 {dimension_numbers = #tpu.dot_dimension_numbers<[1], [0], [0], [1], [0, 0, 1, 1], [], []>} : vector<8x8xbf16>, vector<8x32xbf16>, vector<8x32xf32> -> vector<8x32xf32>
    %cst_106 = arith.constant 0.949999988 : f32
    %333 = vector.broadcast %cst_106 : f32 to vector<8x32xf32>
    %334 = arith.mulf %333, %332 : vector<8x32xf32>
    %335 = arith.addf %329, %334 : vector<8x32xf32>
    %336 = vector.extract_strided_slice %41 {offsets = [32, 0], sizes = [32, 32], strides = [1, 1]} : vector<96x32xf32> to vector<32x32xf32>
    %337 = arith.truncf %335 : vector<8x32xf32> to vector<8x32xbf16>
    %338 = arith.truncf %336 : vector<32x32xf32> to vector<32x32xbf16>
    %cst_107 = arith.constant dense<0.000000e+00> : vector<8x32xf32>
    %339 = tpu.matmul %337, %338, %cst_107 {dimension_numbers = #tpu.dot_dimension_numbers<[1], [0], [0], [1], [0, 0, 1, 1], [], []>} : vector<8x32xbf16>, vector<32x32xbf16>, vector<8x32xf32> -> vector<8x32xf32>
    %340 = arith.addf %327, %339 : vector<8x32xf32>
    %cst_108 = arith.constant 5.000000e-02 : f32
    %341 = vector.broadcast %cst_108 : f32 to vector<8x32xf32>
    %342 = arith.mulf %341, %252 : vector<8x32xf32>
    %343 = arith.truncf %323 : vector<8x8xf32> to vector<8x8xbf16>
    %344 = arith.truncf %335 : vector<8x32xf32> to vector<8x32xbf16>
    %cst_109 = arith.constant dense<0.000000e+00> : vector<8x32xf32>
    %345 = tpu.matmul %343, %344, %cst_109 {dimension_numbers = #tpu.dot_dimension_numbers<[1], [0], [0], [1], [0, 0, 1, 1], [], []>} : vector<8x8xbf16>, vector<8x32xbf16>, vector<8x32xf32> -> vector<8x32xf32>
    %cst_110 = arith.constant 0.949999988 : f32
    %346 = vector.broadcast %cst_110 : f32 to vector<8x32xf32>
    %347 = arith.mulf %346, %345 : vector<8x32xf32>
    %348 = arith.addf %342, %347 : vector<8x32xf32>
    %349 = vector.extract_strided_slice %41 {offsets = [64, 0], sizes = [32, 32], strides = [1, 1]} : vector<96x32xf32> to vector<32x32xf32>
    %350 = arith.truncf %348 : vector<8x32xf32> to vector<8x32xbf16>
    %351 = arith.truncf %349 : vector<32x32xf32> to vector<32x32xbf16>
    %cst_111 = arith.constant dense<0.000000e+00> : vector<8x32xf32>
    %352 = tpu.matmul %350, %351, %cst_111 {dimension_numbers = #tpu.dot_dimension_numbers<[1], [0], [0], [1], [0, 0, 1, 1], [], []>} : vector<8x32xbf16>, vector<32x32xbf16>, vector<8x32xf32> -> vector<8x32xf32>
    %353 = arith.addf %340, %352 : vector<8x32xf32>
    %c0_112 = arith.constant 0 : index
    %c0_113 = arith.constant 0 : index
    %354 = vector.load %arg15[%c0_112, %c0_113] : memref<1x32xf32, #tpu.memory_space<vmem>>, vector<1x32xf32>
    %355 = vector.broadcast %354 : vector<1x32xf32> to vector<8x32xf32>
    %356 = arith.addf %353, %355 : vector<8x32xf32>
    %357 = vector.extract_strided_slice %17 {offsets = [0, 96], sizes = [8, 16], strides = [1, 1]} : vector<8x112xf32> to vector<8x16xf32>
    %358 = vector.extract_strided_slice %357 {offsets = [0, 0], sizes = [8, 8], strides = [1, 1]} : vector<8x16xf32> to vector<8x8xf32>
    %359 = vector.extract_strided_slice %357 {offsets = [0, 8], sizes = [8, 8], strides = [1, 1]} : vector<8x16xf32> to vector<8x8xf32>
    %360 = arith.addf %358, %359 : vector<8x8xf32>
    %cst_114 = arith.constant 5.000000e-01 : f32
    %361 = vector.broadcast %cst_114 : f32 to vector<8x8xf32>
    %362 = arith.mulf %360, %361 : vector<8x8xf32>
    %363 = tpu.concatenate %362, %297 in 1 : vector<8x8xf32>, vector<8x8xf32> -> vector<8x16xf32>
    %c0_115 = arith.constant 0 : index
    %c0_116 = arith.constant 0 : index
    %364 = vector.load %arg10[%c0_115, %c0_116] : memref<16x48xf32, #tpu.memory_space<vmem>>, vector<16x48xf32>
    %365 = arith.truncf %363 : vector<8x16xf32> to vector<8x16xbf16>
    %366 = arith.truncf %364 : vector<16x48xf32> to vector<16x48xbf16>
    %cst_117 = arith.constant dense<0.000000e+00> : vector<8x48xf32>
    %367 = tpu.matmul %365, %366, %cst_117 {dimension_numbers = #tpu.dot_dimension_numbers<[1], [0], [0], [1], [0, 0, 1, 1], [], []>} : vector<8x16xbf16>, vector<16x48xbf16>, vector<8x48xf32> -> vector<8x48xf32>
    %c0_118 = arith.constant 0 : index
    %c0_119 = arith.constant 0 : index
    %368 = vector.load %arg11[%c0_118, %c0_119] : memref<1x48xf32, #tpu.memory_space<vmem>>, vector<1x48xf32>
    %369 = vector.broadcast %368 : vector<1x48xf32> to vector<8x48xf32>
    %370 = arith.addf %367, %369 : vector<8x48xf32>
    %371 = vector.extract_strided_slice %370 {offsets = [0, 0], sizes = [8, 24], strides = [1, 1]} : vector<8x48xf32> to vector<8x24xf32>
    %372 = vector.extract_strided_slice %370 {offsets = [0, 24], sizes = [8, 24], strides = [1, 1]} : vector<8x48xf32> to vector<8x24xf32>
    %373 = vector.extract_strided_slice %371 {offsets = [0, 0], sizes = [8, 8], strides = [1, 1]} : vector<8x24xf32> to vector<8x8xf32>
    %374 = vector.extract_strided_slice %372 {offsets = [0, 0], sizes = [8, 8], strides = [1, 1]} : vector<8x24xf32> to vector<8x8xf32>
    %375 = arith.addf %373, %374 : vector<8x8xf32>
    %376 = arith.negf %375 : vector<8x8xf32>
    %377 = math.exp %376 : vector<8x8xf32>
    %cst_120 = arith.constant 1.000000e+00 : f32
    %378 = vector.broadcast %cst_120 : f32 to vector<8x8xf32>
    %379 = arith.addf %378, %377 : vector<8x8xf32>
    %380 = arith.divf %378, %379 : vector<8x8xf32>
    %381 = vector.extract_strided_slice %371 {offsets = [0, 8], sizes = [8, 8], strides = [1, 1]} : vector<8x24xf32> to vector<8x8xf32>
    %382 = vector.extract_strided_slice %372 {offsets = [0, 8], sizes = [8, 8], strides = [1, 1]} : vector<8x24xf32> to vector<8x8xf32>
    %383 = arith.addf %381, %382 : vector<8x8xf32>
    %384 = arith.negf %383 : vector<8x8xf32>
    %385 = math.exp %384 : vector<8x8xf32>
    %cst_121 = arith.constant 1.000000e+00 : f32
    %386 = vector.broadcast %cst_121 : f32 to vector<8x8xf32>
    %387 = arith.addf %386, %385 : vector<8x8xf32>
    %388 = arith.divf %386, %387 : vector<8x8xf32>
    %389 = vector.extract_strided_slice %371 {offsets = [0, 16], sizes = [8, 8], strides = [1, 1]} : vector<8x24xf32> to vector<8x8xf32>
    %390 = vector.extract_strided_slice %372 {offsets = [0, 16], sizes = [8, 8], strides = [1, 1]} : vector<8x24xf32> to vector<8x8xf32>
    %391 = arith.mulf %380, %390 : vector<8x8xf32>
    %392 = arith.addf %389, %391 : vector<8x8xf32>
    %393 = math.tanh %392 : vector<8x8xf32>
    %cst_122 = arith.constant 1.000000e+00 : f32
    %394 = vector.broadcast %cst_122 : f32 to vector<8x8xf32>
    %395 = arith.subf %394, %388 : vector<8x8xf32>
    %396 = arith.mulf %395, %393 : vector<8x8xf32>
    %397 = arith.mulf %388, %297 : vector<8x8xf32>
    %398 = arith.addf %396, %397 : vector<8x8xf32>
    %c0_123 = arith.constant 0 : index
    %c0_124 = arith.constant 0 : index
    %399 = vector.load %arg12[%c0_123, %c0_124] : memref<8x8xf32, #tpu.memory_space<vmem>>, vector<8x8xf32>
    %400 = arith.truncf %398 : vector<8x8xf32> to vector<8x8xbf16>
    %401 = arith.truncf %399 : vector<8x8xf32> to vector<8x8xbf16>
    %cst_125 = arith.constant dense<0.000000e+00> : vector<8x8xf32>
    %402 = tpu.matmul %400, %401, %cst_125 {dimension_numbers = #tpu.dot_dimension_numbers<[1], [0], [0], [1], [0, 0, 1, 1], [], []>} : vector<8x8xbf16>, vector<8x8xbf16>, vector<8x8xf32> -> vector<8x8xf32>
    %c0_126 = arith.constant 0 : index
    %c0_127 = arith.constant 0 : index
    %403 = vector.load %arg13[%c0_126, %c0_127] : memref<1x8xf32, #tpu.memory_space<vmem>>, vector<1x8xf32>
    %404 = vector.broadcast %403 : vector<1x8xf32> to vector<8x8xf32>
    %405 = arith.addf %402, %404 : vector<8x8xf32>
    %406 = arith.truncf %398 : vector<8x8xf32> to vector<8x8xbf16>
    %407 = arith.truncf %405 : vector<8x8xf32> to vector<8x8xbf16>
    %cst_128 = arith.constant dense<0.000000e+00> : vector<8x8xf32>
    %408 = tpu.matmul %406, %407, %cst_128 {dimension_numbers = #tpu.dot_dimension_numbers<[1], [1], [0], [0], [0, 0, 1, 0], [], []>} : vector<8x8xbf16>, vector<8x8xbf16>, vector<8x8xf32> -> vector<8x8xf32>
    %409 = math.tanh %408 : vector<8x8xf32>
    %cst_129 = arith.constant 0.000000e+00 : f32
    %410 = vector.broadcast %cst_129 : f32 to vector<8x8xf32>
    %411 = arith.maximumf %409, %410 : vector<8x8xf32>
    %cst_130 = arith.constant dense<0xFF800000> : vector<8xf32>
    %412 = vector.multi_reduction <maximumf>, %411, %cst_130 [1] : vector<8x8xf32> to vector<8xf32>
    %413 = vector.shape_cast %412 : vector<8xf32> to vector<8x1xf32>
    %414 = vector.broadcast %413 : vector<8x1xf32> to vector<8x8xf32>
    %415 = arith.subf %411, %414 : vector<8x8xf32>
    %416 = math.exp %415 : vector<8x8xf32>
    %cst_131 = arith.constant dense<0.000000e+00> : vector<8xf32>
    %417 = vector.multi_reduction <add>, %416, %cst_131 [1] : vector<8x8xf32> to vector<8xf32>
    %418 = vector.shape_cast %417 : vector<8xf32> to vector<8x1xf32>
    %419 = tpu.reciprocal %418 {approx = true} : vector<8x1xf32> -> vector<8x1xf32>
    %420 = vector.broadcast %419 : vector<8x1xf32> to vector<8x8xf32>
    %421 = arith.mulf %416, %420 : vector<8x8xf32>
    %422 = arith.addf %421, %40 : vector<8x8xf32>
    %cst_132 = arith.constant 5.000000e-01 : f32
    %423 = vector.broadcast %cst_132 : f32 to vector<8x8xf32>
    %424 = arith.mulf %422, %423 : vector<8x8xf32>
    %425 = vector.extract_strided_slice %41 {offsets = [0, 0], sizes = [16, 16], strides = [1, 1]} : vector<96x32xf32> to vector<16x16xf32>
    %426 = arith.truncf %357 : vector<8x16xf32> to vector<8x16xbf16>
    %427 = arith.truncf %425 : vector<16x16xf32> to vector<16x16xbf16>
    %cst_133 = arith.constant dense<0.000000e+00> : vector<8x16xf32>
    %428 = tpu.matmul %426, %427, %cst_133 {dimension_numbers = #tpu.dot_dimension_numbers<[1], [0], [0], [1], [0, 0, 1, 1], [], []>} : vector<8x16xbf16>, vector<16x16xbf16>, vector<8x16xf32> -> vector<8x16xf32>
    %cst_134 = arith.constant 5.000000e-02 : f32
    %429 = vector.broadcast %cst_134 : f32 to vector<8x16xf32>
    %430 = arith.mulf %429, %357 : vector<8x16xf32>
    %431 = arith.truncf %424 : vector<8x8xf32> to vector<8x8xbf16>
    %432 = arith.truncf %357 : vector<8x16xf32> to vector<8x16xbf16>
    %cst_135 = arith.constant dense<0.000000e+00> : vector<8x16xf32>
    %433 = tpu.matmul %431, %432, %cst_135 {dimension_numbers = #tpu.dot_dimension_numbers<[1], [0], [0], [1], [0, 0, 1, 1], [], []>} : vector<8x8xbf16>, vector<8x16xbf16>, vector<8x16xf32> -> vector<8x16xf32>
    %cst_136 = arith.constant 0.949999988 : f32
    %434 = vector.broadcast %cst_136 : f32 to vector<8x16xf32>
    %435 = arith.mulf %434, %433 : vector<8x16xf32>
    %436 = arith.addf %430, %435 : vector<8x16xf32>
    %437 = vector.extract_strided_slice %41 {offsets = [32, 0], sizes = [16, 16], strides = [1, 1]} : vector<96x32xf32> to vector<16x16xf32>
    %438 = arith.truncf %436 : vector<8x16xf32> to vector<8x16xbf16>
    %439 = arith.truncf %437 : vector<16x16xf32> to vector<16x16xbf16>
    %cst_137 = arith.constant dense<0.000000e+00> : vector<8x16xf32>
    %440 = tpu.matmul %438, %439, %cst_137 {dimension_numbers = #tpu.dot_dimension_numbers<[1], [0], [0], [1], [0, 0, 1, 1], [], []>} : vector<8x16xbf16>, vector<16x16xbf16>, vector<8x16xf32> -> vector<8x16xf32>
    %441 = arith.addf %428, %440 : vector<8x16xf32>
    %cst_138 = arith.constant 5.000000e-02 : f32
    %442 = vector.broadcast %cst_138 : f32 to vector<8x16xf32>
    %443 = arith.mulf %442, %357 : vector<8x16xf32>
    %444 = arith.truncf %424 : vector<8x8xf32> to vector<8x8xbf16>
    %445 = arith.truncf %436 : vector<8x16xf32> to vector<8x16xbf16>
    %cst_139 = arith.constant dense<0.000000e+00> : vector<8x16xf32>
    %446 = tpu.matmul %444, %445, %cst_139 {dimension_numbers = #tpu.dot_dimension_numbers<[1], [0], [0], [1], [0, 0, 1, 1], [], []>} : vector<8x8xbf16>, vector<8x16xbf16>, vector<8x16xf32> -> vector<8x16xf32>
    %cst_140 = arith.constant 0.949999988 : f32
    %447 = vector.broadcast %cst_140 : f32 to vector<8x16xf32>
    %448 = arith.mulf %447, %446 : vector<8x16xf32>
    %449 = arith.addf %443, %448 : vector<8x16xf32>
    %450 = vector.extract_strided_slice %41 {offsets = [64, 0], sizes = [16, 16], strides = [1, 1]} : vector<96x32xf32> to vector<16x16xf32>
    %451 = arith.truncf %449 : vector<8x16xf32> to vector<8x16xbf16>
    %452 = arith.truncf %450 : vector<16x16xf32> to vector<16x16xbf16>
    %cst_141 = arith.constant dense<0.000000e+00> : vector<8x16xf32>
    %453 = tpu.matmul %451, %452, %cst_141 {dimension_numbers = #tpu.dot_dimension_numbers<[1], [0], [0], [1], [0, 0, 1, 1], [], []>} : vector<8x16xbf16>, vector<16x16xbf16>, vector<8x16xf32> -> vector<8x16xf32>
    %454 = arith.addf %441, %453 : vector<8x16xf32>
    %c0_142 = arith.constant 0 : index
    %c0_143 = arith.constant 0 : index
    %455 = vector.load %arg15[%c0_142, %c0_143] : memref<1x32xf32, #tpu.memory_space<vmem>>, vector<1x16xf32>
    %456 = vector.broadcast %455 : vector<1x16xf32> to vector<8x16xf32>
    %457 = arith.addf %454, %456 : vector<8x16xf32>
    %458 = tpu.concatenate %146, %251, %356, %457 in 1 : vector<8x32xf32>, vector<8x32xf32>, vector<8x32xf32>, vector<8x16xf32> -> vector<8x112xf32>
    %c0_144 = arith.constant 0 : index
    %c0_145 = arith.constant 0 : index
    %c0_146 = arith.constant 0 : index
    %459 = vector.load %arg2[%c0_144, %c0_145, %c0_146] : memref<1x8x112xf32, #tpu.memory_space<vmem>>, vector<1x8x112xf32>
    %460 = vector.shape_cast %459 : vector<1x8x112xf32> to vector<8x112xf32>
    %461 = arith.addf %458, %460 : vector<8x112xf32>
    %cst_147 = arith.constant dense<0.000000e+00> : vector<8xf32>
    %462 = vector.multi_reduction <add>, %461, %cst_147 [1] : vector<8x112xf32> to vector<8xf32>
    %463 = vector.shape_cast %462 : vector<8xf32> to vector<8x1xf32>
    %cst_148 = arith.constant dense<0.000000e+00> : vector<1xf32>
    %464 = vector.multi_reduction <add>, %463, %cst_148 [0] : vector<8x1xf32> to vector<1xf32>
    %465 = vector.shape_cast %464 : vector<1xf32> to vector<1x1xf32>
    %cst_149 = arith.constant 0.00111607148 : f32
    %466 = vector.broadcast %cst_149 : f32 to vector<1x1xf32>
    %467 = arith.mulf %465, %466 : vector<1x1xf32>
    %468 = vector.broadcast %467 : vector<1x1xf32> to vector<8x112xf32>
    %469 = arith.subf %461, %468 : vector<8x112xf32>
    %470 = arith.mulf %469, %469 : vector<8x112xf32>
    %cst_150 = arith.constant dense<0.000000e+00> : vector<8xf32>
    %471 = vector.multi_reduction <add>, %470, %cst_150 [1] : vector<8x112xf32> to vector<8xf32>
    %472 = vector.shape_cast %471 : vector<8xf32> to vector<8x1xf32>
    %cst_151 = arith.constant dense<0.000000e+00> : vector<1xf32>
    %473 = vector.multi_reduction <add>, %472, %cst_151 [0] : vector<8x1xf32> to vector<1xf32>
    %474 = vector.shape_cast %473 : vector<1xf32> to vector<1x1xf32>
    %cst_152 = arith.constant 0.00111607148 : f32
    %475 = vector.broadcast %cst_152 : f32 to vector<1x1xf32>
    %476 = arith.mulf %474, %475 : vector<1x1xf32>
    %cst_153 = arith.constant 9.99999974E-6 : f32
    %477 = vector.broadcast %cst_153 : f32 to vector<1x1xf32>
    %478 = arith.addf %476, %477 : vector<1x1xf32>
    %479 = math.rsqrt %478 : vector<1x1xf32>
    %480 = vector.broadcast %479 : vector<1x1xf32> to vector<8x112xf32>
    %481 = arith.mulf %469, %480 : vector<8x112xf32>
    %c0_154 = arith.constant 0 : index
    %c0_155 = arith.constant 0 : index
    %482 = vector.load %arg16[%c0_154, %c0_155] : memref<8x112xf32, #tpu.memory_space<vmem>>, vector<8x112xf32>
    %483 = arith.mulf %481, %482 : vector<8x112xf32>
    %c0_156 = arith.constant 0 : index
    %c0_157 = arith.constant 0 : index
    %484 = vector.load %arg17[%c0_156, %c0_157] : memref<8x112xf32, #tpu.memory_space<vmem>>, vector<8x112xf32>
    %485 = arith.addf %483, %484 : vector<8x112xf32>
    %c0_158 = arith.constant 0 : index
    %c0_159 = arith.constant 0 : index
    %c0_160 = arith.constant 0 : index
    %486 = vector.load %arg18[%c0_158, %c0_159, %c0_160] : memref<1x8x112xf32, #tpu.memory_space<vmem>>, vector<1x8x112xf32>
    %487 = vector.shape_cast %486 : vector<1x8x112xf32> to vector<8x112xf32>
    %488 = vector.shape_cast %485 : vector<8x112xf32> to vector<1x8x112xf32>
    tpu.vector_store %arg18[%c0_158, %c0_159, %c0_160], %488 {strides = array<i32>} : memref<1x8x112xf32, #tpu.memory_space<vmem>>, vector<1x8x112xf32>,
    return
  }
  func.func @transform_0(%arg0: i32) -> (i32, i32, i32) {
    %c0_i32 = arith.constant 0 : i32
    %c0_i32_0 = arith.constant 0 : i32
    %c0_i32_1 = arith.constant 0 : i32
    return %arg0, %c0_i32, %c0_i32_0 : i32, i32, i32
  }
  func.func @transform_1(%arg0: i32) -> (i32, i32, i32) {
    %c0_i32 = arith.constant 0 : i32
    %c0_i32_0 = arith.constant 0 : i32
    %c0_i32_1 = arith.constant 0 : i32
    return %arg0, %c0_i32, %c0_i32_0 : i32, i32, i32
  }
  func.func @transform_2(%arg0: i32) -> (i32, i32) {
    %c0_i32 = arith.constant 0 : i32
    %c0_i32_0 = arith.constant 0 : i32
    %c0_i32_1 = arith.constant 0 : i32
    return %c0_i32, %c0_i32_0 : i32, i32
  }
  func.func @transform_3(%arg0: i32) -> (i32, i32) {
    %c0_i32 = arith.constant 0 : i32
    %c0_i32_0 = arith.constant 0 : i32
    %c0_i32_1 = arith.constant 0 : i32
    return %c0_i32, %c0_i32_0 : i32, i32
  }
  func.func @transform_4(%arg0: i32) -> (i32, i32) {
    %c0_i32 = arith.constant 0 : i32
    %c0_i32_0 = arith.constant 0 : i32
    %c0_i32_1 = arith.constant 0 : i32
    return %c0_i32, %c0_i32_0 : i32, i32
  }
  func.func @transform_5(%arg0: i32) -> (i32, i32) {
    %c0_i32 = arith.constant 0 : i32
    %c0_i32_0 = arith.constant 0 : i32
    %c0_i32_1 = arith.constant 0 : i32
    return %c0_i32, %c0_i32_0 : i32, i32
  }
  func.func @transform_6(%arg0: i32) -> (i32, i32) {
    %c0_i32 = arith.constant 0 : i32
    %c0_i32_0 = arith.constant 0 : i32
    %c0_i32_1 = arith.constant 0 : i32
    return %c0_i32, %c0_i32_0 : i32, i32
  }
  func.func @transform_7(%arg0: i32) -> (i32, i32) {
    %c0_i32 = arith.constant 0 : i32
    %c0_i32_0 = arith.constant 0 : i32
    %c0_i32_1 = arith.constant 0 : i32
    return %c0_i32, %c0_i32_0 : i32, i32
  }
  func.func @transform_8(%arg0: i32) -> (i32, i32) {
    %c0_i32 = arith.constant 0 : i32
    %c0_i32_0 = arith.constant 0 : i32
    %c0_i32_1 = arith.constant 0 : i32
    return %c0_i32, %c0_i32_0 : i32, i32
  }
  func.func @transform_9(%arg0: i32) -> (i32, i32) {
    %c0_i32 = arith.constant 0 : i32
    %c0_i32_0 = arith.constant 0 : i32
    %c0_i32_1 = arith.constant 0 : i32
    return %c0_i32, %c0_i32_0 : i32, i32
  }
  func.func @transform_10(%arg0: i32) -> (i32, i32) {
    %c0_i32 = arith.constant 0 : i32
    %c0_i32_0 = arith.constant 0 : i32
    %c0_i32_1 = arith.constant 0 : i32
    return %c0_i32, %c0_i32_0 : i32, i32
  }
  func.func @transform_11(%arg0: i32) -> (i32, i32) {
    %c0_i32 = arith.constant 0 : i32
    %c0_i32_0 = arith.constant 0 : i32
    %c0_i32_1 = arith.constant 0 : i32
    return %c0_i32, %c0_i32_0 : i32, i32
  }
  func.func @transform_12(%arg0: i32) -> (i32, i32) {
    %c0_i32 = arith.constant 0 : i32
    %c0_i32_0 = arith.constant 0 : i32
    %c0_i32_1 = arith.constant 0 : i32
    return %c0_i32, %c0_i32_0 : i32, i32
  }
  func.func @transform_13(%arg0: i32) -> (i32, i32) {
    %c0_i32 = arith.constant 0 : i32
    %c0_i32_0 = arith.constant 0 : i32
    %c0_i32_1 = arith.constant 0 : i32
    return %c0_i32, %c0_i32_0 : i32, i32
  }
  func.func @transform_14(%arg0: i32) -> (i32, i32) {
    %c0_i32 = arith.constant 0 : i32
    %c0_i32_0 = arith.constant 0 : i32
    %c0_i32_1 = arith.constant 0 : i32
    return %c0_i32, %c0_i32_0 : i32, i32
  }
  func.func @transform_15(%arg0: i32) -> (i32, i32) {
    %c0_i32 = arith.constant 0 : i32
    %c0_i32_0 = arith.constant 0 : i32
    %c0_i32_1 = arith.constant 0 : i32
    return %c0_i32, %c0_i32_0 : i32, i32
  }
  func.func @transform_16(%arg0: i32) -> (i32, i32) {
    %c0_i32 = arith.constant 0 : i32
    %c0_i32_0 = arith.constant 0 : i32
    %c0_i32_1 = arith.constant 0 : i32
    return %c0_i32, %c0_i32_0 : i32, i32
  }
  func.func @transform_17(%arg0: i32) -> (i32, i32, i32) {
    %c0_i32 = arith.constant 0 : i32
    %c0_i32_0 = arith.constant 0 : i32
    %c0_i32_1 = arith.constant 0 : i32
    return %arg0, %c0_i32, %c0_i32_0 : i32, i32, i32
  }
  func.func @transform_18(%arg0: i32) -> (i32, i32, i32) {
    %c0_i32 = arith.constant 0 : i32
    %c0_i32_0 = arith.constant 0 : i32
    %c0_i32_1 = arith.constant 0 : i32
    return %arg0, %c0_i32, %c0_i32_0 : i32, i32, i32
  }
}

module attributes {stable_mosaic.version = 11 : i64} {
  func.func @_layer_kernel(%arg0: i32, %arg1: memref<1x8x112xf32, #tpu.memory_space<vmem>>, %arg2: memref<1x8x96xf32, #tpu.memory_space<vmem>>, %arg3: memref<8x8xf32, #tpu.memory_space<vmem>>, %arg4: memref<8x8xf32, #tpu.memory_space<vmem>>, %arg5: memref<1x8xf32, #tpu.memory_space<vmem>>, %arg6: memref<112x192xf32, #tpu.memory_space<vmem>>, %arg7: memref<1x192xf32, #tpu.memory_space<vmem>>, %arg8: memref<96x16xf32, #tpu.memory_space<vmem>>, %arg9: memref<1x16xf32, #tpu.memory_space<vmem>>, %arg10: memref<16x48xf32, #tpu.memory_space<vmem>>, %arg11: memref<1x48xf32, #tpu.memory_space<vmem>>, %arg12: memref<8x8xf32, #tpu.memory_space<vmem>>, %arg13: memref<1x8xf32, #tpu.memory_space<vmem>>, %arg14: memref<96x32xf32, #tpu.memory_space<vmem>>, %arg15: memref<1x32xf32, #tpu.memory_space<vmem>>, %arg16: memref<8x96xf32, #tpu.memory_space<vmem>>, %arg17: memref<8x96xf32, #tpu.memory_space<vmem>>, %arg18: memref<1x8x96xf32, #tpu.memory_space<vmem>>, %arg19: memref<1x8x16xf32, #tpu.memory_space<vmem>>) attributes {dimension_semantics = [#tpu.dimension_semantics<parallel>], iteration_bounds = array<i64: 2>, scalar_prefetch = 0 : i64, scratch_operands = 0 : i64, tpu.core_type = #tpu.core_type<tc>, window_params = [{transform_indices = @transform_0, window_bounds = array<i64: 1, 8, 112>}, {transform_indices = @transform_1, window_bounds = array<i64: 1, 8, 96>}, {pipeline_mode = #tpu.pipeline_mode<synchronous>, transform_indices = @transform_2, window_bounds = array<i64: 8, 8>}, {pipeline_mode = #tpu.pipeline_mode<synchronous>, transform_indices = @transform_3, window_bounds = array<i64: 8, 8>}, {pipeline_mode = #tpu.pipeline_mode<synchronous>, transform_indices = @transform_4, window_bounds = array<i64: 1, 8>}, {pipeline_mode = #tpu.pipeline_mode<synchronous>, transform_indices = @transform_5, window_bounds = array<i64: 112, 192>}, {pipeline_mode = #tpu.pipeline_mode<synchronous>, transform_indices = @transform_6, window_bounds = array<i64: 1, 192>}, {pipeline_mode = #tpu.pipeline_mode<synchronous>, transform_indices = @transform_7, window_bounds = array<i64: 96, 16>}, {pipeline_mode = #tpu.pipeline_mode<synchronous>, transform_indices = @transform_8, window_bounds = array<i64: 1, 16>}, {pipeline_mode = #tpu.pipeline_mode<synchronous>, transform_indices = @transform_9, window_bounds = array<i64: 16, 48>}, {pipeline_mode = #tpu.pipeline_mode<synchronous>, transform_indices = @transform_10, window_bounds = array<i64: 1, 48>}, {pipeline_mode = #tpu.pipeline_mode<synchronous>, transform_indices = @transform_11, window_bounds = array<i64: 8, 8>}, {pipeline_mode = #tpu.pipeline_mode<synchronous>, transform_indices = @transform_12, window_bounds = array<i64: 1, 8>}, {pipeline_mode = #tpu.pipeline_mode<synchronous>, transform_indices = @transform_13, window_bounds = array<i64: 96, 32>}, {pipeline_mode = #tpu.pipeline_mode<synchronous>, transform_indices = @transform_14, window_bounds = array<i64: 1, 32>}, {pipeline_mode = #tpu.pipeline_mode<synchronous>, transform_indices = @transform_15, window_bounds = array<i64: 8, 96>}, {pipeline_mode = #tpu.pipeline_mode<synchronous>, transform_indices = @transform_16, window_bounds = array<i64: 8, 96>}, {transform_indices = @transform_17, window_bounds = array<i64: 1, 8, 96>}, {transform_indices = @transform_18, window_bounds = array<i64: 1, 8, 16>}]} {
    %c0 = arith.constant 0 : index
    %c0_0 = arith.constant 0 : index
    %c0_1 = arith.constant 0 : index
    %0 = vector.load %arg1[%c0, %c0_0, %c0_1] : memref<1x8x112xf32, #tpu.memory_space<vmem>>, vector<1x8x112xf32>
    %1 = vector.shape_cast %0 : vector<1x8x112xf32> to vector<8x112xf32>
    %c0_2 = arith.constant 0 : index
    %c0_3 = arith.constant 0 : index
    %2 = vector.load %arg6[%c0_2, %c0_3] : memref<112x192xf32, #tpu.memory_space<vmem>>, vector<112x192xf32>
    %3 = arith.truncf %1 : vector<8x112xf32> to vector<8x112xbf16>
    %4 = arith.truncf %2 : vector<112x192xf32> to vector<112x192xbf16>
    %cst = arith.constant dense<0.000000e+00> : vector<8x192xf32>
    %5 = tpu.matmul %3, %4, %cst {dimension_numbers = #tpu.dot_dimension_numbers<[1], [0], [0], [1], [0, 0, 1, 1], [], []>} : vector<8x112xbf16>, vector<112x192xbf16>, vector<8x192xf32> -> vector<8x192xf32>
    %c0_4 = arith.constant 0 : index
    %c0_5 = arith.constant 0 : index
    %6 = vector.load %arg7[%c0_4, %c0_5] : memref<1x192xf32, #tpu.memory_space<vmem>>, vector<1x192xf32>
    %7 = vector.broadcast %6 : vector<1x192xf32> to vector<8x192xf32>
    %8 = arith.addf %5, %7 : vector<8x192xf32>
    %9 = vector.extract_strided_slice %8 {offsets = [0, 0], sizes = [8, 96], strides = [1, 1]} : vector<8x192xf32> to vector<8x96xf32>
    %10 = math.tanh %9 : vector<8x96xf32>
    %11 = vector.extract_strided_slice %8 {offsets = [0, 96], sizes = [8, 96], strides = [1, 1]} : vector<8x192xf32> to vector<8x96xf32>
    %12 = arith.negf %11 : vector<8x96xf32>
    %13 = math.exp %12 : vector<8x96xf32>
    %cst_6 = arith.constant 1.000000e+00 : f32
    %14 = vector.broadcast %cst_6 : f32 to vector<8x96xf32>
    %15 = arith.addf %14, %13 : vector<8x96xf32>
    %16 = arith.divf %14, %15 : vector<8x96xf32>
    %17 = arith.mulf %10, %16 : vector<8x96xf32>
    %c0_7 = arith.constant 0 : index
    %c0_8 = arith.constant 0 : index
    %18 = vector.load %arg8[%c0_7, %c0_8] : memref<96x16xf32, #tpu.memory_space<vmem>>, vector<96x16xf32>
    %19 = arith.truncf %17 : vector<8x96xf32> to vector<8x96xbf16>
    %20 = arith.truncf %18 : vector<96x16xf32> to vector<96x16xbf16>
    %cst_9 = arith.constant dense<0.000000e+00> : vector<8x16xf32>
    %21 = tpu.matmul %19, %20, %cst_9 {dimension_numbers = #tpu.dot_dimension_numbers<[1], [0], [0], [1], [0, 0, 1, 1], [], []>} : vector<8x96xbf16>, vector<96x16xbf16>, vector<8x16xf32> -> vector<8x16xf32>
    %c0_10 = arith.constant 0 : index
    %c0_11 = arith.constant 0 : index
    %22 = vector.load %arg9[%c0_10, %c0_11] : memref<1x16xf32, #tpu.memory_space<vmem>>, vector<1x16xf32>
    %23 = vector.broadcast %22 : vector<1x16xf32> to vector<8x16xf32>
    %24 = arith.addf %21, %23 : vector<8x16xf32>
    %c0_12 = arith.constant 0 : index
    %c0_13 = arith.constant 0 : index
    %c0_14 = arith.constant 0 : index
    %25 = vector.load %arg19[%c0_12, %c0_13, %c0_14] : memref<1x8x16xf32, #tpu.memory_space<vmem>>, vector<1x8x16xf32>
    %26 = vector.shape_cast %25 : vector<1x8x16xf32> to vector<8x16xf32>
    %27 = vector.shape_cast %24 : vector<8x16xf32> to vector<1x8x16xf32>
    tpu.vector_store %arg19[%c0_12, %c0_13, %c0_14], %27 {strides = array<i32>} : memref<1x8x16xf32, #tpu.memory_space<vmem>>, vector<1x8x16xf32>,
    %c0_15 = arith.constant 0 : index
    %c0_16 = arith.constant 0 : index
    %28 = vector.load %arg3[%c0_15, %c0_16] : memref<8x8xf32, #tpu.memory_space<vmem>>, vector<8x8xf32>
    %c0_17 = arith.constant 0 : index
    %c0_18 = arith.constant 0 : index
    %29 = vector.load %arg4[%c0_17, %c0_18] : memref<8x8xf32, #tpu.memory_space<vmem>>, vector<8x8xf32>
    %30 = arith.truncf %28 : vector<8x8xf32> to vector<8x8xbf16>
    %31 = arith.truncf %29 : vector<8x8xf32> to vector<8x8xbf16>
    %cst_19 = arith.constant dense<0.000000e+00> : vector<8x8xf32>
    %32 = tpu.matmul %30, %31, %cst_19 {dimension_numbers = #tpu.dot_dimension_numbers<[1], [0], [0], [1], [0, 0, 1, 1], [], []>} : vector<8x8xbf16>, vector<8x8xbf16>, vector<8x8xf32> -> vector<8x8xf32>
    %c0_20 = arith.constant 0 : index
    %c0_21 = arith.constant 0 : index
    %33 = vector.load %arg5[%c0_20, %c0_21] : memref<1x8xf32, #tpu.memory_space<vmem>>, vector<1x8xf32>
    %34 = vector.broadcast %33 : vector<1x8xf32> to vector<8x8xf32>
    %35 = arith.addf %32, %34 : vector<8x8xf32>
    %36 = tpu.iota {dimensions = array<i32: 0>} : vector<8x8xi32>
    %37 = tpu.iota {dimensions = array<i32: 1>} : vector<8x8xi32>
    %38 = arith.cmpi eq, %36, %37 : vector<8x8xi32>
    %39 = arith.extui %38 : vector<8x8xi1> to vector<8x8xi32>
    %40 = arith.sitofp %39 : vector<8x8xi32> to vector<8x8xf32>
    %c0_22 = arith.constant 0 : index
    %c0_23 = arith.constant 0 : index
    %41 = vector.load %arg14[%c0_22, %c0_23] : memref<96x32xf32, #tpu.memory_space<vmem>>, vector<96x32xf32>
    %42 = vector.extract_strided_slice %17 {offsets = [0, 0], sizes = [8, 32], strides = [1, 1]} : vector<8x96xf32> to vector<8x32xf32>
    %43 = vector.extract_strided_slice %42 {offsets = [0, 0], sizes = [8, 8], strides = [1, 1]} : vector<8x32xf32> to vector<8x8xf32>
    %44 = vector.extract_strided_slice %42 {offsets = [0, 8], sizes = [8, 8], strides = [1, 1]} : vector<8x32xf32> to vector<8x8xf32>
    %45 = arith.addf %43, %44 : vector<8x8xf32>
    %46 = vector.extract_strided_slice %42 {offsets = [0, 16], sizes = [8, 8], strides = [1, 1]} : vector<8x32xf32> to vector<8x8xf32>
    %47 = arith.addf %45, %46 : vector<8x8xf32>
    %48 = vector.extract_strided_slice %42 {offsets = [0, 24], sizes = [8, 8], strides = [1, 1]} : vector<8x32xf32> to vector<8x8xf32>
    %49 = arith.addf %47, %48 : vector<8x8xf32>
    %cst_24 = arith.constant 2.500000e-01 : f32
    %50 = vector.broadcast %cst_24 : f32 to vector<8x8xf32>
    %51 = arith.mulf %49, %50 : vector<8x8xf32>
    %52 = tpu.concatenate %51, %35 in 1 : vector<8x8xf32>, vector<8x8xf32> -> vector<8x16xf32>
    %c0_25 = arith.constant 0 : index
    %c0_26 = arith.constant 0 : index
    %53 = vector.load %arg10[%c0_25, %c0_26] : memref<16x48xf32, #tpu.memory_space<vmem>>, vector<16x48xf32>
    %54 = arith.truncf %52 : vector<8x16xf32> to vector<8x16xbf16>
    %55 = arith.truncf %53 : vector<16x48xf32> to vector<16x48xbf16>
    %cst_27 = arith.constant dense<0.000000e+00> : vector<8x48xf32>
    %56 = tpu.matmul %54, %55, %cst_27 {dimension_numbers = #tpu.dot_dimension_numbers<[1], [0], [0], [1], [0, 0, 1, 1], [], []>} : vector<8x16xbf16>, vector<16x48xbf16>, vector<8x48xf32> -> vector<8x48xf32>
    %c0_28 = arith.constant 0 : index
    %c0_29 = arith.constant 0 : index
    %57 = vector.load %arg11[%c0_28, %c0_29] : memref<1x48xf32, #tpu.memory_space<vmem>>, vector<1x48xf32>
    %58 = vector.broadcast %57 : vector<1x48xf32> to vector<8x48xf32>
    %59 = arith.addf %56, %58 : vector<8x48xf32>
    %60 = vector.extract_strided_slice %59 {offsets = [0, 0], sizes = [8, 24], strides = [1, 1]} : vector<8x48xf32> to vector<8x24xf32>
    %61 = vector.extract_strided_slice %59 {offsets = [0, 24], sizes = [8, 24], strides = [1, 1]} : vector<8x48xf32> to vector<8x24xf32>
    %62 = vector.extract_strided_slice %60 {offsets = [0, 0], sizes = [8, 8], strides = [1, 1]} : vector<8x24xf32> to vector<8x8xf32>
    %63 = vector.extract_strided_slice %61 {offsets = [0, 0], sizes = [8, 8], strides = [1, 1]} : vector<8x24xf32> to vector<8x8xf32>
    %64 = arith.addf %62, %63 : vector<8x8xf32>
    %65 = arith.negf %64 : vector<8x8xf32>
    %66 = math.exp %65 : vector<8x8xf32>
    %cst_30 = arith.constant 1.000000e+00 : f32
    %67 = vector.broadcast %cst_30 : f32 to vector<8x8xf32>
    %68 = arith.addf %67, %66 : vector<8x8xf32>
    %69 = arith.divf %67, %68 : vector<8x8xf32>
    %70 = vector.extract_strided_slice %60 {offsets = [0, 8], sizes = [8, 8], strides = [1, 1]} : vector<8x24xf32> to vector<8x8xf32>
    %71 = vector.extract_strided_slice %61 {offsets = [0, 8], sizes = [8, 8], strides = [1, 1]} : vector<8x24xf32> to vector<8x8xf32>
    %72 = arith.addf %70, %71 : vector<8x8xf32>
    %73 = arith.negf %72 : vector<8x8xf32>
    %74 = math.exp %73 : vector<8x8xf32>
    %cst_31 = arith.constant 1.000000e+00 : f32
    %75 = vector.broadcast %cst_31 : f32 to vector<8x8xf32>
    %76 = arith.addf %75, %74 : vector<8x8xf32>
    %77 = arith.divf %75, %76 : vector<8x8xf32>
    %78 = vector.extract_strided_slice %60 {offsets = [0, 16], sizes = [8, 8], strides = [1, 1]} : vector<8x24xf32> to vector<8x8xf32>
    %79 = vector.extract_strided_slice %61 {offsets = [0, 16], sizes = [8, 8], strides = [1, 1]} : vector<8x24xf32> to vector<8x8xf32>
    %80 = arith.mulf %69, %79 : vector<8x8xf32>
    %81 = arith.addf %78, %80 : vector<8x8xf32>
    %82 = math.tanh %81 : vector<8x8xf32>
    %cst_32 = arith.constant 1.000000e+00 : f32
    %83 = vector.broadcast %cst_32 : f32 to vector<8x8xf32>
    %84 = arith.subf %83, %77 : vector<8x8xf32>
    %85 = arith.mulf %84, %82 : vector<8x8xf32>
    %86 = arith.mulf %77, %35 : vector<8x8xf32>
    %87 = arith.addf %85, %86 : vector<8x8xf32>
    %c0_33 = arith.constant 0 : index
    %c0_34 = arith.constant 0 : index
    %88 = vector.load %arg12[%c0_33, %c0_34] : memref<8x8xf32, #tpu.memory_space<vmem>>, vector<8x8xf32>
    %89 = arith.truncf %87 : vector<8x8xf32> to vector<8x8xbf16>
    %90 = arith.truncf %88 : vector<8x8xf32> to vector<8x8xbf16>
    %cst_35 = arith.constant dense<0.000000e+00> : vector<8x8xf32>
    %91 = tpu.matmul %89, %90, %cst_35 {dimension_numbers = #tpu.dot_dimension_numbers<[1], [0], [0], [1], [0, 0, 1, 1], [], []>} : vector<8x8xbf16>, vector<8x8xbf16>, vector<8x8xf32> -> vector<8x8xf32>
    %c0_36 = arith.constant 0 : index
    %c0_37 = arith.constant 0 : index
    %92 = vector.load %arg13[%c0_36, %c0_37] : memref<1x8xf32, #tpu.memory_space<vmem>>, vector<1x8xf32>
    %93 = vector.broadcast %92 : vector<1x8xf32> to vector<8x8xf32>
    %94 = arith.addf %91, %93 : vector<8x8xf32>
    %95 = arith.truncf %87 : vector<8x8xf32> to vector<8x8xbf16>
    %96 = arith.truncf %94 : vector<8x8xf32> to vector<8x8xbf16>
    %cst_38 = arith.constant dense<0.000000e+00> : vector<8x8xf32>
    %97 = tpu.matmul %95, %96, %cst_38 {dimension_numbers = #tpu.dot_dimension_numbers<[1], [1], [0], [0], [0, 0, 1, 0], [], []>} : vector<8x8xbf16>, vector<8x8xbf16>, vector<8x8xf32> -> vector<8x8xf32>
    %98 = math.tanh %97 : vector<8x8xf32>
    %cst_39 = arith.constant 0.000000e+00 : f32
    %99 = vector.broadcast %cst_39 : f32 to vector<8x8xf32>
    %100 = arith.maximumf %98, %99 : vector<8x8xf32>
    %cst_40 = arith.constant dense<0xFF800000> : vector<8xf32>
    %101 = vector.multi_reduction <maximumf>, %100, %cst_40 [1] : vector<8x8xf32> to vector<8xf32>
    %102 = vector.shape_cast %101 : vector<8xf32> to vector<8x1xf32>
    %103 = vector.broadcast %102 : vector<8x1xf32> to vector<8x8xf32>
    %104 = arith.subf %100, %103 : vector<8x8xf32>
    %105 = math.exp %104 : vector<8x8xf32>
    %cst_41 = arith.constant dense<0.000000e+00> : vector<8xf32>
    %106 = vector.multi_reduction <add>, %105, %cst_41 [1] : vector<8x8xf32> to vector<8xf32>
    %107 = vector.shape_cast %106 : vector<8xf32> to vector<8x1xf32>
    %108 = tpu.reciprocal %107 {approx = true} : vector<8x1xf32> -> vector<8x1xf32>
    %109 = vector.broadcast %108 : vector<8x1xf32> to vector<8x8xf32>
    %110 = arith.mulf %105, %109 : vector<8x8xf32>
    %111 = arith.addf %110, %40 : vector<8x8xf32>
    %cst_42 = arith.constant 5.000000e-01 : f32
    %112 = vector.broadcast %cst_42 : f32 to vector<8x8xf32>
    %113 = arith.mulf %111, %112 : vector<8x8xf32>
    %114 = vector.extract_strided_slice %41 {offsets = [0, 0], sizes = [32, 32], strides = [1, 1]} : vector<96x32xf32> to vector<32x32xf32>
    %115 = arith.truncf %42 : vector<8x32xf32> to vector<8x32xbf16>
    %116 = arith.truncf %114 : vector<32x32xf32> to vector<32x32xbf16>
    %cst_43 = arith.constant dense<0.000000e+00> : vector<8x32xf32>
    %117 = tpu.matmul %115, %116, %cst_43 {dimension_numbers = #tpu.dot_dimension_numbers<[1], [0], [0], [1], [0, 0, 1, 1], [], []>} : vector<8x32xbf16>, vector<32x32xbf16>, vector<8x32xf32> -> vector<8x32xf32>
    %cst_44 = arith.constant 5.000000e-02 : f32
    %118 = vector.broadcast %cst_44 : f32 to vector<8x32xf32>
    %119 = arith.mulf %118, %42 : vector<8x32xf32>
    %120 = arith.truncf %113 : vector<8x8xf32> to vector<8x8xbf16>
    %121 = arith.truncf %42 : vector<8x32xf32> to vector<8x32xbf16>
    %cst_45 = arith.constant dense<0.000000e+00> : vector<8x32xf32>
    %122 = tpu.matmul %120, %121, %cst_45 {dimension_numbers = #tpu.dot_dimension_numbers<[1], [0], [0], [1], [0, 0, 1, 1], [], []>} : vector<8x8xbf16>, vector<8x32xbf16>, vector<8x32xf32> -> vector<8x32xf32>
    %cst_46 = arith.constant 0.949999988 : f32
    %123 = vector.broadcast %cst_46 : f32 to vector<8x32xf32>
    %124 = arith.mulf %123, %122 : vector<8x32xf32>
    %125 = arith.addf %119, %124 : vector<8x32xf32>
    %126 = vector.extract_strided_slice %41 {offsets = [32, 0], sizes = [32, 32], strides = [1, 1]} : vector<96x32xf32> to vector<32x32xf32>
    %127 = arith.truncf %125 : vector<8x32xf32> to vector<8x32xbf16>
    %128 = arith.truncf %126 : vector<32x32xf32> to vector<32x32xbf16>
    %cst_47 = arith.constant dense<0.000000e+00> : vector<8x32xf32>
    %129 = tpu.matmul %127, %128, %cst_47 {dimension_numbers = #tpu.dot_dimension_numbers<[1], [0], [0], [1], [0, 0, 1, 1], [], []>} : vector<8x32xbf16>, vector<32x32xbf16>, vector<8x32xf32> -> vector<8x32xf32>
    %130 = arith.addf %117, %129 : vector<8x32xf32>
    %cst_48 = arith.constant 5.000000e-02 : f32
    %131 = vector.broadcast %cst_48 : f32 to vector<8x32xf32>
    %132 = arith.mulf %131, %42 : vector<8x32xf32>
    %133 = arith.truncf %113 : vector<8x8xf32> to vector<8x8xbf16>
    %134 = arith.truncf %125 : vector<8x32xf32> to vector<8x32xbf16>
    %cst_49 = arith.constant dense<0.000000e+00> : vector<8x32xf32>
    %135 = tpu.matmul %133, %134, %cst_49 {dimension_numbers = #tpu.dot_dimension_numbers<[1], [0], [0], [1], [0, 0, 1, 1], [], []>} : vector<8x8xbf16>, vector<8x32xbf16>, vector<8x32xf32> -> vector<8x32xf32>
    %cst_50 = arith.constant 0.949999988 : f32
    %136 = vector.broadcast %cst_50 : f32 to vector<8x32xf32>
    %137 = arith.mulf %136, %135 : vector<8x32xf32>
    %138 = arith.addf %132, %137 : vector<8x32xf32>
    %139 = vector.extract_strided_slice %41 {offsets = [64, 0], sizes = [32, 32], strides = [1, 1]} : vector<96x32xf32> to vector<32x32xf32>
    %140 = arith.truncf %138 : vector<8x32xf32> to vector<8x32xbf16>
    %141 = arith.truncf %139 : vector<32x32xf32> to vector<32x32xbf16>
    %cst_51 = arith.constant dense<0.000000e+00> : vector<8x32xf32>
    %142 = tpu.matmul %140, %141, %cst_51 {dimension_numbers = #tpu.dot_dimension_numbers<[1], [0], [0], [1], [0, 0, 1, 1], [], []>} : vector<8x32xbf16>, vector<32x32xbf16>, vector<8x32xf32> -> vector<8x32xf32>
    %143 = arith.addf %130, %142 : vector<8x32xf32>
    %c0_52 = arith.constant 0 : index
    %c0_53 = arith.constant 0 : index
    %144 = vector.load %arg15[%c0_52, %c0_53] : memref<1x32xf32, #tpu.memory_space<vmem>>, vector<1x32xf32>
    %145 = vector.broadcast %144 : vector<1x32xf32> to vector<8x32xf32>
    %146 = arith.addf %143, %145 : vector<8x32xf32>
    %147 = vector.extract_strided_slice %17 {offsets = [0, 32], sizes = [8, 32], strides = [1, 1]} : vector<8x96xf32> to vector<8x32xf32>
    %148 = vector.extract_strided_slice %147 {offsets = [0, 0], sizes = [8, 8], strides = [1, 1]} : vector<8x32xf32> to vector<8x8xf32>
    %149 = vector.extract_strided_slice %147 {offsets = [0, 8], sizes = [8, 8], strides = [1, 1]} : vector<8x32xf32> to vector<8x8xf32>
    %150 = arith.addf %148, %149 : vector<8x8xf32>
    %151 = vector.extract_strided_slice %147 {offsets = [0, 16], sizes = [8, 8], strides = [1, 1]} : vector<8x32xf32> to vector<8x8xf32>
    %152 = arith.addf %150, %151 : vector<8x8xf32>
    %153 = vector.extract_strided_slice %147 {offsets = [0, 24], sizes = [8, 8], strides = [1, 1]} : vector<8x32xf32> to vector<8x8xf32>
    %154 = arith.addf %152, %153 : vector<8x8xf32>
    %cst_54 = arith.constant 2.500000e-01 : f32
    %155 = vector.broadcast %cst_54 : f32 to vector<8x8xf32>
    %156 = arith.mulf %154, %155 : vector<8x8xf32>
    %157 = tpu.concatenate %156, %87 in 1 : vector<8x8xf32>, vector<8x8xf32> -> vector<8x16xf32>
    %c0_55 = arith.constant 0 : index
    %c0_56 = arith.constant 0 : index
    %158 = vector.load %arg10[%c0_55, %c0_56] : memref<16x48xf32, #tpu.memory_space<vmem>>, vector<16x48xf32>
    %159 = arith.truncf %157 : vector<8x16xf32> to vector<8x16xbf16>
    %160 = arith.truncf %158 : vector<16x48xf32> to vector<16x48xbf16>
    %cst_57 = arith.constant dense<0.000000e+00> : vector<8x48xf32>
    %161 = tpu.matmul %159, %160, %cst_57 {dimension_numbers = #tpu.dot_dimension_numbers<[1], [0], [0], [1], [0, 0, 1, 1], [], []>} : vector<8x16xbf16>, vector<16x48xbf16>, vector<8x48xf32> -> vector<8x48xf32>
    %c0_58 = arith.constant 0 : index
    %c0_59 = arith.constant 0 : index
    %162 = vector.load %arg11[%c0_58, %c0_59] : memref<1x48xf32, #tpu.memory_space<vmem>>, vector<1x48xf32>
    %163 = vector.broadcast %162 : vector<1x48xf32> to vector<8x48xf32>
    %164 = arith.addf %161, %163 : vector<8x48xf32>
    %165 = vector.extract_strided_slice %164 {offsets = [0, 0], sizes = [8, 24], strides = [1, 1]} : vector<8x48xf32> to vector<8x24xf32>
    %166 = vector.extract_strided_slice %164 {offsets = [0, 24], sizes = [8, 24], strides = [1, 1]} : vector<8x48xf32> to vector<8x24xf32>
    %167 = vector.extract_strided_slice %165 {offsets = [0, 0], sizes = [8, 8], strides = [1, 1]} : vector<8x24xf32> to vector<8x8xf32>
    %168 = vector.extract_strided_slice %166 {offsets = [0, 0], sizes = [8, 8], strides = [1, 1]} : vector<8x24xf32> to vector<8x8xf32>
    %169 = arith.addf %167, %168 : vector<8x8xf32>
    %170 = arith.negf %169 : vector<8x8xf32>
    %171 = math.exp %170 : vector<8x8xf32>
    %cst_60 = arith.constant 1.000000e+00 : f32
    %172 = vector.broadcast %cst_60 : f32 to vector<8x8xf32>
    %173 = arith.addf %172, %171 : vector<8x8xf32>
    %174 = arith.divf %172, %173 : vector<8x8xf32>
    %175 = vector.extract_strided_slice %165 {offsets = [0, 8], sizes = [8, 8], strides = [1, 1]} : vector<8x24xf32> to vector<8x8xf32>
    %176 = vector.extract_strided_slice %166 {offsets = [0, 8], sizes = [8, 8], strides = [1, 1]} : vector<8x24xf32> to vector<8x8xf32>
    %177 = arith.addf %175, %176 : vector<8x8xf32>
    %178 = arith.negf %177 : vector<8x8xf32>
    %179 = math.exp %178 : vector<8x8xf32>
    %cst_61 = arith.constant 1.000000e+00 : f32
    %180 = vector.broadcast %cst_61 : f32 to vector<8x8xf32>
    %181 = arith.addf %180, %179 : vector<8x8xf32>
    %182 = arith.divf %180, %181 : vector<8x8xf32>
    %183 = vector.extract_strided_slice %165 {offsets = [0, 16], sizes = [8, 8], strides = [1, 1]} : vector<8x24xf32> to vector<8x8xf32>
    %184 = vector.extract_strided_slice %166 {offsets = [0, 16], sizes = [8, 8], strides = [1, 1]} : vector<8x24xf32> to vector<8x8xf32>
    %185 = arith.mulf %174, %184 : vector<8x8xf32>
    %186 = arith.addf %183, %185 : vector<8x8xf32>
    %187 = math.tanh %186 : vector<8x8xf32>
    %cst_62 = arith.constant 1.000000e+00 : f32
    %188 = vector.broadcast %cst_62 : f32 to vector<8x8xf32>
    %189 = arith.subf %188, %182 : vector<8x8xf32>
    %190 = arith.mulf %189, %187 : vector<8x8xf32>
    %191 = arith.mulf %182, %87 : vector<8x8xf32>
    %192 = arith.addf %190, %191 : vector<8x8xf32>
    %c0_63 = arith.constant 0 : index
    %c0_64 = arith.constant 0 : index
    %193 = vector.load %arg12[%c0_63, %c0_64] : memref<8x8xf32, #tpu.memory_space<vmem>>, vector<8x8xf32>
    %194 = arith.truncf %192 : vector<8x8xf32> to vector<8x8xbf16>
    %195 = arith.truncf %193 : vector<8x8xf32> to vector<8x8xbf16>
    %cst_65 = arith.constant dense<0.000000e+00> : vector<8x8xf32>
    %196 = tpu.matmul %194, %195, %cst_65 {dimension_numbers = #tpu.dot_dimension_numbers<[1], [0], [0], [1], [0, 0, 1, 1], [], []>} : vector<8x8xbf16>, vector<8x8xbf16>, vector<8x8xf32> -> vector<8x8xf32>
    %c0_66 = arith.constant 0 : index
    %c0_67 = arith.constant 0 : index
    %197 = vector.load %arg13[%c0_66, %c0_67] : memref<1x8xf32, #tpu.memory_space<vmem>>, vector<1x8xf32>
    %198 = vector.broadcast %197 : vector<1x8xf32> to vector<8x8xf32>
    %199 = arith.addf %196, %198 : vector<8x8xf32>
    %200 = arith.truncf %192 : vector<8x8xf32> to vector<8x8xbf16>
    %201 = arith.truncf %199 : vector<8x8xf32> to vector<8x8xbf16>
    %cst_68 = arith.constant dense<0.000000e+00> : vector<8x8xf32>
    %202 = tpu.matmul %200, %201, %cst_68 {dimension_numbers = #tpu.dot_dimension_numbers<[1], [1], [0], [0], [0, 0, 1, 0], [], []>} : vector<8x8xbf16>, vector<8x8xbf16>, vector<8x8xf32> -> vector<8x8xf32>
    %203 = math.tanh %202 : vector<8x8xf32>
    %cst_69 = arith.constant 0.000000e+00 : f32
    %204 = vector.broadcast %cst_69 : f32 to vector<8x8xf32>
    %205 = arith.maximumf %203, %204 : vector<8x8xf32>
    %cst_70 = arith.constant dense<0xFF800000> : vector<8xf32>
    %206 = vector.multi_reduction <maximumf>, %205, %cst_70 [1] : vector<8x8xf32> to vector<8xf32>
    %207 = vector.shape_cast %206 : vector<8xf32> to vector<8x1xf32>
    %208 = vector.broadcast %207 : vector<8x1xf32> to vector<8x8xf32>
    %209 = arith.subf %205, %208 : vector<8x8xf32>
    %210 = math.exp %209 : vector<8x8xf32>
    %cst_71 = arith.constant dense<0.000000e+00> : vector<8xf32>
    %211 = vector.multi_reduction <add>, %210, %cst_71 [1] : vector<8x8xf32> to vector<8xf32>
    %212 = vector.shape_cast %211 : vector<8xf32> to vector<8x1xf32>
    %213 = tpu.reciprocal %212 {approx = true} : vector<8x1xf32> -> vector<8x1xf32>
    %214 = vector.broadcast %213 : vector<8x1xf32> to vector<8x8xf32>
    %215 = arith.mulf %210, %214 : vector<8x8xf32>
    %216 = arith.addf %215, %40 : vector<8x8xf32>
    %cst_72 = arith.constant 5.000000e-01 : f32
    %217 = vector.broadcast %cst_72 : f32 to vector<8x8xf32>
    %218 = arith.mulf %216, %217 : vector<8x8xf32>
    %219 = vector.extract_strided_slice %41 {offsets = [0, 0], sizes = [32, 32], strides = [1, 1]} : vector<96x32xf32> to vector<32x32xf32>
    %220 = arith.truncf %147 : vector<8x32xf32> to vector<8x32xbf16>
    %221 = arith.truncf %219 : vector<32x32xf32> to vector<32x32xbf16>
    %cst_73 = arith.constant dense<0.000000e+00> : vector<8x32xf32>
    %222 = tpu.matmul %220, %221, %cst_73 {dimension_numbers = #tpu.dot_dimension_numbers<[1], [0], [0], [1], [0, 0, 1, 1], [], []>} : vector<8x32xbf16>, vector<32x32xbf16>, vector<8x32xf32> -> vector<8x32xf32>
    %cst_74 = arith.constant 5.000000e-02 : f32
    %223 = vector.broadcast %cst_74 : f32 to vector<8x32xf32>
    %224 = arith.mulf %223, %147 : vector<8x32xf32>
    %225 = arith.truncf %218 : vector<8x8xf32> to vector<8x8xbf16>
    %226 = arith.truncf %147 : vector<8x32xf32> to vector<8x32xbf16>
    %cst_75 = arith.constant dense<0.000000e+00> : vector<8x32xf32>
    %227 = tpu.matmul %225, %226, %cst_75 {dimension_numbers = #tpu.dot_dimension_numbers<[1], [0], [0], [1], [0, 0, 1, 1], [], []>} : vector<8x8xbf16>, vector<8x32xbf16>, vector<8x32xf32> -> vector<8x32xf32>
    %cst_76 = arith.constant 0.949999988 : f32
    %228 = vector.broadcast %cst_76 : f32 to vector<8x32xf32>
    %229 = arith.mulf %228, %227 : vector<8x32xf32>
    %230 = arith.addf %224, %229 : vector<8x32xf32>
    %231 = vector.extract_strided_slice %41 {offsets = [32, 0], sizes = [32, 32], strides = [1, 1]} : vector<96x32xf32> to vector<32x32xf32>
    %232 = arith.truncf %230 : vector<8x32xf32> to vector<8x32xbf16>
    %233 = arith.truncf %231 : vector<32x32xf32> to vector<32x32xbf16>
    %cst_77 = arith.constant dense<0.000000e+00> : vector<8x32xf32>
    %234 = tpu.matmul %232, %233, %cst_77 {dimension_numbers = #tpu.dot_dimension_numbers<[1], [0], [0], [1], [0, 0, 1, 1], [], []>} : vector<8x32xbf16>, vector<32x32xbf16>, vector<8x32xf32> -> vector<8x32xf32>
    %235 = arith.addf %222, %234 : vector<8x32xf32>
    %cst_78 = arith.constant 5.000000e-02 : f32
    %236 = vector.broadcast %cst_78 : f32 to vector<8x32xf32>
    %237 = arith.mulf %236, %147 : vector<8x32xf32>
    %238 = arith.truncf %218 : vector<8x8xf32> to vector<8x8xbf16>
    %239 = arith.truncf %230 : vector<8x32xf32> to vector<8x32xbf16>
    %cst_79 = arith.constant dense<0.000000e+00> : vector<8x32xf32>
    %240 = tpu.matmul %238, %239, %cst_79 {dimension_numbers = #tpu.dot_dimension_numbers<[1], [0], [0], [1], [0, 0, 1, 1], [], []>} : vector<8x8xbf16>, vector<8x32xbf16>, vector<8x32xf32> -> vector<8x32xf32>
    %cst_80 = arith.constant 0.949999988 : f32
    %241 = vector.broadcast %cst_80 : f32 to vector<8x32xf32>
    %242 = arith.mulf %241, %240 : vector<8x32xf32>
    %243 = arith.addf %237, %242 : vector<8x32xf32>
    %244 = vector.extract_strided_slice %41 {offsets = [64, 0], sizes = [32, 32], strides = [1, 1]} : vector<96x32xf32> to vector<32x32xf32>
    %245 = arith.truncf %243 : vector<8x32xf32> to vector<8x32xbf16>
    %246 = arith.truncf %244 : vector<32x32xf32> to vector<32x32xbf16>
    %cst_81 = arith.constant dense<0.000000e+00> : vector<8x32xf32>
    %247 = tpu.matmul %245, %246, %cst_81 {dimension_numbers = #tpu.dot_dimension_numbers<[1], [0], [0], [1], [0, 0, 1, 1], [], []>} : vector<8x32xbf16>, vector<32x32xbf16>, vector<8x32xf32> -> vector<8x32xf32>
    %248 = arith.addf %235, %247 : vector<8x32xf32>
    %c0_82 = arith.constant 0 : index
    %c0_83 = arith.constant 0 : index
    %249 = vector.load %arg15[%c0_82, %c0_83] : memref<1x32xf32, #tpu.memory_space<vmem>>, vector<1x32xf32>
    %250 = vector.broadcast %249 : vector<1x32xf32> to vector<8x32xf32>
    %251 = arith.addf %248, %250 : vector<8x32xf32>
    %252 = vector.extract_strided_slice %17 {offsets = [0, 64], sizes = [8, 32], strides = [1, 1]} : vector<8x96xf32> to vector<8x32xf32>
    %253 = vector.extract_strided_slice %252 {offsets = [0, 0], sizes = [8, 8], strides = [1, 1]} : vector<8x32xf32> to vector<8x8xf32>
    %254 = vector.extract_strided_slice %252 {offsets = [0, 8], sizes = [8, 8], strides = [1, 1]} : vector<8x32xf32> to vector<8x8xf32>
    %255 = arith.addf %253, %254 : vector<8x8xf32>
    %256 = vector.extract_strided_slice %252 {offsets = [0, 16], sizes = [8, 8], strides = [1, 1]} : vector<8x32xf32> to vector<8x8xf32>
    %257 = arith.addf %255, %256 : vector<8x8xf32>
    %258 = vector.extract_strided_slice %252 {offsets = [0, 24], sizes = [8, 8], strides = [1, 1]} : vector<8x32xf32> to vector<8x8xf32>
    %259 = arith.addf %257, %258 : vector<8x8xf32>
    %cst_84 = arith.constant 2.500000e-01 : f32
    %260 = vector.broadcast %cst_84 : f32 to vector<8x8xf32>
    %261 = arith.mulf %259, %260 : vector<8x8xf32>
    %262 = tpu.concatenate %261, %192 in 1 : vector<8x8xf32>, vector<8x8xf32> -> vector<8x16xf32>
    %c0_85 = arith.constant 0 : index
    %c0_86 = arith.constant 0 : index
    %263 = vector.load %arg10[%c0_85, %c0_86] : memref<16x48xf32, #tpu.memory_space<vmem>>, vector<16x48xf32>
    %264 = arith.truncf %262 : vector<8x16xf32> to vector<8x16xbf16>
    %265 = arith.truncf %263 : vector<16x48xf32> to vector<16x48xbf16>
    %cst_87 = arith.constant dense<0.000000e+00> : vector<8x48xf32>
    %266 = tpu.matmul %264, %265, %cst_87 {dimension_numbers = #tpu.dot_dimension_numbers<[1], [0], [0], [1], [0, 0, 1, 1], [], []>} : vector<8x16xbf16>, vector<16x48xbf16>, vector<8x48xf32> -> vector<8x48xf32>
    %c0_88 = arith.constant 0 : index
    %c0_89 = arith.constant 0 : index
    %267 = vector.load %arg11[%c0_88, %c0_89] : memref<1x48xf32, #tpu.memory_space<vmem>>, vector<1x48xf32>
    %268 = vector.broadcast %267 : vector<1x48xf32> to vector<8x48xf32>
    %269 = arith.addf %266, %268 : vector<8x48xf32>
    %270 = vector.extract_strided_slice %269 {offsets = [0, 0], sizes = [8, 24], strides = [1, 1]} : vector<8x48xf32> to vector<8x24xf32>
    %271 = vector.extract_strided_slice %269 {offsets = [0, 24], sizes = [8, 24], strides = [1, 1]} : vector<8x48xf32> to vector<8x24xf32>
    %272 = vector.extract_strided_slice %270 {offsets = [0, 0], sizes = [8, 8], strides = [1, 1]} : vector<8x24xf32> to vector<8x8xf32>
    %273 = vector.extract_strided_slice %271 {offsets = [0, 0], sizes = [8, 8], strides = [1, 1]} : vector<8x24xf32> to vector<8x8xf32>
    %274 = arith.addf %272, %273 : vector<8x8xf32>
    %275 = arith.negf %274 : vector<8x8xf32>
    %276 = math.exp %275 : vector<8x8xf32>
    %cst_90 = arith.constant 1.000000e+00 : f32
    %277 = vector.broadcast %cst_90 : f32 to vector<8x8xf32>
    %278 = arith.addf %277, %276 : vector<8x8xf32>
    %279 = arith.divf %277, %278 : vector<8x8xf32>
    %280 = vector.extract_strided_slice %270 {offsets = [0, 8], sizes = [8, 8], strides = [1, 1]} : vector<8x24xf32> to vector<8x8xf32>
    %281 = vector.extract_strided_slice %271 {offsets = [0, 8], sizes = [8, 8], strides = [1, 1]} : vector<8x24xf32> to vector<8x8xf32>
    %282 = arith.addf %280, %281 : vector<8x8xf32>
    %283 = arith.negf %282 : vector<8x8xf32>
    %284 = math.exp %283 : vector<8x8xf32>
    %cst_91 = arith.constant 1.000000e+00 : f32
    %285 = vector.broadcast %cst_91 : f32 to vector<8x8xf32>
    %286 = arith.addf %285, %284 : vector<8x8xf32>
    %287 = arith.divf %285, %286 : vector<8x8xf32>
    %288 = vector.extract_strided_slice %270 {offsets = [0, 16], sizes = [8, 8], strides = [1, 1]} : vector<8x24xf32> to vector<8x8xf32>
    %289 = vector.extract_strided_slice %271 {offsets = [0, 16], sizes = [8, 8], strides = [1, 1]} : vector<8x24xf32> to vector<8x8xf32>
    %290 = arith.mulf %279, %289 : vector<8x8xf32>
    %291 = arith.addf %288, %290 : vector<8x8xf32>
    %292 = math.tanh %291 : vector<8x8xf32>
    %cst_92 = arith.constant 1.000000e+00 : f32
    %293 = vector.broadcast %cst_92 : f32 to vector<8x8xf32>
    %294 = arith.subf %293, %287 : vector<8x8xf32>
    %295 = arith.mulf %294, %292 : vector<8x8xf32>
    %296 = arith.mulf %287, %192 : vector<8x8xf32>
    %297 = arith.addf %295, %296 : vector<8x8xf32>
    %c0_93 = arith.constant 0 : index
    %c0_94 = arith.constant 0 : index
    %298 = vector.load %arg12[%c0_93, %c0_94] : memref<8x8xf32, #tpu.memory_space<vmem>>, vector<8x8xf32>
    %299 = arith.truncf %297 : vector<8x8xf32> to vector<8x8xbf16>
    %300 = arith.truncf %298 : vector<8x8xf32> to vector<8x8xbf16>
    %cst_95 = arith.constant dense<0.000000e+00> : vector<8x8xf32>
    %301 = tpu.matmul %299, %300, %cst_95 {dimension_numbers = #tpu.dot_dimension_numbers<[1], [0], [0], [1], [0, 0, 1, 1], [], []>} : vector<8x8xbf16>, vector<8x8xbf16>, vector<8x8xf32> -> vector<8x8xf32>
    %c0_96 = arith.constant 0 : index
    %c0_97 = arith.constant 0 : index
    %302 = vector.load %arg13[%c0_96, %c0_97] : memref<1x8xf32, #tpu.memory_space<vmem>>, vector<1x8xf32>
    %303 = vector.broadcast %302 : vector<1x8xf32> to vector<8x8xf32>
    %304 = arith.addf %301, %303 : vector<8x8xf32>
    %305 = arith.truncf %297 : vector<8x8xf32> to vector<8x8xbf16>
    %306 = arith.truncf %304 : vector<8x8xf32> to vector<8x8xbf16>
    %cst_98 = arith.constant dense<0.000000e+00> : vector<8x8xf32>
    %307 = tpu.matmul %305, %306, %cst_98 {dimension_numbers = #tpu.dot_dimension_numbers<[1], [1], [0], [0], [0, 0, 1, 0], [], []>} : vector<8x8xbf16>, vector<8x8xbf16>, vector<8x8xf32> -> vector<8x8xf32>
    %308 = math.tanh %307 : vector<8x8xf32>
    %cst_99 = arith.constant 0.000000e+00 : f32
    %309 = vector.broadcast %cst_99 : f32 to vector<8x8xf32>
    %310 = arith.maximumf %308, %309 : vector<8x8xf32>
    %cst_100 = arith.constant dense<0xFF800000> : vector<8xf32>
    %311 = vector.multi_reduction <maximumf>, %310, %cst_100 [1] : vector<8x8xf32> to vector<8xf32>
    %312 = vector.shape_cast %311 : vector<8xf32> to vector<8x1xf32>
    %313 = vector.broadcast %312 : vector<8x1xf32> to vector<8x8xf32>
    %314 = arith.subf %310, %313 : vector<8x8xf32>
    %315 = math.exp %314 : vector<8x8xf32>
    %cst_101 = arith.constant dense<0.000000e+00> : vector<8xf32>
    %316 = vector.multi_reduction <add>, %315, %cst_101 [1] : vector<8x8xf32> to vector<8xf32>
    %317 = vector.shape_cast %316 : vector<8xf32> to vector<8x1xf32>
    %318 = tpu.reciprocal %317 {approx = true} : vector<8x1xf32> -> vector<8x1xf32>
    %319 = vector.broadcast %318 : vector<8x1xf32> to vector<8x8xf32>
    %320 = arith.mulf %315, %319 : vector<8x8xf32>
    %321 = arith.addf %320, %40 : vector<8x8xf32>
    %cst_102 = arith.constant 5.000000e-01 : f32
    %322 = vector.broadcast %cst_102 : f32 to vector<8x8xf32>
    %323 = arith.mulf %321, %322 : vector<8x8xf32>
    %324 = vector.extract_strided_slice %41 {offsets = [0, 0], sizes = [32, 32], strides = [1, 1]} : vector<96x32xf32> to vector<32x32xf32>
    %325 = arith.truncf %252 : vector<8x32xf32> to vector<8x32xbf16>
    %326 = arith.truncf %324 : vector<32x32xf32> to vector<32x32xbf16>
    %cst_103 = arith.constant dense<0.000000e+00> : vector<8x32xf32>
    %327 = tpu.matmul %325, %326, %cst_103 {dimension_numbers = #tpu.dot_dimension_numbers<[1], [0], [0], [1], [0, 0, 1, 1], [], []>} : vector<8x32xbf16>, vector<32x32xbf16>, vector<8x32xf32> -> vector<8x32xf32>
    %cst_104 = arith.constant 5.000000e-02 : f32
    %328 = vector.broadcast %cst_104 : f32 to vector<8x32xf32>
    %329 = arith.mulf %328, %252 : vector<8x32xf32>
    %330 = arith.truncf %323 : vector<8x8xf32> to vector<8x8xbf16>
    %331 = arith.truncf %252 : vector<8x32xf32> to vector<8x32xbf16>
    %cst_105 = arith.constant dense<0.000000e+00> : vector<8x32xf32>
    %332 = tpu.matmul %330, %331, %cst_105 {dimension_numbers = #tpu.dot_dimension_numbers<[1], [0], [0], [1], [0, 0, 1, 1], [], []>} : vector<8x8xbf16>, vector<8x32xbf16>, vector<8x32xf32> -> vector<8x32xf32>
    %cst_106 = arith.constant 0.949999988 : f32
    %333 = vector.broadcast %cst_106 : f32 to vector<8x32xf32>
    %334 = arith.mulf %333, %332 : vector<8x32xf32>
    %335 = arith.addf %329, %334 : vector<8x32xf32>
    %336 = vector.extract_strided_slice %41 {offsets = [32, 0], sizes = [32, 32], strides = [1, 1]} : vector<96x32xf32> to vector<32x32xf32>
    %337 = arith.truncf %335 : vector<8x32xf32> to vector<8x32xbf16>
    %338 = arith.truncf %336 : vector<32x32xf32> to vector<32x32xbf16>
    %cst_107 = arith.constant dense<0.000000e+00> : vector<8x32xf32>
    %339 = tpu.matmul %337, %338, %cst_107 {dimension_numbers = #tpu.dot_dimension_numbers<[1], [0], [0], [1], [0, 0, 1, 1], [], []>} : vector<8x32xbf16>, vector<32x32xbf16>, vector<8x32xf32> -> vector<8x32xf32>
    %340 = arith.addf %327, %339 : vector<8x32xf32>
    %cst_108 = arith.constant 5.000000e-02 : f32
    %341 = vector.broadcast %cst_108 : f32 to vector<8x32xf32>
    %342 = arith.mulf %341, %252 : vector<8x32xf32>
    %343 = arith.truncf %323 : vector<8x8xf32> to vector<8x8xbf16>
    %344 = arith.truncf %335 : vector<8x32xf32> to vector<8x32xbf16>
    %cst_109 = arith.constant dense<0.000000e+00> : vector<8x32xf32>
    %345 = tpu.matmul %343, %344, %cst_109 {dimension_numbers = #tpu.dot_dimension_numbers<[1], [0], [0], [1], [0, 0, 1, 1], [], []>} : vector<8x8xbf16>, vector<8x32xbf16>, vector<8x32xf32> -> vector<8x32xf32>
    %cst_110 = arith.constant 0.949999988 : f32
    %346 = vector.broadcast %cst_110 : f32 to vector<8x32xf32>
    %347 = arith.mulf %346, %345 : vector<8x32xf32>
    %348 = arith.addf %342, %347 : vector<8x32xf32>
    %349 = vector.extract_strided_slice %41 {offsets = [64, 0], sizes = [32, 32], strides = [1, 1]} : vector<96x32xf32> to vector<32x32xf32>
    %350 = arith.truncf %348 : vector<8x32xf32> to vector<8x32xbf16>
    %351 = arith.truncf %349 : vector<32x32xf32> to vector<32x32xbf16>
    %cst_111 = arith.constant dense<0.000000e+00> : vector<8x32xf32>
    %352 = tpu.matmul %350, %351, %cst_111 {dimension_numbers = #tpu.dot_dimension_numbers<[1], [0], [0], [1], [0, 0, 1, 1], [], []>} : vector<8x32xbf16>, vector<32x32xbf16>, vector<8x32xf32> -> vector<8x32xf32>
    %353 = arith.addf %340, %352 : vector<8x32xf32>
    %c0_112 = arith.constant 0 : index
    %c0_113 = arith.constant 0 : index
    %354 = vector.load %arg15[%c0_112, %c0_113] : memref<1x32xf32, #tpu.memory_space<vmem>>, vector<1x32xf32>
    %355 = vector.broadcast %354 : vector<1x32xf32> to vector<8x32xf32>
    %356 = arith.addf %353, %355 : vector<8x32xf32>
    %357 = tpu.concatenate %146, %251, %356 in 1 : vector<8x32xf32>, vector<8x32xf32>, vector<8x32xf32> -> vector<8x96xf32>
    %c0_114 = arith.constant 0 : index
    %c0_115 = arith.constant 0 : index
    %c0_116 = arith.constant 0 : index
    %358 = vector.load %arg2[%c0_114, %c0_115, %c0_116] : memref<1x8x96xf32, #tpu.memory_space<vmem>>, vector<1x8x96xf32>
    %359 = vector.shape_cast %358 : vector<1x8x96xf32> to vector<8x96xf32>
    %360 = arith.addf %357, %359 : vector<8x96xf32>
    %cst_117 = arith.constant dense<0.000000e+00> : vector<8xf32>
    %361 = vector.multi_reduction <add>, %360, %cst_117 [1] : vector<8x96xf32> to vector<8xf32>
    %362 = vector.shape_cast %361 : vector<8xf32> to vector<8x1xf32>
    %cst_118 = arith.constant dense<0.000000e+00> : vector<1xf32>
    %363 = vector.multi_reduction <add>, %362, %cst_118 [0] : vector<8x1xf32> to vector<1xf32>
    %364 = vector.shape_cast %363 : vector<1xf32> to vector<1x1xf32>
    %cst_119 = arith.constant 0.00130208337 : f32
    %365 = vector.broadcast %cst_119 : f32 to vector<1x1xf32>
    %366 = arith.mulf %364, %365 : vector<1x1xf32>
    %367 = vector.broadcast %366 : vector<1x1xf32> to vector<8x96xf32>
    %368 = arith.subf %360, %367 : vector<8x96xf32>
    %369 = arith.mulf %368, %368 : vector<8x96xf32>
    %cst_120 = arith.constant dense<0.000000e+00> : vector<8xf32>
    %370 = vector.multi_reduction <add>, %369, %cst_120 [1] : vector<8x96xf32> to vector<8xf32>
    %371 = vector.shape_cast %370 : vector<8xf32> to vector<8x1xf32>
    %cst_121 = arith.constant dense<0.000000e+00> : vector<1xf32>
    %372 = vector.multi_reduction <add>, %371, %cst_121 [0] : vector<8x1xf32> to vector<1xf32>
    %373 = vector.shape_cast %372 : vector<1xf32> to vector<1x1xf32>
    %cst_122 = arith.constant 0.00130208337 : f32
    %374 = vector.broadcast %cst_122 : f32 to vector<1x1xf32>
    %375 = arith.mulf %373, %374 : vector<1x1xf32>
    %cst_123 = arith.constant 9.99999974E-6 : f32
    %376 = vector.broadcast %cst_123 : f32 to vector<1x1xf32>
    %377 = arith.addf %375, %376 : vector<1x1xf32>
    %378 = math.rsqrt %377 : vector<1x1xf32>
    %379 = vector.broadcast %378 : vector<1x1xf32> to vector<8x96xf32>
    %380 = arith.mulf %368, %379 : vector<8x96xf32>
    %c0_124 = arith.constant 0 : index
    %c0_125 = arith.constant 0 : index
    %381 = vector.load %arg16[%c0_124, %c0_125] : memref<8x96xf32, #tpu.memory_space<vmem>>, vector<8x96xf32>
    %382 = arith.mulf %380, %381 : vector<8x96xf32>
    %c0_126 = arith.constant 0 : index
    %c0_127 = arith.constant 0 : index
    %383 = vector.load %arg17[%c0_126, %c0_127] : memref<8x96xf32, #tpu.memory_space<vmem>>, vector<8x96xf32>
    %384 = arith.addf %382, %383 : vector<8x96xf32>
    %c0_128 = arith.constant 0 : index
    %c0_129 = arith.constant 0 : index
    %c0_130 = arith.constant 0 : index
    %385 = vector.load %arg18[%c0_128, %c0_129, %c0_130] : memref<1x8x96xf32, #tpu.memory_space<vmem>>, vector<1x8x96xf32>
    %386 = vector.shape_cast %385 : vector<1x8x96xf32> to vector<8x96xf32>
    %387 = vector.shape_cast %384 : vector<8x96xf32> to vector<1x8x96xf32>
    tpu.vector_store %arg18[%c0_128, %c0_129, %c0_130], %387 {strides = array<i32>} : memref<1x8x96xf32, #tpu.memory_space<vmem>>, vector<1x8x96xf32>,
    return
  }
  func.func @transform_0(%arg0: i32) -> (i32, i32, i32) {
    %c0_i32 = arith.constant 0 : i32
    %c0_i32_0 = arith.constant 0 : i32
    %c0_i32_1 = arith.constant 0 : i32
    return %arg0, %c0_i32, %c0_i32_0 : i32, i32, i32
  }
  func.func @transform_1(%arg0: i32) -> (i32, i32, i32) {
    %c0_i32 = arith.constant 0 : i32
    %c0_i32_0 = arith.constant 0 : i32
    %c0_i32_1 = arith.constant 0 : i32
    return %arg0, %c0_i32, %c0_i32_0 : i32, i32, i32
  }
  func.func @transform_2(%arg0: i32) -> (i32, i32) {
    %c0_i32 = arith.constant 0 : i32
    %c0_i32_0 = arith.constant 0 : i32
    %c0_i32_1 = arith.constant 0 : i32
    return %c0_i32, %c0_i32_0 : i32, i32
  }
  func.func @transform_3(%arg0: i32) -> (i32, i32) {
    %c0_i32 = arith.constant 0 : i32
    %c0_i32_0 = arith.constant 0 : i32
    %c0_i32_1 = arith.constant 0 : i32
    return %c0_i32, %c0_i32_0 : i32, i32
  }
  func.func @transform_4(%arg0: i32) -> (i32, i32) {
    %c0_i32 = arith.constant 0 : i32
    %c0_i32_0 = arith.constant 0 : i32
    %c0_i32_1 = arith.constant 0 : i32
    return %c0_i32, %c0_i32_0 : i32, i32
  }
  func.func @transform_5(%arg0: i32) -> (i32, i32) {
    %c0_i32 = arith.constant 0 : i32
    %c0_i32_0 = arith.constant 0 : i32
    %c0_i32_1 = arith.constant 0 : i32
    return %c0_i32, %c0_i32_0 : i32, i32
  }
  func.func @transform_6(%arg0: i32) -> (i32, i32) {
    %c0_i32 = arith.constant 0 : i32
    %c0_i32_0 = arith.constant 0 : i32
    %c0_i32_1 = arith.constant 0 : i32
    return %c0_i32, %c0_i32_0 : i32, i32
  }
  func.func @transform_7(%arg0: i32) -> (i32, i32) {
    %c0_i32 = arith.constant 0 : i32
    %c0_i32_0 = arith.constant 0 : i32
    %c0_i32_1 = arith.constant 0 : i32
    return %c0_i32, %c0_i32_0 : i32, i32
  }
  func.func @transform_8(%arg0: i32) -> (i32, i32) {
    %c0_i32 = arith.constant 0 : i32
    %c0_i32_0 = arith.constant 0 : i32
    %c0_i32_1 = arith.constant 0 : i32
    return %c0_i32, %c0_i32_0 : i32, i32
  }
  func.func @transform_9(%arg0: i32) -> (i32, i32) {
    %c0_i32 = arith.constant 0 : i32
    %c0_i32_0 = arith.constant 0 : i32
    %c0_i32_1 = arith.constant 0 : i32
    return %c0_i32, %c0_i32_0 : i32, i32
  }
  func.func @transform_10(%arg0: i32) -> (i32, i32) {
    %c0_i32 = arith.constant 0 : i32
    %c0_i32_0 = arith.constant 0 : i32
    %c0_i32_1 = arith.constant 0 : i32
    return %c0_i32, %c0_i32_0 : i32, i32
  }
  func.func @transform_11(%arg0: i32) -> (i32, i32) {
    %c0_i32 = arith.constant 0 : i32
    %c0_i32_0 = arith.constant 0 : i32
    %c0_i32_1 = arith.constant 0 : i32
    return %c0_i32, %c0_i32_0 : i32, i32
  }
  func.func @transform_12(%arg0: i32) -> (i32, i32) {
    %c0_i32 = arith.constant 0 : i32
    %c0_i32_0 = arith.constant 0 : i32
    %c0_i32_1 = arith.constant 0 : i32
    return %c0_i32, %c0_i32_0 : i32, i32
  }
  func.func @transform_13(%arg0: i32) -> (i32, i32) {
    %c0_i32 = arith.constant 0 : i32
    %c0_i32_0 = arith.constant 0 : i32
    %c0_i32_1 = arith.constant 0 : i32
    return %c0_i32, %c0_i32_0 : i32, i32
  }
  func.func @transform_14(%arg0: i32) -> (i32, i32) {
    %c0_i32 = arith.constant 0 : i32
    %c0_i32_0 = arith.constant 0 : i32
    %c0_i32_1 = arith.constant 0 : i32
    return %c0_i32, %c0_i32_0 : i32, i32
  }
  func.func @transform_15(%arg0: i32) -> (i32, i32) {
    %c0_i32 = arith.constant 0 : i32
    %c0_i32_0 = arith.constant 0 : i32
    %c0_i32_1 = arith.constant 0 : i32
    return %c0_i32, %c0_i32_0 : i32, i32
  }
  func.func @transform_16(%arg0: i32) -> (i32, i32) {
    %c0_i32 = arith.constant 0 : i32
    %c0_i32_0 = arith.constant 0 : i32
    %c0_i32_1 = arith.constant 0 : i32
    return %c0_i32, %c0_i32_0 : i32, i32
  }
  func.func @transform_17(%arg0: i32) -> (i32, i32, i32) {
    %c0_i32 = arith.constant 0 : i32
    %c0_i32_0 = arith.constant 0 : i32
    %c0_i32_1 = arith.constant 0 : i32
    return %arg0, %c0_i32, %c0_i32_0 : i32, i32, i32
  }
  func.func @transform_18(%arg0: i32) -> (i32, i32, i32) {
    %c0_i32 = arith.constant 0 : i32
    %c0_i32_0 = arith.constant 0 : i32
    %c0_i32_1 = arith.constant 0 : i32
    return %arg0, %c0_i32, %c0_i32_0 : i32, i32, i32
  }
}

module attributes {stable_mosaic.version = 11 : i64} {
  func.func @_head_kernel(%arg0: i32, %arg1: memref<16x96xf32, #tpu.memory_space<vmem>>, %arg2: memref<16x16xf32, #tpu.memory_space<vmem>>, %arg3: memref<96x16xf32, #tpu.memory_space<vmem>>, %arg4: memref<1x16xf32, #tpu.memory_space<vmem>>, %arg5: memref<16x16xf32, #tpu.memory_space<vmem>>, %arg6: memref<1x16xf32, #tpu.memory_space<vmem>>, %arg7: memref<16x4xf32, #tpu.memory_space<vmem>>, %arg8: memref<1x4xf32, #tpu.memory_space<vmem>>, %arg9: memref<16x4xf32, #tpu.memory_space<vmem>>) attributes {dimension_semantics = [#tpu.dimension_semantics<arbitrary>], iteration_bounds = array<i64: 1>, scalar_prefetch = 0 : i64, scratch_operands = 0 : i64, tpu.core_type = #tpu.core_type<tc>, window_params = [{pipeline_mode = #tpu.pipeline_mode<synchronous>, transform_indices = @transform_0, window_bounds = array<i64: 16, 96>}, {pipeline_mode = #tpu.pipeline_mode<synchronous>, transform_indices = @transform_1, window_bounds = array<i64: 16, 16>}, {pipeline_mode = #tpu.pipeline_mode<synchronous>, transform_indices = @transform_2, window_bounds = array<i64: 96, 16>}, {pipeline_mode = #tpu.pipeline_mode<synchronous>, transform_indices = @transform_3, window_bounds = array<i64: 1, 16>}, {pipeline_mode = #tpu.pipeline_mode<synchronous>, transform_indices = @transform_4, window_bounds = array<i64: 16, 16>}, {pipeline_mode = #tpu.pipeline_mode<synchronous>, transform_indices = @transform_5, window_bounds = array<i64: 1, 16>}, {pipeline_mode = #tpu.pipeline_mode<synchronous>, transform_indices = @transform_6, window_bounds = array<i64: 16, 4>}, {pipeline_mode = #tpu.pipeline_mode<synchronous>, transform_indices = @transform_7, window_bounds = array<i64: 1, 4>}, {pipeline_mode = #tpu.pipeline_mode<synchronous>, transform_indices = @transform_8, window_bounds = array<i64: 16, 4>}]} {
    %c0 = arith.constant 0 : index
    %c0_0 = arith.constant 0 : index
    %0 = vector.load %arg1[%c0, %c0_0] : memref<16x96xf32, #tpu.memory_space<vmem>>, vector<16x96xf32>
    %c0_1 = arith.constant 0 : index
    %c0_2 = arith.constant 0 : index
    %1 = vector.load %arg3[%c0_1, %c0_2] : memref<96x16xf32, #tpu.memory_space<vmem>>, vector<96x16xf32>
    %2 = arith.truncf %0 : vector<16x96xf32> to vector<16x96xbf16>
    %3 = arith.truncf %1 : vector<96x16xf32> to vector<96x16xbf16>
    %cst = arith.constant dense<0.000000e+00> : vector<16x16xf32>
    %4 = tpu.matmul %2, %3, %cst {dimension_numbers = #tpu.dot_dimension_numbers<[1], [0], [0], [1], [0, 0, 1, 1], [], []>} : vector<16x96xbf16>, vector<96x16xbf16>, vector<16x16xf32> -> vector<16x16xf32>
    %c0_3 = arith.constant 0 : index
    %c0_4 = arith.constant 0 : index
    %5 = vector.load %arg4[%c0_3, %c0_4] : memref<1x16xf32, #tpu.memory_space<vmem>>, vector<1x16xf32>
    %6 = vector.broadcast %5 : vector<1x16xf32> to vector<16x16xf32>
    %7 = arith.addf %4, %6 : vector<16x16xf32>
    %c0_5 = arith.constant 0 : index
    %c0_6 = arith.constant 0 : index
    %8 = vector.load %arg2[%c0_5, %c0_6] : memref<16x16xf32, #tpu.memory_space<vmem>>, vector<16x16xf32>
    %9 = arith.addf %8, %7 : vector<16x16xf32>
    %cst_7 = arith.constant 0.000000e+00 : f32
    %10 = vector.broadcast %cst_7 : f32 to vector<16x16xf32>
    %11 = arith.maximumf %9, %10 : vector<16x16xf32>
    %c0_8 = arith.constant 0 : index
    %c0_9 = arith.constant 0 : index
    %12 = vector.load %arg5[%c0_8, %c0_9] : memref<16x16xf32, #tpu.memory_space<vmem>>, vector<16x16xf32>
    %13 = arith.truncf %11 : vector<16x16xf32> to vector<16x16xbf16>
    %14 = arith.truncf %12 : vector<16x16xf32> to vector<16x16xbf16>
    %cst_10 = arith.constant dense<0.000000e+00> : vector<16x16xf32>
    %15 = tpu.matmul %13, %14, %cst_10 {dimension_numbers = #tpu.dot_dimension_numbers<[1], [0], [0], [1], [0, 0, 1, 1], [], []>} : vector<16x16xbf16>, vector<16x16xbf16>, vector<16x16xf32> -> vector<16x16xf32>
    %c0_11 = arith.constant 0 : index
    %c0_12 = arith.constant 0 : index
    %16 = vector.load %arg6[%c0_11, %c0_12] : memref<1x16xf32, #tpu.memory_space<vmem>>, vector<1x16xf32>
    %17 = vector.broadcast %16 : vector<1x16xf32> to vector<16x16xf32>
    %18 = arith.addf %15, %17 : vector<16x16xf32>
    %cst_13 = arith.constant 0.000000e+00 : f32
    %19 = vector.broadcast %cst_13 : f32 to vector<16x16xf32>
    %20 = arith.maximumf %18, %19 : vector<16x16xf32>
    %c0_14 = arith.constant 0 : index
    %c0_15 = arith.constant 0 : index
    %21 = vector.load %arg7[%c0_14, %c0_15] : memref<16x4xf32, #tpu.memory_space<vmem>>, vector<16x4xf32>
    %22 = arith.truncf %20 : vector<16x16xf32> to vector<16x16xbf16>
    %23 = arith.truncf %21 : vector<16x4xf32> to vector<16x4xbf16>
    %cst_16 = arith.constant dense<0.000000e+00> : vector<16x4xf32>
    %24 = tpu.matmul %22, %23, %cst_16 {dimension_numbers = #tpu.dot_dimension_numbers<[1], [0], [0], [1], [0, 0, 1, 1], [], []>} : vector<16x16xbf16>, vector<16x4xbf16>, vector<16x4xf32> -> vector<16x4xf32>
    %c0_17 = arith.constant 0 : index
    %c0_18 = arith.constant 0 : index
    %25 = vector.load %arg8[%c0_17, %c0_18] : memref<1x4xf32, #tpu.memory_space<vmem>>, vector<1x4xf32>
    %26 = vector.broadcast %25 : vector<1x4xf32> to vector<16x4xf32>
    %27 = arith.addf %24, %26 : vector<16x4xf32>
    %c0_19 = arith.constant 0 : index
    %c0_20 = arith.constant 0 : index
    %28 = vector.load %arg9[%c0_19, %c0_20] : memref<16x4xf32, #tpu.memory_space<vmem>>, vector<16x4xf32>
    tpu.vector_store %arg9[%c0_19, %c0_20], %27 {strides = array<i32>} : memref<16x4xf32, #tpu.memory_space<vmem>>, vector<16x4xf32>,
    return
  }
  func.func @transform_0(%arg0: i32) -> (i32, i32) {
    %c0_i32 = arith.constant 0 : i32
    %c0_i32_0 = arith.constant 0 : i32
    %c0_i32_1 = arith.constant 0 : i32
    return %c0_i32, %c0_i32_0 : i32, i32
  }
  func.func @transform_1(%arg0: i32) -> (i32, i32) {
    %c0_i32 = arith.constant 0 : i32
    %c0_i32_0 = arith.constant 0 : i32
    %c0_i32_1 = arith.constant 0 : i32
    return %c0_i32, %c0_i32_0 : i32, i32
  }
  func.func @transform_2(%arg0: i32) -> (i32, i32) {
    %c0_i32 = arith.constant 0 : i32
    %c0_i32_0 = arith.constant 0 : i32
    %c0_i32_1 = arith.constant 0 : i32
    return %c0_i32, %c0_i32_0 : i32, i32
  }
  func.func @transform_3(%arg0: i32) -> (i32, i32) {
    %c0_i32 = arith.constant 0 : i32
    %c0_i32_0 = arith.constant 0 : i32
    %c0_i32_1 = arith.constant 0 : i32
    return %c0_i32, %c0_i32_0 : i32, i32
  }
  func.func @transform_4(%arg0: i32) -> (i32, i32) {
    %c0_i32 = arith.constant 0 : i32
    %c0_i32_0 = arith.constant 0 : i32
    %c0_i32_1 = arith.constant 0 : i32
    return %c0_i32, %c0_i32_0 : i32, i32
  }
  func.func @transform_5(%arg0: i32) -> (i32, i32) {
    %c0_i32 = arith.constant 0 : i32
    %c0_i32_0 = arith.constant 0 : i32
    %c0_i32_1 = arith.constant 0 : i32
    return %c0_i32, %c0_i32_0 : i32, i32
  }
  func.func @transform_6(%arg0: i32) -> (i32, i32) {
    %c0_i32 = arith.constant 0 : i32
    %c0_i32_0 = arith.constant 0 : i32
    %c0_i32_1 = arith.constant 0 : i32
    return %c0_i32, %c0_i32_0 : i32, i32
  }
  func.func @transform_7(%arg0: i32) -> (i32, i32) {
    %c0_i32 = arith.constant 0 : i32
    %c0_i32_0 = arith.constant 0 : i32
    %c0_i32_1 = arith.constant 0 : i32
    return %c0_i32, %c0_i32_0 : i32, i32
  }
  func.func @transform_8(%arg0: i32) -> (i32, i32) {
    %c0_i32 = arith.constant 0 : i32
    %c0_i32_0 = arith.constant 0 : i32
    %c0_i32_1 = arith.constant 0 : i32
    return %c0_i32, %c0_i32_0 : i32, i32
  }
}

</mosaic_0001>

<bundles_post_ra>
// kernel: _lambda_.7
= control target key start
LH: loop header
LB: loop body
LE: loop exit
PB: predicated region body
PF: predicated region fallthrough
CT: control target
= control target key end

     0   :  { %v276_v0 = vmov 0.0   ;;  %vm277_vm0 = vmmov 0   ;;  %vm58_vm1 = vcmask 785408   ;;  %vm120_vm2 = vcmask 130048   ;;  %s414_s2 = inlined_call_operand.vmem [shape: f32[96,16], index: 2, kind: input, shape index: {}]   ;;  %s415_s0 = inlined_call_operand.vmem [shape: f32[16,96], index: 0, kind: input, shape index: {}]   ;;  %s416_s4 = inlined_call_operand.vmem [shape: f32[16,16], index: 4, kind: input, shape index: {}]   ;;  %s417_s3 = inlined_call_operand.vmem [shape: f32[1,16], index: 3, kind: input, shape index: {}]   ;;  %s418_s1 = inlined_call_operand.vmem [shape: f32[16,16], index: 1, kind: input, shape index: {}]   ;;  %s419_s6 = inlined_call_operand.vmem [shape: f32[16,4], index: 6, kind: input, shape index: {}]   ;;  %s420_s5 = inlined_call_operand.vmem [shape: f32[1,16], index: 5, kind: input, shape index: {}]   ;;  %s421_s7 = inlined_call_operand.vmem [shape: f32[1,4], index: 7, kind: input, shape index: {}]   ;;  %s422_s8 = inlined_call_operand.vmem [shape: f32[16,4], index: 8, kind: output, shape index: {}]  }
   0x1   :  { %246 = vmatprep.subr.bf16.mxu0 %v276_v0  ;;  %v32_v1 = vld [vmem:[%s414_s2] sm:$0xff]  ;;  %v33_v2 = vld [vmem:[%s414_s2 + $0x8] sm:$0xff]  ;;  %v34_v3 = vld [vmem:[%s414_s2 + $0x10] sm:$0xff]  ;;  %258 = vmatprep.mubr.msk.bf16.mxu0 %vm277_vm0, %v276_v0  ;;  %vm222_vm3 = vcmask 31744  }
   0x2   :  { %v45_v4 = vpack.c.bf16 %v33_v2, %v32_v1  ;;  %v35_v5 = vld [vmem:[%s414_s2 + $0x18] sm:$0xff]  ;;  %262 = vmatprep.subr.bf16.mxu1 %v276_v0  ;;  %264 = vmatprep.mubr.msk.bf16.mxu1 %vm277_vm0, %v276_v0  ;;  %v36_v7 = vld [vmem:[%s414_s2 + $0x20] sm:$0xff]  ;;  %v37_v8 = vld [vmem:[%s414_s2 + $0x28] sm:$0xff] }
   0x3   :  { %v46_v6 = vpack.c.bf16 %v35_v5, %v34_v3  ;;  %v47_v9 = vpack.c.bf16 %v37_v8, %v36_v7  ;;  %v38_v10 = vld [vmem:[%s414_s2 + $0x30] sm:$0xff]  ;;  %v39_v11 = vld [vmem:[%s414_s2 + $0x38] sm:$0xff]  ;;  %v40_v13 = vld [vmem:[%s414_s2 + $0x40] sm:$0xff] }
   0x4   :  { %247 = vmatpush3.bf16.msra.mxu0 %v45_v4  ;;  %v48_v12 = vpack.c.bf16 %v39_v11, %v38_v10  ;;  %v41_v14 = vld [vmem:[%s414_s2 + $0x48] sm:$0xff]  ;;  %v42_v16 = vld [vmem:[%s414_s2 + $0x50] sm:$0xff]  ;;  %v43_v17 = vld [vmem:[%s414_s2 + $0x58] sm:$0xff] }
   0x5   :  { %248 = vmatprep.subr.bf16.mxu0 %v276_v0  ;;  %v49_v15 = vpack.c.bf16 %v41_v14, %v40_v13  ;;  %v50_v18 = vpack.c.bf16 %v43_v17, %v42_v16  ;;  %v30_v19 = vld [vmem:[%s415_s0] sm:$0xff]  ;;  %v31_v20 = vld [vmem:[%s415_s0 + $0x8] sm:$0xff] }
   0x6   :  { %v44_v21 = vpack.c.bf16 %v31_v20, %v30_v19  ;;  %v109_v22 = vld [vmem:[%s416_s4] sm:$0xff]  ;;  %v110_v23 = vld [vmem:[%s416_s4 + $0x8] sm:$0xff] }
   0x7   :  { %v112_v24 = vpack.c.bf16 %v110_v23, %v109_v22  ;;  %v229_v25 = vld [vmem:[%s417_s3] ss:$0 sm:$0xff]  ;;  %v104_v31 = vld [vmem:[%s418_s1 + $0x8] sm:$0xff] }
   0x8   :  { %249 = vmatpush3.bf16.msra.mxu0 %v46_v6  ;;  %v103_v27 = vld [vmem:[%s418_s1] sm:$0xff]  ;;  %v168_v40 = vld [vmem:[%s419_s6 + $0x8] sm:$0xff] }
   0x9   :  { %250 = vmatprep.subr.bf16.mxu0 %v276_v0  ;;  %263 = vmatpush3.bf16.msra.mxu1 %v112_v24  ;;  %v167_v39 = vld [vmem:[%s419_s6] sm:$0xff] }
   0xa   :  { %268 = vmatprep.subr.bf16.mxu1 %v276_v0  ;;  %v170_v41 = vpack.c.bf16 %v168_v40, %v167_v39  ;;  %v231_v42 = vld [vmem:[%s420_s5] ss:$0 sm:$0xff] }
   0xb   :  { %v233_v52 = vld [vmem:[%s421_s7] ss:$0 sm:$0xff] }
   0xc   :  { %251 = vmatpush3.bf16.msra.mxu0 %v47_v9 }
   0xd   :  { %252 = vmatprep.subr.bf16.mxu0 %v276_v0 }
  0x10   :  { %253 = vmatpush3.bf16.msra.mxu0 %v48_v12 }
  0x11   :  { %254 = vmatprep.subr.bf16.mxu0 %v276_v0 }
  0x14   :  { %255 = vmatpush3.bf16.msra.mxu0 %v49_v15 }
  0x15   :  { %256 = vmatprep.subr.bf16.mxu0 %v276_v0 }
  0x18   :  { %257 = vmatpush3.bf16.msra.mxu0 %v50_v18 }
  0x1b   :  { %259 = vmatmul.mubr.msk.bf16.vlgmr.msra.gmra.mrb[0].mxu0 %vm58_vm1, %v44_v21 }
  0xee   :  { %v96_v26 = vpop.f32.mrb[0].mxu0 }
  0xef   :  { %v97_v28 = vadd.f32 %v229_v25, %v96_v26  ;;  %v260_v29 = vpop.f32.mrb[1].mxu0 }
  0xf0   :  { %v99_v30 = vpop.f32.mrb[2].mxu0 }
  0xf1   :  { %v105_v32 = vadd.f32 %v103_v27, %v97_v28  ;;  %v100_v33 = vadd.f32 %v229_v25, %v99_v30  ;;  %v261_v34 = vpop.f32.mrb[3].mxu0 }
  0xf3   :  { %v106_v35 = vadd.f32 %v104_v31, %v100_v33  ;;  %v107_v36 = vmax.f32 %v105_v32, 0.0 }
  0xf5   :  { %v108_v37 = vmax.f32 %v106_v35, 0.0 }
  0xf7   :  { %v111_v38 = vpack.c.bf16 %v108_v37, %v107_v36 }
  0xf9   :  { %265 = vmatmul.mubr.msk.bf16.vlgmr.msra.gmra.mrb[0].mxu1 %vm120_vm2, %v111_v38 }
  0xfa   :  { %270 = vmatprep.mubr.msk.bf16.mxu1 %vm277_vm0, %v276_v0  ;;  %269 = vmatpush3.bf16.msra.mxu1 %v170_v41 }
 0x1cc   :  { %v158_v43 = vpop.f32.mrb[0].mxu1 }
 0x1cd   :  { %v159_v44 = vadd.f32 %v231_v42, %v158_v43  ;;  %v266_v45 = vpop.f32.mrb[1].mxu1 }
 0x1ce   :  { %v161_v46 = vpop.f32.mrb[2].mxu1 }
 0x1cf   :  { %v162_v47 = vadd.f32 %v231_v42, %v161_v46  ;;  %v267_v48 = vpop.f32.mrb[3].mxu1  ;;  %v165_v49 = vmax.f32 %v159_v44, 0.0 }
 0x1d1   :  { %v166_v50 = vmax.f32 %v162_v47, 0.0 }
 0x1d3   :  { %v169_v51 = vpack.c.bf16 %v166_v50, %v165_v49 }
 0x1d5   :  { %271 = vmatmul.mubr.msk.bf16.vlgmr.msra.gmra.mrb[4].mxu1 %vm120_vm2, %v169_v51 }
 0x2a8   :  { %v215_v53 = vpop.f32.mrb[4].mxu1 }
 0x2a9   :  { %v216_v54 = vadd.f32 %v233_v52, %v215_v53  ;;  %v272_v55 = vpop.f32.mrb[5].mxu1 }
 0x2aa   :  { %v218_v56 = vpop.f32.mrb[6].mxu1 }
 0x2ab   :  { %223 = vst.msk [vmem:[%s422_s8] sm:$0xff] %vm222_vm3, %v216_v54  ;;  %v219_v57 = vadd.f32 %v233_v52, %v218_v56  ;;  %v273_v58 = vpop.f32.mrb[7].mxu1 }
 0x2ad   :  { %224 = vst.msk [vmem:[%s422_s8 + $0x8] sm:$0xff] %vm222_vm3, %v219_v57 }

// kernel: _lambda_.4
= control target key start
LH: loop header
LB: loop body
LE: loop exit
PB: predicated region body
PF: predicated region fallthrough
CT: control target
= control target key end

     0   :  { %v263_v0 = vmov 0.0   ;;  %vm264_vm0 = vmmov 0   ;;  %vm168_vm1 = vcmask 1043456   ;;  %vm49_vm2 = vcmask 261120   ;;  %s385_s2 = inlined_call_operand.vmem [shape: f32[32,128], index: 2, kind: input, shape index: {}]   ;;  %s386_s6 = inlined_call_operand.vmem [shape: f32[32,16], index: 6, kind: input, shape index: {}]   ;;  %s387_s0 = inlined_call_operand.vmem [shape: f32[16,32], index: 0, kind: input, shape index: {}]   ;;  %s388_s4 = inlined_call_operand.vmem [shape: f32[8,8], index: 4, kind: input, shape index: {}]   ;;  %s389_s1 = inlined_call_operand.vmem [shape: f32[8,8], index: 1, kind: input, shape index: {}]   ;;  %s390_s3 = inlined_call_operand.vmem [shape: f32[1,128], index: 3, kind: input, shape index: {}]   ;;  %s391_s7 = inlined_call_operand.vmem [shape: f32[1,16], index: 7, kind: input, shape index: {}]   ;;  %s392_s8 = inlined_call_operand.vmem [shape: f32[16,128], index: 8, kind: output, shape index: {0}]   ;;  %s393_s9 = inlined_call_operand.vmem [shape: f32[16,16], index: 9, kind: output, shape index: {1}]   ;;  %s394_s5 = inlined_call_operand.vmem [shape: f32[1,8], index: 5, kind: input, shape index: {}]   ;;  %s395_s10 = inlined_call_operand.vmem [shape: f32[8,8], index: 10, kind: output, shape index: {2}]  }
   0x1   :  { %239 = vmatprep.subr.bf16.mxu0 %v263_v0  ;;  %v35_v1 = vld [vmem:[%s385_s2] sm:$0xff]  ;;  %v36_v2 = vld [vmem:[%s385_s2 + $0x8] sm:$0xff]  ;;  %247 = vmatprep.subr.bf16.mxu1 %v263_v0  ;;  %v37_v3 = vld [vmem:[%s385_s2 + $0x10] sm:$0xff]  ;;  %vm164_vm3 = vcmask 64512   ;;  %vm150_vm4 = vcmask 130048  }
   0x2   :  { %v40_v4 = vpack.c.bf16 %v36_v2, %v35_v1  ;;  %v38_v5 = vld [vmem:[%s385_s2 + $0x18] sm:$0xff]  ;;  %v96_v6 = vld [vmem:[%s386_s6] sm:$0xff]  ;;  %v97_v7 = vld [vmem:[%s386_s6 + $0x8] sm:$0xff]  ;;  %243 = vmatprep.mubr.msk.bf16.mxu0 %vm264_vm0, %v263_v0  ;;  %251 = vmatprep.mubr.msk.bf16.mxu1 %vm264_vm0, %v263_v0 }
   0x3   :  { %v100_v8 = vpack.c.bf16 %v97_v7, %v96_v6  ;;  %v33_v9 = vld [vmem:[%s387_s0] sm:$0xff]  ;;  %v98_v10 = vld [vmem:[%s386_s6 + $0x10] sm:$0xff]  ;;  %v41_v11 = vpack.c.bf16 %v38_v5, %v37_v3  ;;  %v34_v12 = vld [vmem:[%s387_s0 + $0x8] sm:$0xff] }
   0x4   :  { %240 = vmatpush3.bf16.msra.mxu0 %v40_v4  ;;  %v99_v13 = vld [vmem:[%s386_s6 + $0x18] sm:$0xff]  ;;  %v154_v14 = vld [vmem:[%s388_s4] sm:$0xff]  ;;  %v39_v17 = vpack.c.bf16 %v34_v12, %v33_v9 }
   0x5   :  { %241 = vmatprep.subr.bf16.mxu0 %v263_v0  ;;  %248 = vmatpush3.bf16.msra.mxu1 %v100_v8  ;;  %v101_v15 = vpack.c.bf16 %v99_v13, %v98_v10  ;;  %v156_v16 = vpack.c.bf16 %v154_v14, %v154_v14  ;;  %v153_v19 = vld [vmem:[%s389_s1] sm:$0xff] }
   0x6   :  { %249 = vmatprep.subr.bf16.mxu1 %v263_v0  ;;  %v155_v20 = vpack.c.bf16 %v153_v19, %v153_v19  ;;  %v225_v21 = vld [vmem:[%s390_s3] ss:$0 sm:$0xff] }
   0x7   :  { %v170_v18 = vsel %vm168_vm1, %v156_v16, 0  ;;  %v227_v22 = vld [vmem:[%s391_s7] ss:$0 sm:$0xff] }
   0x8   :  { %242 = vmatpush3.bf16.msra.mxu0 %v41_v11  ;;  %v229_v35 = vld [vmem:[%s394_s5] ss:$0 sm:$0xff] }
   0x9   :  { %255 = vmatprep.subr.bf16.mxu0 %v263_v0  ;;  %250 = vmatpush3.bf16.msra.mxu1 %v101_v15 }
   0xb   :  { %244 = vmatmul.mubr.msk.bf16.vlgmr.msra.gmra.mrb[0].mxu0 %vm49_vm2, %v39_v17 }
   0xc   :  { %256 = vmatpush3.bf16.msra.mxu0 %v170_v18  ;;  %252 = vmatmul.mubr.msk.bf16.vlgmr.msra.gmra.mrb[0].mxu1 %vm49_vm2, %v39_v17 }
   0xd   :  { %257 = vmatprep.mubr.msk.bf16.mxu0 %vm264_vm0, %v263_v0 }
  0x13   :  { %258 = vmatmul.mubr.msk.bf16.vlgmr.msra.gmra.mrb[4].mxu0 %vm164_vm3, %v155_v20 }
  0xde   :  { %v87_v23 = vpop.f32.mrb[0].mxu0 }
  0xdf   :  { %v88_v24 = vadd.f32 %v225_v21, %v87_v23  ;;  %v245_v25 = vpop.f32.mrb[1].mxu0  ;;  %v143_v26 = vpop.f32.mrb[0].mxu1 }
  0xe0   :  { %v90_v27 = vpop.f32.mrb[2].mxu0  ;;  %v144_v28 = vadd.f32 %v227_v22, %v143_v26  ;;  %v253_v29 = vpop.f32.mrb[1].mxu1 }
  0xe1   :  { %94 = vst [vmem:[%s392_s8] sm:$0xff] %v88_v24  ;;  %v91_v30 = vadd.f32 %v225_v21, %v90_v27  ;;  %v246_v31 = vpop.f32.mrb[3].mxu0  ;;  %v146_v32 = vpop.f32.mrb[2].mxu1 }
  0xe2   :  { %151 = vst.msk [vmem:[%s393_s9] sm:$0xff] %vm150_vm4, %v144_v28  ;;  %v147_v33 = vadd.f32 %v227_v22, %v146_v32  ;;  %v254_v34 = vpop.f32.mrb[3].mxu1 }
  0xe3   :  { %95 = vst [vmem:[%s392_s8 + $0x8] sm:$0xff] %v91_v30 }
  0xe4   :  { %152 = vst.msk [vmem:[%s393_s9 + $0x8] sm:$0xff] %vm150_vm4, %v147_v33 }
  0xe6   :  { %v206_v36 = vpop.f32.mrb[4].mxu0 }
  0xe7   :  { %v207_v37 = vadd.f32 %v229_v35, %v206_v36  ;;  %v259_v38 = vpop.f32.mrb[5].mxu0 }
  0xe8   :  { %v209_v39 = vpop.f32.mrb[6].mxu0 }
  0xe9   :  { %212 = vst.msk [vmem:[%s395_s10] sm:$0xff] %vm164_vm3, %v207_v37  ;;  %v260_v40 = vpop.f32.mrb[7].mxu0 }

// kernel: _lambda_.6
= control target key start
LH: loop header
LB: loop body
LE: loop exit
PB: predicated region body
PF: predicated region fallthrough
CT: control target
= control target key end

     0   :  { %s2803_s27 = smov 0   ;;  %s3318_s0 = inlined_call_operand.vmem [shape: f32[2,8,112], index: 0, kind: input, shape index: {}]   ;;  %s3319_s1 = inlined_call_operand.vmem [shape: f32[2,8,96], index: 1, kind: input, shape index: {}]   ;;  %s3320_s2 = inlined_call_operand.vmem [shape: f32[8,8], index: 2, kind: input, shape index: {}]   ;;  %s3321_s3 = inlined_call_operand.vmem [shape: f32[8,8], index: 3, kind: input, shape index: {}]   ;;  %s3322_s4 = inlined_call_operand.vmem [shape: f32[1,8], index: 4, kind: input, shape index: {}]   ;;  %s3323_s5 = inlined_call_operand.vmem [shape: f32[112,192], index: 5, kind: input, shape index: {}]   ;;  %s3324_s6 = inlined_call_operand.vmem [shape: f32[1,192], index: 6, kind: input, shape index: {}]   ;;  %s3325_s7 = inlined_call_operand.vmem [shape: f32[96,16], index: 7, kind: input, shape index: {}]   ;;  %s3326_s8 = inlined_call_operand.vmem [shape: f32[1,16], index: 8, kind: input, shape index: {}]   ;;  %s3327_s9 = inlined_call_operand.vmem [shape: f32[16,48], index: 9, kind: input, shape index: {}]   ;;  %s3328_s10 = inlined_call_operand.vmem [shape: f32[1,48], index: 10, kind: input, shape index: {}]   ;;  %s3329_s11 = inlined_call_operand.vmem [shape: f32[8,8], index: 11, kind: input, shape index: {}]   ;;  %s3330_s12 = inlined_call_operand.vmem [shape: f32[1,8], index: 12, kind: input, shape index: {}]   ;;  %s3331_s13 = inlined_call_operand.vmem [shape: f32[96,32], index: 13, kind: input, shape index: {}]   ;;  %s3332_s14 = inlined_call_operand.vmem [shape: f32[1,32], index: 14, kind: input, shape index: {}]   ;;  %s3333_s15 = inlined_call_operand.vmem [shape: f32[8,96], index: 15, kind: input, shape index: {}]   ;;  %s3334_s16 = inlined_call_operand.vmem [shape: f32[8,96], index: 16, kind: input, shape index: {}]   ;;  %s3335_s17 = inlined_call_operand.vmem [shape: f32[2,8,96], index: 17, kind: output, shape index: {0}]   ;;  %s3336_s18 = inlined_call_operand.vmem [shape: f32[2,8,16], index: 18, kind: output, shape index: {1}]  }
   0x1   :  { %3339 = sst [smem:[#allocation2_spill]] %s3318_s0 }
   0x2   :  { %3340 = sst [smem:[#allocation3_spill]] %s3319_s1 }
   0x3   :  { %3341 = sst [smem:[#allocation4_spill]] %s3320_s2 }
   0x4 LB: > { %s2321_s28 = sadd.s32 4294967295, %s2694_s27   ;;  %p2325_p0 = scmp.ge.s32.totalorder %s2694_s27, 1  ;;  %s2694_s27 = sphi %s2803_s27, %s29_s27  }
   0x5   : > { %p523_p1 = scmp.lt.s32.totalorder %s2694_s27, 3 }
   0x7   : > { %p524_p2 = pnand %p2325_p0, %p523_p1 }
   0x8   : > { %v602_v0 = vld [vmem:[%s3323_s5 + $0x8] sm:$0xff] (!%p524_p2)  ;;  %v604_v1 = vld [vmem:[%s3323_s5 + $0x18] sm:$0xff] (!%p524_p2)  ;;  %v601_v2 = vld [vmem:[%s3323_s5] sm:$0xff] (!%p524_p2)  ;;  %v2696_v7 = vmov (!%p524_p2), 0   ;;  %p583_p3 = scmp.lt.s32.totalorder (!%p524_p2), %s2321_s28, 1  ;;  %s3342_s22 = sld [smem:[#allocation2_spill]] (!%p524_p2)  ;;  %v646_v58 = vlaneseq (!%p524_p2) }
   0x9   : > { %527 = sbr.rel (%p524_p2) target bundleno = 7493 (0x1d45), region = 88  ;;  %v631_v3 = vpack.c.bf16 (!%p524_p2), %v604_v1, %v602_v0  ;;  %v603_v4 = vld [vmem:[%s3323_s5 + $0x10] sm:$0xff] (!%p524_p2)  ;;  %v606_v5 = vld [vmem:[%s3323_s5 + $0x28] sm:$0xff] (!%p524_p2)  ;;  %v608_v6 = vld [vmem:[%s3323_s5 + $0x38] sm:$0xff] (!%p524_p2)  ;;  %692 = vmatprep.mubr.bf16.mxu0 (!%p524_p2), %v2696_v7  ;;  %vm656_vm0 = vcmask (!%p524_p2), 916480   ;;  %v2697_v45 = vmov (!%p524_p2), 0.0  }
   0xa   : > { %v630_v8 = vpack.c.bf16 (!%p524_p2), %v603_v4, %v601_v2  ;;  %v633_v9 = vpack.c.bf16 (!%p524_p2), %v608_v6, %v606_v5  ;;  %v605_v10 = vld [vmem:[%s3323_s5 + $0x20] sm:$0xff] (!%p524_p2)  ;;  %v607_v11 = vld [vmem:[%s3323_s5 + $0x30] sm:$0xff] (!%p524_p2)  ;;  %v610_v12 = vld [vmem:[%s3323_s5 + $0x48] sm:$0xff] (!%p524_p2)  ;;  %2436 = vmatprep.subr.bf16.mxu1 (!%p524_p2), %v2697_v45  ;;  %v2936_v59 = vshrl.u32 (!%p524_p2), %v646_v58, 7  ;;  %vm2698_vm1 = vmmov (!%p524_p2), 0   ;;  %s2700_s25 = smov (!%p524_p2), 104  }
   0xb   : > { %660 = vmatprep.subr.bf16.mxu0 (!%p524_p2), %v631_v3  ;;  %v612_v13 = vld [vmem:[%s3323_s5 + $0x58] sm:$0xff] (!%p524_p2)  ;;  %v632_v14 = vpack.c.bf16 (!%p524_p2), %v607_v11, %v605_v10  ;;  %v609_v16 = vld [vmem:[%s3323_s5 + $0x40] sm:$0xff] (!%p524_p2)  ;;  %v611_v17 = vld [vmem:[%s3323_s5 + $0x50] sm:$0xff] (!%p524_p2)  ;;  %2448 = vmatprep.mubr.msk.bf16.mxu1 (!%p524_p2), %vm2698_vm1, %v2697_v45  ;;  %vm720_vm2 = vcmask (!%p524_p2), 261120   ;;  %vm750_vm3 = vcmask (!%p524_p2), 785408   ;;  %vm811_vm4 = vcmask (!%p524_p2), 1043456  }
   0xc   : > { %661 = vmatpush1.bf16.msra.mxu0 (!%p524_p2), %v630_v8  ;;  %v635_v15 = vpack.c.bf16 (!%p524_p2), %v612_v13, %v610_v12  ;;  %v614_v18 = vld [vmem:[%s3323_s5 + $0x68] sm:$0xff] (!%p524_p2)  ;;  %v616_v19 = vld [vmem:[%s3323_s5 + $0x78] sm:$0xff] (!%p524_p2)  ;;  %v634_v20 = vpack.c.bf16 (!%p524_p2), %v611_v17, %v609_v16  ;;  %v613_v22 = vld [vmem:[%s3323_s5 + $0x60] sm:$0xff] (!%p524_p2)  ;;  %v648_v60 = vsub.s32 (!%p524_p2), 0, %v2936_v59  ;;  %v652_v62 = vsub.s32 (!%p524_p2), 1, %v2936_v59  ;;  %s2701_s26 = smov (!%p524_p2), 120  }
   0xd   : > { %662 = vmatprep.subr.bf16.mxu0 (!%p524_p2), %v633_v9  ;;  %v637_v21 = vpack.c.bf16 (!%p524_p2), %v616_v19, %v614_v18  ;;  %v615_v23 = vld [vmem:[%s3323_s5 + $0x70] sm:$0xff] (!%p524_p2)  ;;  %v618_v24 = vld [vmem:[%s3323_s5 + $0x88] sm:$0xff] (!%p524_p2)  ;;  %v620_v25 = vld [vmem:[%s3323_s5 + $0x98] sm:$0xff] (!%p524_p2)  ;;  %s3343_s19 = sld [smem:[#allocation4_spill]] (!%p524_p2)  ;;  %s2702_s1 = smov (!%p524_p2), 112   ;;  %vm807_vm5 = vcmask (!%p524_p2), 64512  }
   0xe   : > { %v636_v26 = vpack.c.bf16 (!%p524_p2), %v615_v23, %v613_v22  ;;  %v639_v27 = vpack.c.bf16 (!%p524_p2), %v620_v25, %v618_v24  ;;  %v617_v28 = vld [vmem:[%s3323_s5 + $0x80] sm:$0xff] (!%p524_p2)  ;;  %v619_v29 = vld [vmem:[%s3323_s5 + $0x90] sm:$0xff] (!%p524_p2)  ;;  %v622_v30 = vld [vmem:[%s3323_s5 + $0xa8] sm:$0xff] (!%p524_p2)  ;;  %vm794_vm6 = vcmask (!%p524_p2), 130048   ;;  %s2703_s21 = smov (!%p524_p2), 8   ;;  %s2704_s23 = smov (!%p524_p2), 88  }
   0xf   : > { %v624_v31 = vld [vmem:[%s3323_s5 + $0xb8] sm:$0xff] (!%p524_p2)  ;;  %v638_v32 = vpack.c.bf16 (!%p524_p2), %v619_v29, %v617_v28  ;;  %v621_v34 = vld [vmem:[%s3323_s5 + $0xa0] sm:$0xff] (!%p524_p2)  ;;  %v623_v35 = vld [vmem:[%s3323_s5 + $0xb0] sm:$0xff] (!%p524_p2)  ;;  %s2705_s24 = smov (!%p524_p2), 16   ;;  %s2706_s20 = smov (!%p524_p2), 96   ;;  %vm2191_vm8 = vcmask (!%p524_p2), 523264  }
  0x10   : > { %663 = vmatpush1.bf16.msra.mxu0 %v632_v14  ;;  %s3347_s28 = smov (!%p583_p3, %s2321_s28), 1  ;;  %v641_v33 = vpack.c.bf16 %v624_v31, %v622_v30  ;;  %v626_v36 = vld [vmem:[%s3323_s5 + $0xc8] sm:$0xff]  ;;  %v628_v37 = vld [vmem:[%s3323_s5 + $0xd8] sm:$0xff]  ;;  %v640_v38 = vpack.c.bf16 %v623_v35, %v621_v34  ;;  %v625_v40 = vld [vmem:[%s3323_s5 + $0xc0] sm:$0xff] }
  0x11   : > { %664 = vmatprep.subr.bf16.mxu0 %v635_v15  ;;  %s2893_s29 = sshll.u32 %s3347_s28, 3  ;;  %v643_v39 = vpack.c.bf16 %v628_v37, %v626_v36  ;;  %v627_v41 = vld [vmem:[%s3323_s5 + $0xd0] sm:$0xff]  ;;  %v724_v46 = vld [vmem:[%s3325_s7] sm:$0xff]  ;;  %v725_v47 = vld [vmem:[%s3325_s7 + $0x8] sm:$0xff]  ;;  %s3337_s28 = smov 32  }
  0x12   : > { %s586_s2 = scalar_lea.vmem %s3342_s22, %s2893_s29  ;;  %v642_v42 = vpack.c.bf16 %v627_v41, %v625_v40  ;;  %v726_v48 = vld [vmem:[%s3325_s7 + $0x10] sm:$0xff]  ;;  %v737_v49 = vpack.c.bf16 %v725_v47, %v724_v46  ;;  %v727_v50 = vld [vmem:[%s3325_s7 + $0x18] sm:$0xff]  ;;  %v728_v52 = vld [vmem:[%s3325_s7 + $0x20] sm:$0xff] }
  0x13   : > { %v600_v43 = vld [vmem:[%s586_s2] sm:$0xff]  ;;  %v738_v51 = vpack.c.bf16 %v727_v50, %v726_v48  ;;  %v729_v53 = vld [vmem:[%s3325_s7 + $0x28] sm:$0xff]  ;;  %v730_v55 = vld [vmem:[%s3325_s7 + $0x30] sm:$0xff] }
  0x14   : > { %665 = vmatpush1.bf16.msra.mxu0 %v634_v20  ;;  %v629_v44 = vpack.c.bf16 %v600_v43, %v600_v43  ;;  %2437 = vmatpush3.bf16.msra.mxu1 %v737_v49  ;;  %v739_v54 = vpack.c.bf16 %v729_v53, %v728_v52  ;;  %v731_v56 = vld [vmem:[%s3325_s7 + $0x38] sm:$0xff]  ;;  %v644_v61 = vld [vmem:[%s3324_s6] sm:$0x3]  ;;  %v733_v11 = vld [vmem:[%s3325_s7 + $0x48] sm:$0xff] }
  0x15   : > { %666 = vmatprep.subr.bf16.mxu0 %v637_v21  ;;  %2438 = vmatprep.subr.bf16.mxu1 %v2697_v45  ;;  %v740_v57 = vpack.c.bf16 %v731_v56, %v730_v55  ;;  %v649_v63 = vrot.slane %v644_v61, %v648_v60  ;;  %v653_v0 = vrot.slane %v644_v61, %v652_v62  ;;  %v732_v10 = vld [vmem:[%s3325_s7 + $0x40] sm:$0xff]  ;;  %v734_v16 = vld [vmem:[%s3325_s7 + $0x50] sm:$0xff]  ;;  %v735_v17 = vld [vmem:[%s3325_s7 + $0x58] sm:$0xff] }
  0x16   : > { %v741_v14 = vpack.c.bf16 %v733_v11, %v732_v10  ;;  %v742_v18 = vpack.c.bf16 %v735_v17, %v734_v16  ;;  %v797_v22 = vld [vmem:[%s3321_s3] sm:$0xff] }
  0x17   : > { %v799_v24 = vpack.c.bf16 %v797_v22, %v797_v22  ;;  %v796_v30 = vld [vmem:[%s3343_s19] sm:$0xff]  ;;  %s598_s19 = scalar_lea.vmem %s3336_s18, %s2893_s29 }
  0x18   : > { %667 = vmatpush1.bf16.msra.mxu0 %v636_v26  ;;  %2439 = vmatpush3.bf16.msra.mxu1 %v738_v51  ;;  %v798_v31 = vpack.c.bf16 %v796_v30, %v796_v30  ;;  %v2333_v35 = vld [vmem:[%s3326_s8] ss:$0 sm:$0xff] }
  0x19   : > { %668 = vmatprep.subr.bf16.mxu0 %v639_v27  ;;  %2440 = vmatprep.subr.bf16.mxu1 %v2697_v45  ;;  %v813_v29 = vsel %vm811_vm4, %v799_v24, 0  ;;  %v2335_v41 = vld [vmem:[%s3322_s4] ss:$0 sm:$0xff] }
  0x1a   : > { %v3022_v60 = vld [vmem:[%s3328_s10] ss:$0 sm:$0xff] }
  0x1b   : > { %v3051_v24 = vld [vmem:[%s3330_s12] ss:$0 sm:$0xff] }
  0x1c   : > { %669 = vmatpush1.bf16.msra.mxu0 %v638_v32  ;;  %2441 = vmatpush3.bf16.msra.mxu1 %v739_v54  ;;  %v893_v32 = vld [vmem:[%s3327_s9] sm:$0xff] }
  0x1d   : > { %670 = vmatprep.subr.bf16.mxu0 %v641_v33  ;;  %2442 = vmatprep.subr.bf16.mxu1 %v2697_v45  ;;  %v894_v33 = vld [vmem:[%s3327_s9 + $0x8] sm:$0xff] }
  0x1e   : > { %v2996_v34 = vpack.c.bf16 %v894_v33, %v893_v32 }
  0x20   : > { %671 = vmatpush1.bf16.msra.mxu0 %v640_v38  ;;  %2443 = vmatpush3.bf16.msra.mxu1 %v740_v57 }
  0x21   : > { %672 = vmatprep.subr.bf16.mxu0 %v643_v39  ;;  %2444 = vmatprep.subr.bf16.mxu1 %v2697_v45 }
  0x24   : > { %673 = vmatpush1.bf16.msra.mxu0 %v642_v42  ;;  %2445 = vmatpush3.bf16.msra.mxu1 %v741_v14 }
  0x25   : > { %2458 = vmatprep.subr.bf16.mxu0 %v2697_v45  ;;  %2446 = vmatprep.subr.bf16.mxu1 %v2697_v45 }
  0x27   : > { %2330 = vmatmul.mubr.msk.bf16.vlgmr.msra.gmra.mrb[0].mxu0 %vm656_vm0, %v629_v44 }
  0x28   : > { %2447 = vmatpush3.bf16.msra.mxu1 %v742_v18  ;;  %2460 = vmatprep.mubr.msk.bf16.mxu0 %vm2698_vm1, %v2697_v45 }
  0x29   : > { %2452 = vmatprep.subr.bf16.mxu1 %v2697_v45  ;;  %2459 = vmatpush3.bf16.msra.mxu0 %v2996_v34 }
  0x2a   : > { %2470 = vmatprep.subr.bf16.mxu0 %v2697_v45 }
  0xfa   : > { %v694_v1 = vpop.f32.mrb[0].mxu0 }
  0xfb   : > { %v695_v2 = vadd.f32 %v694_v1, %v649_v63  ;;  %v696_v3 = vpop.f32.mrb[1].mxu0 }
  0xfc   : > { %v697_v4 = vadd.f32 %v696_v3, %v653_v0  ;;  %v698_v5 = vpop.f32.mrb[2].mxu0 }
  0xfd   : > { %v2331_v6 = vmul.f32 -1.442695, %v695_v2  ;;  %v699_v7 = vpop.f32.mrb[3].mxu0 }
  0xfe   : > { %v2332_v8 = vmul.f32 -1.442695, %v697_v4 }
  0xff   : > { %2640 = vpow2.f32 %v2331_v6 }
 0x100   : > { %2642 = vpow2.f32 %v2332_v8 }
 0x109   : > { %v2641_v9 = vpop.eup %2640 }
 0x10a   : > { %v2643_v12 = vpop.eup %2642  ;;  %v708_v13 = vadd.f32 1.0, %v2641_v9 }
 0x10b   : > { %v709_v15 = vadd.f32 1.0, %v2643_v12  ;;  %v976_v12 = vld [vmem:[%s3329_s11] sm:$0xff] }
 0x10c   : > { %2644 = vrcp.f32 %v708_v13  ;;  %v978_v13 = vpack.c.bf16 %v976_v12, %v976_v12 }
 0x10d   : > { %2646 = vrcp.f32 %v709_v15 }
 0x10e   : > { %2648 = vtanh.f32 %v695_v2  ;;  %v3032_v14 = vsel %vm811_vm4, %v978_v13, 0 }
 0x116   : > { %v2645_v19 = vpop.eup %2644 }
 0x117   : > { %716 = vrot.lane.b32.xlu0 %v2645_v19, %s3337_s28  ;;  %v2647_v20 = vpop.eup %2646 }
 0x118   : > { %v2649_v25 = vpop.eup %2648 }
 0x11b   : > { %718 = vrot.lane.b32.xlu0 %v2647_v20, %s3337_s28  ;;  %s2707_s28 = smov 64  }
 0x189   : > { %v717_v21 = vpop.permute.xlu0 %716 }
 0x18d   : > { %v719_v23 = vpop.permute.xlu0 %718 }
 0x18e   : > { %v721_v26 = vsel %vm720_vm2, %v717_v21, %v719_v23 }
 0x18f   : > { %v2967_v27 = vmul.f32 %v2649_v25, %v721_v26 }
 0x191   : > { %883 = vrot.lane.b32.xlu0 %v2967_v27, %s2700_s25  ;;  %875 = vrot.lane.b32.xlu1 %v2967_v27, %s2701_s26  ;;  %v2975_v28 = vpack.c.bf16 %v2967_v27, %v2967_v27 }
 0x193   : > { %2449 = vmatmul.mubr.msk.bf16.vlgmr.msra.gmra.mrb[0].mxu1 %vm750_vm3, %v2975_v28  ;;  %v1101_v23 = vsel %vm811_vm4, %v2975_v28, 0 }
 0x194   : > { %2453 = vmatpush3.bf16.msra.mxu1 %v813_v29  ;;  %2454 = vmatprep.mubr.msk.bf16.mxu1 %vm2698_vm1, %v2697_v45 }
 0x195   : > { %879 = vrot.lane.b32.xlu1 %v2967_v27, %s2702_s1  ;;  %2464 = vmatprep.subr.bf16.mxu1 %v2697_v45 }
 0x19b   : > { %2455 = vmatmul.mubr.msk.bf16.vlgmr.msra.gmra.mrb[4].mxu1 %vm807_vm5, %v798_v31 }
 0x19c   : > { %2466 = vmatprep.mubr.msk.bf16.mxu1 %vm2698_vm1, %v2697_v45  ;;  %2465 = vmatpush3.bf16.msra.mxu1 %v3032_v14 }
 0x19d   : > { %2476 = vmatprep.subr.bf16.mxu1 %v2697_v45 }
 0x203   : > { %v876_v48 = vpop.permute.xlu1 %875  ;;  %v884_v52 = vpop.permute.xlu0 %883 }
 0x204   : > { %v878_v50 = vadd.f32 %v876_v48, %v2967_v27 }
 0x207   : > { %v880_v49 = vpop.permute.xlu1 %879 }
 0x208   : > { %v882_v51 = vadd.f32 %v880_v49, %v878_v50  ;;  %v858_v49 = vand.u32 127, %v646_v58 }
 0x20a   : > { %v886_v53 = vadd.f32 %v884_v52, %v882_v51  ;;  %vm859_vm7 = vcmp.eq.s32.totalorder %v2936_v59, %v858_v49  ;;  %v864_v59 = vld [vmem:[%s3331_s13 + $0x10] sm:$0xff] }
 0x20b   : > { %v3066_v51 = vsel %vm859_vm7, 1.0, %v2697_v45 }
 0x20c   : > { %v3012_v54 = vmul.f32 0.25, %v886_v53 }
 0x266   : > { %v788_v36 = vpop.f32.mrb[0].mxu1 }
 0x267   : > { %v789_v37 = vadd.f32 %v2333_v35, %v788_v36  ;;  %v2450_v38 = vpop.f32.mrb[1].mxu1 }
 0x268   : > { %v791_v39 = vpop.f32.mrb[2].mxu1 }
 0x269   : > { %795 = vst.msk [vmem:[%s598_s19] sm:$0xff] %vm794_vm6, %v789_v37  ;;  %v2451_v40 = vpop.f32.mrb[3].mxu1 }
 0x26e   : > { %v849_v42 = vpop.f32.mrb[4].mxu1 }
 0x26f   : > { %v850_v43 = vadd.f32 %v2335_v41, %v849_v42  ;;  %v2456_v44 = vpop.f32.mrb[5].mxu1 }
 0x270   : > { %v852_v46 = vpop.f32.mrb[6].mxu1 }
 0x271   : > { %889 = vrot.lane.b32.xlu1 %v850_v43, %s2703_s21  ;;  %v2457_v47 = vpop.f32.mrb[7].mxu1  ;;  %s3344_s21 = smov 32  }
 0x2e3   : > { %v890_v55 = vpop.permute.xlu1 %889 }
 0x2e4   : > { %v892_v56 = vsel %vm807_vm5, %v3012_v54, %v890_v55 }
 0x2e5   : > { %v895_v57 = vpack.c.bf16 %v892_v56, %v892_v56  ;;  %v863_v56 = vld [vmem:[%s3331_s13 + $0x8] sm:$0xff] }
 0x2e7   : > { %2461 = vmatmul.mubr.msk.bf16.vlgmr.msra.gmra.mrb[4].mxu0 %vm794_vm6, %v895_v57 }
 0x2e8   : > { %2472 = vmatprep.mubr.msk.bf16.mxu0 %vm2698_vm1, %v2697_v45 }
 0x3ba   : > { %v941_v61 = vpop.f32.mrb[4].mxu0 }
 0x3bb   : > { %v942_v62 = vadd.f32 %v3022_v60, %v941_v61  ;;  %v2462_v63 = vpop.f32.mrb[5].mxu0 }
 0x3bc   : > { %v944_v0 = vpop.f32.mrb[6].mxu0 }
 0x3bd   : > { %958 = vrot.lane.b32.xlu1 %v942_v62, %s2704_s23  ;;  %948 = vrot.lane.b32.xlu0 %v942_v62, %s2700_s25  ;;  %v2463_v1 = vpop.f32.mrb[7].mxu0  ;;  %v866_v0 = vld [vmem:[%s3331_s13 + $0x20] sm:$0xff] }
 0x3be   : > { %v867_v1 = vld [vmem:[%s3331_s13 + $0x28] sm:$0xff] }
 0x42f   : > { %v949_v2 = vpop.permute.xlu0 %948  ;;  %v959_v8 = vpop.permute.xlu1 %958 }
 0x430   : > { %v951_v3 = vadd.f32 %v949_v2, %v942_v62  ;;  %v3102_v2 = vpack.c.bf16 %v867_v1, %v866_v0 }
 0x432   : > { %v2340_v4 = vmul.f32 -1.442695, %v951_v3  ;;  %v868_v3 = vld [vmem:[%s3331_s13 + $0x30] sm:$0xff] }
 0x434   : > { %2650 = vpow2.f32 %v2340_v4  ;;  %v869_v4 = vld [vmem:[%s3331_s13 + $0x38] sm:$0xff] }
 0x43e   : > { %v2651_v5 = vpop.eup %2650 }
 0x43f   : > { %v955_v6 = vadd.f32 1.0, %v2651_v5  ;;  %v3112_v5 = vpack.c.bf16 %v869_v4, %v868_v3 }
 0x441   : > { %2652 = vrcp.f32 %v955_v6 }
 0x44b   : > { %v2653_v7 = vpop.eup %2652 }
 0x44c   : > { %v961_v9 = vmul.f32 %v2653_v7, %v959_v8  ;;  %v968_v16 = vsub.f32 1.0, %v2653_v7  ;;  %v974_v18 = vmul.f32 %v2653_v7, %v890_v55  ;;  %v862_v55 = vld [vmem:[%s3331_s13] sm:$0xff]  ;;  %v3117_v7 = vmul.f32 0.05, %v2967_v27 }
 0x44d   : > { %v3075_v61 = vpack.c.bf16 %v863_v56, %v862_v55 }
 0x44e   : > { %963 = vrot.lane.b32.xlu0 %v961_v9, %s2705_s24 }
 0x4c0   : > { %v964_v10 = vpop.permute.xlu0 %963 }
 0x4c1   : > { %v966_v11 = vadd.f32 %v964_v10, %v942_v62  ;;  %v865_v62 = vld [vmem:[%s3331_s13 + $0x18] sm:$0xff] }
 0x4c2   : > { %v3085_v63 = vpack.c.bf16 %v865_v62, %v864_v59 }
 0x4c3   : > { %2654 = vtanh.f32 %v966_v11 }
 0x4cd   : > { %v2655_v15 = vpop.eup %2654 }
 0x4ce   : > { %970 = vrot.lane.b32.xlu1 %v2655_v15, %s2701_s26 }
 0x540   : > { %v971_v17 = vpop.permute.xlu1 %970 }
 0x541   : > { %v973_v19 = vmul.f32 %v971_v17, %v968_v16 }
 0x543   : > { %v3037_v20 = vadd.f32 %v974_v18, %v973_v19 }
 0x545   : > { %v977_v21 = vpack.c.bf16 %v3037_v20, %v3037_v20 }
 0x547   : > { %987 = vrot.lane.b32.xlu0 %v977_v21, %s2701_s26 }
 0x5b9   : > { %v988_v22 = vpop.permute.xlu0 %987 }
 0x5ba   : > { %2467 = vmatmul.mubr.msk.bf16.vlgmr.msra.gmra.mrb[8].mxu1 %vm807_vm5, %v988_v22 }
 0x5bb   : > { %2477 = vmatpush3.bf16.msra.mxu1 %v1101_v23  ;;  %2478 = vmatprep.mubr.msk.bf16.mxu1 %vm2698_vm1, %v2697_v45  ;;  %v870_v23 = vld [vmem:[%s3331_s13 + $0x40] sm:$0xff] }
 0x5bc   : > { %2490 = vmatprep.subr.bf16.mxu1 %v2697_v45 }
 0x68d   : > { %v1029_v25 = vpop.f32.mrb[8].mxu1 }
 0x68e   : > { %v1030_v26 = vadd.f32 %v3051_v24, %v1029_v25  ;;  %v2468_v29 = vpop.f32.mrb[9].mxu1  ;;  %v871_v25 = vld [vmem:[%s3331_s13 + $0x48] sm:$0xff] }
 0x68f   : > { %v1032_v30 = vpop.f32.mrb[10].mxu1  ;;  %v872_v29 = vld [vmem:[%s3331_s13 + $0x50] sm:$0xff] }
 0x690   : > { %v1035_v31 = vpack.c.bf16 %v1030_v26, %v1030_v26  ;;  %v2469_v32 = vpop.f32.mrb[11].mxu1  ;;  %v3141_v26 = vpack.c.bf16 %v871_v25, %v870_v23  ;;  %v873_v30 = vld [vmem:[%s3331_s13 + $0x58] sm:$0xff] }
 0x692   : > { %v1037_v33 = vsel %vm807_vm5, %v1035_v31, 0  ;;  %v3151_v31 = vpack.c.bf16 %v873_v30, %v872_v29 }
 0x693   : > { %2471 = vmatpush3.bf16.xpose.msra.mxu0 %v1037_v33 }
 0x694   : > { %2482 = vmatprep.subr.bf16.mxu0 %v2697_v45 }
 0x69a   : > { %2473 = vmatmul.mubr.msk.bf16.vlgmr.msra.gmra.mrb[8].mxu0 %vm807_vm5, %v988_v22 }
 0x69b   : > { %2486 = vmatprep.mubr.msk.bf16.mxu0 %vm2698_vm1, %v2697_v45  ;;  %2483 = vmatpush3.bf16.msra.mxu0 %v3102_v2 }
 0x69c   : > { %2484 = vmatprep.subr.bf16.mxu0 %v2697_v45 }
 0x69f   : > { %2485 = vmatpush3.bf16.msra.mxu0 %v3112_v5 }
 0x6a0   : > { %2498 = vmatprep.subr.bf16.mxu0 %v2697_v45 }
 0x76d   : > { %v1073_v35 = vpop.f32.mrb[8].mxu0 }
 0x76e   : > { %2656 = vtanh.f32 %v1073_v35  ;;  %v2474_v36 = vpop.f32.mrb[9].mxu0 }
 0x76f   : > { %v1076_v37 = vpop.f32.mrb[10].mxu0 }
 0x770   : > { %v2475_v38 = vpop.f32.mrb[11].mxu0 }
 0x778   : > { %v2657_v39 = vpop.eup %2656 }
 0x779   : > { %v1080_v40 = vmax.f32 %v2657_v39, 0.0 }
 0x77b   : > { %v1081_v41 = vsel %vm807_vm5, %v1080_v40, -inf }
 0x77c   : > { %1082 = vmax.xlane.f32.xlu1 %v1081_v41 }
 0x809   : > { %v1083_v42 = vpop.xlane.xlu1 %1082 }
 0x80a   : > { %v1084_v43 = vsub.f32 %v1080_v40, %v1083_v42 }
 0x80c   : > { %v1085_v44 = vmul.f32 1.442695, %v1084_v43 }
 0x80e   : > { %2658 = vpow2.f32 %v1085_v44 }
 0x818   : > { %v2659_v46 = vpop.eup %2658 }
 0x819   : > { %v1087_v47 = vsel %vm807_vm5, %v2659_v46, 0.0 }
 0x81a   : > { %1088 = vadd.xlane.f32.xlu0 %v1087_v47 }
 0x830   : > { %1333 = vrot.lane.b32.xlu0 %v3012_v54, %s2706_s20 }
 0x8a7   : > { %v1089_v48 = vpop.xlane.xlu0 %1088 }
 0x8a8   : > { %2660 = vrcp.f32 %v1089_v48 }
 0x8ab   : > { %v1334_v19 = vpop.permute.xlu0 %1333 }
 0x8ac   : > { %v1336_v21 = vsel %vm807_vm5, %v1334_v19, %v3037_v20 }
 0x8ad   : > { %v1337_v22 = vpack.c.bf16 %v1336_v21, %v1336_v21 }
 0x8b2   : > { %v2661_v50 = vpop.eup %2660 }
 0x8b3   : > { %v1091_v52 = vmul.f32 %v2661_v50, %v2659_v46 }
 0x8b5   : > { %v1092_v53 = vadd.f32 %v3066_v51, %v1091_v52 }
 0x8b7   : > { %v1093_v57 = vmul.f32 0.5, %v1092_v53 }
 0x8b9   : > { %v1097_v58 = vpack.c.bf16 %v1093_v57, %v1093_v57 }
 0x8bb   : > { %2479 = vmatmul.mubr.msk.bf16.vlgmr.msra.gmra.mrb[12].mxu1 %vm807_vm5, %v1097_v58 }
 0x8bc   : > { %2491 = vmatpush3.bf16.msra.mxu1 %v3075_v61  ;;  %2494 = vmatprep.mubr.msk.bf16.mxu1 %vm2698_vm1, %v2697_v45 }
 0x8bd   : > { %2492 = vmatprep.subr.bf16.mxu1 %v2697_v45 }
 0x8c0   : > { %2493 = vmatpush3.bf16.msra.mxu1 %v3085_v63 }
 0x8c1   : > { %2504 = vmatprep.subr.bf16.mxu1 %v2697_v45 }
 0x8c3   : > { %2495 = vmatmul.mubr.msk.bf16.vlgmr.msra.gmra.mrb[16].mxu1 %vm720_vm2, %v2975_v28 }
 0x8c4   : > { %2508 = vmatprep.mubr.msk.bf16.mxu1 %vm2698_vm1, %v2697_v45  ;;  %2505 = vmatpush3.bf16.msra.mxu1 %v3141_v26 }
 0x8c5   : > { %2506 = vmatprep.subr.bf16.mxu1 %v2697_v45 }
 0x8c8   : > { %2507 = vmatpush3.bf16.msra.mxu1 %v3151_v31 }
 0x8c9   : > { %2518 = vmatprep.subr.bf16.mxu1 %v2697_v45 }
 0x98e   : > { %v1137_v6 = vpop.f32.mrb[12].mxu1 }
 0x98f   : > { %v1143_v8 = vmul.f32 0.95, %v1137_v6  ;;  %v2480_v9 = vpop.f32.mrb[13].mxu1 }
 0x990   : > { %v1140_v10 = vpop.f32.mrb[14].mxu1 }
 0x991   : > { %v1144_v11 = vadd.f32 %v1143_v8, %v3117_v7  ;;  %v2481_v12 = vpop.f32.mrb[15].mxu1 }
 0x993   : > { %v1145_v13 = vpack.c.bf16 %v1144_v11, %v1144_v11 }
 0x995   : > { %2487 = vmatmul.mubr.msk.bf16.vlgmr.msra.gmra.mrb[12].mxu0 %vm720_vm2, %v1145_v13  ;;  %v1233_v15 = vsel %vm811_vm4, %v1145_v13, 0 }
 0x996   : > { %v1227_v16 = vpop.f32.mrb[16].mxu1  ;;  %2499 = vmatpush3.bf16.msra.mxu0 %v1233_v15  ;;  %2500 = vmatprep.mubr.msk.bf16.mxu0 %vm2698_vm1, %v2697_v45 }
 0x997   : > { %v2496_v17 = vpop.f32.mrb[17].mxu1  ;;  %2512 = vmatprep.subr.bf16.mxu0 %v2697_v45 }
 0x998   : > { %v1230_v27 = vpop.f32.mrb[18].mxu1 }
 0x999   : > { %v2497_v18 = vpop.f32.mrb[19].mxu1 }
 0x99d   : > { %2501 = vmatmul.mubr.msk.bf16.vlgmr.msra.gmra.mrb[16].mxu0 %vm807_vm5, %v1097_v58 }
 0x99e   : > { %2513 = vmatpush3.bf16.msra.mxu0 %v2996_v34  ;;  %2514 = vmatprep.mubr.msk.bf16.mxu0 %vm2698_vm1, %v2697_v45 }
 0x99f   : > { %2524 = vmatprep.subr.bf16.mxu0 %v2697_v45 }
 0x9a5   : > { %2515 = vmatmul.mubr.msk.bf16.vlgmr.msra.gmra.mrb[20].mxu0 %vm794_vm6, %v1337_v22 }
 0x9a6   : > { %2526 = vmatprep.mubr.msk.bf16.mxu0 %vm2698_vm1, %v2697_v45 }
 0xa68   : > { %v1185_v32 = vpop.f32.mrb[12].mxu0 }
 0xa69   : > { %v1228_v33 = vadd.f32 %v1227_v16, %v1185_v32  ;;  %v2488_v35 = vpop.f32.mrb[13].mxu0 }
 0xa6a   : > { %v1188_v36 = vpop.f32.mrb[14].mxu0 }
 0xa6b   : > { %v2489_v37 = vpop.f32.mrb[15].mxu0 }
 0xa70   : > { %v1269_v38 = vpop.f32.mrb[16].mxu0 }
 0xa71   : > { %v1275_v39 = vmul.f32 0.95, %v1269_v38  ;;  %v2502_v40 = vpop.f32.mrb[17].mxu0 }
 0xa72   : > { %v1272_v41 = vpop.f32.mrb[18].mxu0 }
 0xa73   : > { %v1276_v42 = vadd.f32 %v1275_v39, %v3117_v7  ;;  %v2503_v43 = vpop.f32.mrb[19].mxu0 }
 0xa75   : > { %v1277_v44 = vpack.c.bf16 %v1276_v42, %v1276_v42 }
 0xa77   : > { %2509 = vmatmul.mubr.msk.bf16.vlgmr.msra.gmra.mrb[20].mxu1 %vm720_vm2, %v1277_v44 }
 0xa78   : > { %v1375_v46 = vpop.f32.mrb[20].mxu0  ;;  %2519 = vmatpush3.bf16.msra.mxu1 %v3032_v14  ;;  %2520 = vmatprep.mubr.msk.bf16.mxu1 %vm2698_vm1, %v2697_v45 }
 0xa79   : > { %v1376_v47 = vadd.f32 %v3022_v60, %v1375_v46  ;;  %v2516_v48 = vpop.f32.mrb[21].mxu0  ;;  %2530 = vmatprep.subr.bf16.mxu1 %v2697_v45 }
 0xa7a   : > { %v1378_v49 = vpop.f32.mrb[22].mxu0 }
 0xa7b   : > { %1382 = vrot.lane.b32.xlu1 %v1376_v47, %s2700_s25  ;;  %v2517_v50 = vpop.f32.mrb[23].mxu0 }
 0xa7f   : > { %1392 = vrot.lane.b32.xlu1 %v1376_v47, %s2704_s23 }
 0xaed   : > { %v1383_v52 = vpop.permute.xlu1 %1382 }
 0xaee   : > { %v1385_v53 = vadd.f32 %v1383_v52, %v1376_v47 }
 0xaf0   : > { %v2351_v55 = vmul.f32 -1.442695, %v1385_v53 }
 0xaf1   : > { %v1393_v59 = vpop.permute.xlu1 %1392 }
 0xaf2   : > { %2662 = vpow2.f32 %v2351_v55 }
 0xafc   : > { %v2663_v56 = vpop.eup %2662 }
 0xafd   : > { %v1389_v57 = vadd.f32 1.0, %v2663_v56 }
 0xaff   : > { %2664 = vrcp.f32 %v1389_v57 }
 0xb09   : > { %v2665_v58 = vpop.eup %2664 }
 0xb0a   : > { %v1395_v62 = vmul.f32 %v2665_v58, %v1393_v59  ;;  %v1402_v11 = vsub.f32 1.0, %v2665_v58  ;;  %v1408_v13 = vmul.f32 %v2665_v58, %v3037_v20 }
 0xb0c   : > { %1397 = vrot.lane.b32.xlu0 %v1395_v62, %s2705_s24 }
 0xb4a   : > { %v1317_v0 = vpop.f32.mrb[20].mxu1 }
 0xb4b   : > { %v3165_v1 = vadd.f32 %v1317_v0, %v1228_v33  ;;  %v2510_v3 = vpop.f32.mrb[21].mxu1 }
 0xb4c   : > { %v1320_v4 = vpop.f32.mrb[22].mxu1 }
 0xb4d   : > { %v2511_v6 = vpop.f32.mrb[23].mxu1 }
 0xb7e   : > { %v1398_v8 = vpop.permute.xlu0 %1397 }
 0xb7f   : > { %v1400_v9 = vadd.f32 %v1398_v8, %v1376_v47 }
 0xb81   : > { %2666 = vtanh.f32 %v1400_v9 }
 0xb8b   : > { %v2667_v10 = vpop.eup %2666 }
 0xb8c   : > { %1404 = vrot.lane.b32.xlu1 %v2667_v10, %s2701_s26 }
 0xbfe   : > { %v1405_v12 = vpop.permute.xlu1 %1404 }
 0xbff   : > { %v1407_v15 = vmul.f32 %v1405_v12, %v1402_v11 }
 0xc01   : > { %v3169_v16 = vadd.f32 %v1408_v13, %v1407_v15 }
 0xc03   : > { %v1410_v17 = vpack.c.bf16 %v3169_v16, %v3169_v16 }
 0xc05   : > { %1412 = vrot.lane.b32.xlu0 %v1410_v17, %s2701_s26 }
 0xc77   : > { %v1413_v27 = vpop.permute.xlu0 %1412 }
 0xc78   : > { %2521 = vmatmul.mubr.msk.bf16.vlgmr.msra.gmra.mrb[24].mxu1 %vm807_vm5, %v1413_v27 }
 0xc79   : > { %2532 = vmatprep.mubr.msk.bf16.mxu1 %vm2698_vm1, %v2697_v45 }
 0xd4b   : > { %v1451_v18 = vpop.f32.mrb[24].mxu1 }
 0xd4c   : > { %v1452_v19 = vadd.f32 %v3051_v24, %v1451_v18  ;;  %v2522_v21 = vpop.f32.mrb[25].mxu1 }
 0xd4d   : > { %v1454_v22 = vpop.f32.mrb[26].mxu1 }
 0xd4e   : > { %v1457_v20 = vpack.c.bf16 %v1452_v19, %v1452_v19  ;;  %v2523_v23 = vpop.f32.mrb[27].mxu1 }
 0xd50   : > { %v1459_v25 = vsel %vm807_vm5, %v1457_v20, 0 }
 0xd51   : > { %2525 = vmatpush3.bf16.xpose.msra.mxu0 %v1459_v25 }
 0xd52   : > { %2536 = vmatprep.subr.bf16.mxu0 %v2697_v45 }
 0xd58   : > { %2527 = vmatmul.mubr.msk.bf16.vlgmr.msra.gmra.mrb[24].mxu0 %vm807_vm5, %v1413_v27 }
 0xd59   : > { %2537 = vmatpush3.bf16.msra.mxu0 %v3102_v2  ;;  %2540 = vmatprep.mubr.msk.bf16.mxu0 %vm2698_vm1, %v2697_v45 }
 0xd5a   : > { %2538 = vmatprep.subr.bf16.mxu0 %v2697_v45 }
 0xd5d   : > { %2539 = vmatpush3.bf16.msra.mxu0 %v3112_v5 }
 0xd5e   : > { %2552 = vmatprep.subr.bf16.mxu0 %v2697_v45 }
 0xe2b   : > { %v1495_v29 = vpop.f32.mrb[24].mxu0 }
 0xe2c   : > { %2668 = vtanh.f32 %v1495_v29  ;;  %v2528_v30 = vpop.f32.mrb[25].mxu0 }
 0xe2d   : > { %v1498_v32 = vpop.f32.mrb[26].mxu0 }
 0xe2e   : > { %v2529_v33 = vpop.f32.mrb[27].mxu0 }
 0xe36   : > { %v2669_v35 = vpop.eup %2668 }
 0xe37   : > { %v1502_v36 = vmax.f32 %v2669_v35, 0.0 }
 0xe39   : > { %v1503_v37 = vsel %vm807_vm5, %v1502_v36, -inf }
 0xe3a   : > { %1504 = vmax.xlane.f32.xlu1 %v1503_v37 }
 0xec7   : > { %v1505_v38 = vpop.xlane.xlu1 %1504 }
 0xec8   : > { %v1506_v39 = vsub.f32 %v1502_v36, %v1505_v38 }
 0xeca   : > { %v1507_v40 = vmul.f32 1.442695, %v1506_v39 }
 0xecc   : > { %2670 = vpow2.f32 %v1507_v40 }
 0xed6   : > { %v2671_v41 = vpop.eup %2670 }
 0xed7   : > { %v1509_v42 = vsel %vm807_vm5, %v2671_v41, 0.0 }
 0xed8   : > { %1510 = vadd.xlane.f32.xlu0 %v1509_v42 }
 0xeee   : > { %1518 = vrot.lane.b32.xlu0 %v2975_v28, %s2706_s20 }
 0xef2   : > { %1758 = vrot.lane.b32.xlu0 %v3012_v54, %s2707_s28 }
 0xf65   : > { %v1511_v43 = vpop.xlane.xlu0 %1510 }
 0xf66   : > { %2672 = vrcp.f32 %v1511_v43 }
 0xf69   : > { %v1519_v44 = vpop.permute.xlu0 %1518 }
 0xf6a   : > { %v1524_v46 = vsel %vm811_vm4, %v1519_v44, 0 }
 0xf6b   : > { %2531 = vmatpush3.bf16.msra.mxu1 %v1524_v46 }
 0xf6c   : > { %2544 = vmatprep.subr.bf16.mxu1 %v2697_v45 }
 0xf6d   : > { %v1759_v10 = vpop.permute.xlu0 %1758 }
 0xf6e   : > { %v1761_v11 = vsel %vm807_vm5, %v1759_v10, %v3169_v16 }
 0xf6f   : > { %v1762_v12 = vpack.c.bf16 %v1761_v11, %v1761_v11 }
 0xf70   : > { %v2673_v47 = vpop.eup %2672 }
 0xf71   : > { %v1513_v48 = vmul.f32 %v2673_v47, %v2671_v41 }
 0xf73   : > { %v1514_v49 = vadd.f32 %v3066_v51, %v1513_v48 }
 0xf75   : > { %v1515_v50 = vmul.f32 0.5, %v1514_v49 }
 0xf77   : > { %v1516_v52 = vpack.c.bf16 %v1515_v50, %v1515_v50 }
 0xf79   : > { %2533 = vmatmul.mubr.msk.bf16.vlgmr.msra.gmra.mrb[28].mxu1 %vm807_vm5, %v1516_v52 }
 0xf7a   : > { %2545 = vmatpush3.bf16.msra.mxu1 %v3075_v61  ;;  %2548 = vmatprep.mubr.msk.bf16.mxu1 %vm2698_vm1, %v2697_v45 }
 0xf7b   : > { %2546 = vmatprep.subr.bf16.mxu1 %v2697_v45 }
 0xf7e   : > { %2547 = vmatpush3.bf16.msra.mxu1 %v3085_v63 }
 0xf7f   : > { %2558 = vmatprep.subr.bf16.mxu1 %v2697_v45 }
 0xf81   : > { %2549 = vmatmul.mubr.msk.bf16.vlgmr.msra.gmra.mrb[32].mxu1 %vm720_vm2, %v1519_v44 }
 0xf82   : > { %2559 = vmatpush3.bf16.msra.mxu1 %v3141_v26  ;;  %2562 = vmatprep.mubr.msk.bf16.mxu1 %vm2698_vm1, %v2697_v45 }
 0xf83   : > { %2560 = vmatprep.subr.bf16.mxu1 %v2697_v45 }
 0xf86   : > { %2561 = vmatpush3.bf16.msra.mxu1 %v3151_v31 }
 0xf87   : > { %2572 = vmatprep.subr.bf16.mxu1 %v2697_v45 }
0x104c   : > { %v1560_v54 = vpop.f32.mrb[28].mxu1 }
0x104d   : > { %v1566_v53 = vmul.f32 0.95, %v1560_v54  ;;  %v2534_v55 = vpop.f32.mrb[29].mxu1 }
0x104e   : > { %v1563_v56 = vpop.f32.mrb[30].mxu1 }
0x104f   : > { %1568 = vrot.lane.b32.xlu1 %v1566_v53, %s3344_s21  ;;  %v2535_v57 = vpop.f32.mrb[31].mxu1 }
0x1054   : > { %v1655_v58 = vpop.f32.mrb[32].mxu1 }
0x1055   : > { %v2550_v59 = vpop.f32.mrb[33].mxu1 }
0x1056   : > { %v1658_v62 = vpop.f32.mrb[34].mxu1 }
0x1057   : > { %v2551_v0 = vpop.f32.mrb[35].mxu1 }
0x10c1   : > { %v1569_v3 = vpop.permute.xlu1 %1568 }
0x10c2   : > { %v1571_v4 = vadd.f32 %v1569_v3, %v3117_v7 }
0x10c4   : > { %v1572_v6 = vpack.c.bf16 %v1571_v4, %v1571_v4 }
0x10c6   : > { %1574 = vrot.lane.b32.xlu1 %v1572_v6, %s2706_s20 }
0x1138   : > { %v1575_v8 = vpop.permute.xlu1 %1574 }
0x1139   : > { %v1661_v9 = vsel %vm811_vm4, %v1575_v8, 0  ;;  %2541 = vmatmul.mubr.msk.bf16.vlgmr.msra.gmra.mrb[28].mxu0 %vm720_vm2, %v1575_v8 }
0x113a   : > { %2553 = vmatpush3.bf16.msra.mxu0 %v1661_v9  ;;  %2554 = vmatprep.mubr.msk.bf16.mxu0 %vm2698_vm1, %v2697_v45 }
0x113b   : > { %2566 = vmatprep.subr.bf16.mxu0 %v2697_v45 }
0x1141   : > { %2555 = vmatmul.mubr.msk.bf16.vlgmr.msra.gmra.mrb[32].mxu0 %vm807_vm5, %v1516_v52 }
0x1142   : > { %2567 = vmatpush3.bf16.msra.mxu0 %v2996_v34  ;;  %2568 = vmatprep.mubr.msk.bf16.mxu0 %vm2698_vm1, %v2697_v45 }
0x1143   : > { %2578 = vmatprep.subr.bf16.mxu0 %v2697_v45 }
0x1149   : > { %2569 = vmatmul.mubr.msk.bf16.vlgmr.msra.gmra.mrb[36].mxu0 %vm794_vm6, %v1762_v12 }
0x114a   : > { %2580 = vmatprep.mubr.msk.bf16.mxu0 %vm2698_vm1, %v2697_v45 }
0x120c   : > { %v1613_v13 = vpop.f32.mrb[28].mxu0 }
0x120d   : > { %v1656_v15 = vadd.f32 %v1655_v58, %v1613_v13  ;;  %v2542_v17 = vpop.f32.mrb[29].mxu0 }
0x120e   : > { %v1616_v27 = vpop.f32.mrb[30].mxu0 }
0x120f   : > { %v2543_v18 = vpop.f32.mrb[31].mxu0 }
0x1214   : > { %v1697_v34 = vpop.f32.mrb[32].mxu0 }
0x1215   : > { %v2556_v19 = vpop.f32.mrb[33].mxu0  ;;  %v1703_v32 = vmul.f32 0.95, %v1697_v34 }
0x1216   : > { %v1700_v21 = vpop.f32.mrb[34].mxu0 }
0x1217   : > { %v2557_v22 = vpop.f32.mrb[35].mxu0 }
0x121c   : > { %v1800_v20 = vpop.f32.mrb[36].mxu0 }
0x121d   : > { %v1801_v23 = vadd.f32 %v3022_v60, %v1800_v20  ;;  %v2570_v25 = vpop.f32.mrb[37].mxu0 }
0x121e   : > { %v1803_v29 = vpop.f32.mrb[38].mxu0 }
0x121f   : > { %1817 = vrot.lane.b32.xlu0 %v1801_v23, %s2704_s23  ;;  %1807 = vrot.lane.b32.xlu1 %v1801_v23, %s2700_s25  ;;  %v2571_v30 = vpop.f32.mrb[39].mxu0 }
0x1223   : > { %1705 = vrot.lane.b32.xlu0 %v1703_v32, %s3344_s21 }
0x1291   : > { %v1818_v33 = vpop.permute.xlu0 %1817  ;;  %v1808_v35 = vpop.permute.xlu1 %1807 }
0x1292   : > { %v1810_v36 = vadd.f32 %v1808_v35, %v1801_v23 }
0x1294   : > { %v2360_v37 = vmul.f32 -1.442695, %v1810_v36 }
0x1295   : > { %v1706_v38 = vpop.permute.xlu0 %1705 }
0x1296   : > { %2674 = vpow2.f32 %v2360_v37  ;;  %v1708_v39 = vadd.f32 %v1706_v38, %v3117_v7 }
0x1298   : > { %v1709_v40 = vpack.c.bf16 %v1708_v39, %v1708_v39 }
0x129a   : > { %1711 = vrot.lane.b32.xlu0 %v1709_v40, %s2706_s20  ;;  %s3345_s20 = sld [smem:[#allocation3_spill]] }
0x12a0   : > { %v2675_v60 = vpop.eup %2674  ;;  %s590_s22 = scalar_lea.vmem %s3345_s20, %s2893_s29 }
0x12a1   : > { %v1814_v41 = vadd.f32 1.0, %v2675_v60 }
0x12a3   : > { %2676 = vrcp.f32 %v1814_v41 }
0x12ad   : > { %v2677_v42 = vpop.eup %2676 }
0x12ae   : > { %v1820_v43 = vmul.f32 %v2677_v42, %v1818_v33  ;;  %v1827_v49 = vsub.f32 1.0, %v2677_v42  ;;  %v1833_v52 = vmul.f32 %v2677_v42, %v3169_v16 }
0x12b0   : > { %1822 = vrot.lane.b32.xlu1 %v1820_v43, %s2705_s24 }
0x130c   : > { %v1712_v44 = vpop.permute.xlu0 %1711 }
0x130d   : > { %2563 = vmatmul.mubr.msk.bf16.vlgmr.msra.gmra.mrb[36].mxu1 %vm720_vm2, %v1712_v44 }
0x130e   : > { %2573 = vmatpush3.bf16.msra.mxu1 %v3032_v14  ;;  %2574 = vmatprep.mubr.msk.bf16.mxu1 %vm2698_vm1, %v2697_v45 }
0x130f   : > { %2584 = vmatprep.subr.bf16.mxu1 %v2697_v45 }
0x1322   : > { %v1823_v46 = vpop.permute.xlu1 %1822 }
0x1323   : > { %v1825_v47 = vadd.f32 %v1823_v46, %v1801_v23 }
0x1325   : > { %2678 = vtanh.f32 %v1825_v47 }
0x132f   : > { %v2679_v48 = vpop.eup %2678 }
0x1330   : > { %1829 = vrot.lane.b32.xlu1 %v2679_v48, %s2701_s26 }
0x13a2   : > { %v1830_v50 = vpop.permute.xlu1 %1829 }
0x13a3   : > { %v1832_v54 = vmul.f32 %v1830_v50, %v1827_v49 }
0x13a5   : > { %v1834_v53 = vadd.f32 %v1833_v52, %v1832_v54  ;;  %v2349_v52 = vld [vmem:[%s3332_s14] ss:$0 sm:$0xff] }
0x13a7   : > { %v1835_v55 = vpack.c.bf16 %v1834_v53, %v1834_v53 }
0x13a9   : > { %1837 = vrot.lane.b32.xlu1 %v1835_v55, %s2701_s26 }
0x13e0   : > { %v1750_v14 = vpop.f32.mrb[36].mxu1 }
0x13e1   : > { %v3243_v56 = vadd.f32 %v1750_v14, %v1656_v15  ;;  %v2564_v57 = vpop.f32.mrb[37].mxu1 }
0x13e2   : > { %v1753_v58 = vpop.f32.mrb[38].mxu1 }
0x13e3   : > { %v2565_v59 = vpop.f32.mrb[39].mxu1 }
0x141b   : > { %v1838_v62 = vpop.permute.xlu1 %1837 }
0x141c   : > { %2575 = vmatmul.mubr.msk.bf16.vlgmr.msra.gmra.mrb[40].mxu1 %vm807_vm5, %v1838_v62 }
0x141d   : > { %2586 = vmatprep.mubr.msk.bf16.mxu1 %vm2698_vm1, %v2697_v45 }
0x14ef   : > { %v1876_v0 = vpop.f32.mrb[40].mxu1 }
0x14f0   : > { %v1877_v16 = vadd.f32 %v3051_v24, %v1876_v0  ;;  %v2576_v3 = vpop.f32.mrb[41].mxu1 }
0x14f1   : > { %v1879_v4 = vpop.f32.mrb[42].mxu1  ;;  %v2193_v3 = vld [vmem:[%s590_s22] sm:$0xff] }
0x14f2   : > { %v1882_v6 = vpack.c.bf16 %v1877_v16, %v1877_v16  ;;  %v2577_v8 = vpop.f32.mrb[43].mxu1 }
0x14f4   : > { %v1884_v9 = vsel %vm807_vm5, %v1882_v6, 0 }
0x14f5   : > { %2579 = vmatpush3.bf16.xpose.msra.mxu0 %v1884_v9 }
0x14f6   : > { %2590 = vmatprep.subr.bf16.mxu0 %v2697_v45 }
0x14fc   : > { %2581 = vmatmul.mubr.msk.bf16.vlgmr.msra.gmra.mrb[40].mxu0 %vm807_vm5, %v1838_v62 }
0x14fd   : > { %2591 = vmatpush3.bf16.msra.mxu0 %v3102_v2  ;;  %2594 = vmatprep.mubr.msk.bf16.mxu0 %vm2698_vm1, %v2697_v45 }
0x14fe   : > { %2592 = vmatprep.subr.bf16.mxu0 %v2697_v45 }
0x1501   : > { %2593 = vmatpush3.bf16.msra.mxu0 %v3112_v5 }
0x1502   : > { %2606 = vmatprep.subr.bf16.mxu0 %v2697_v45 }
0x15cf   : > { %v1920_v24 = vpop.f32.mrb[40].mxu0 }
0x15d0   : > { %2680 = vtanh.f32 %v1920_v24  ;;  %v2582_v10 = vpop.f32.mrb[41].mxu0 }
0x15d1   : > { %v1923_v11 = vpop.f32.mrb[42].mxu0 }
0x15d2   : > { %v2583_v12 = vpop.f32.mrb[43].mxu0 }
0x15da   : > { %v2681_v13 = vpop.eup %2680 }
0x15db   : > { %v1927_v15 = vmax.f32 %v2681_v13, 0.0 }
0x15dd   : > { %v1928_v17 = vsel %vm807_vm5, %v1927_v15, -inf }
0x15de   : > { %1929 = vmax.xlane.f32.xlu0 %v1928_v17 }
0x15f4   : > { %1942 = vrot.lane.b32.xlu0 %v2975_v28, %s2707_s28 }
0x166b   : > { %v1930_v2 = vpop.xlane.xlu0 %1929 }
0x166c   : > { %v1931_v27 = vsub.f32 %v1927_v15, %v1930_v2 }
0x166e   : > { %v1932_v18 = vmul.f32 1.442695, %v1931_v27 }
0x166f   : > { %v1943_v34 = vpop.permute.xlu0 %1942 }
0x1670   : > { %2682 = vpow2.f32 %v1932_v18  ;;  %v1948_v5 = vsel %vm811_vm4, %v1943_v34, 0 }
0x1671   : > { %2585 = vmatpush3.bf16.msra.mxu1 %v1948_v5 }
0x1672   : > { %2598 = vmatprep.subr.bf16.mxu1 %v2697_v45 }
0x167a   : > { %v2683_v19 = vpop.eup %2682 }
0x167b   : > { %v1934_v21 = vsel %vm807_vm5, %v2683_v19, 0.0 }
0x167c   : > { %1935 = vadd.xlane.f32.xlu1 %v1934_v21 }
0x1709   : > { %v1936_v22 = vpop.xlane.xlu1 %1935 }
0x170a   : > { %2684 = vrcp.f32 %v1936_v22 }
0x1714   : > { %v2685_v20 = vpop.eup %2684 }
0x1715   : > { %v1938_v23 = vmul.f32 %v2685_v20, %v2683_v19 }
0x1717   : > { %v1939_v28 = vadd.f32 %v3066_v51, %v1938_v23 }
0x1719   : > { %v1940_v25 = vmul.f32 0.5, %v1939_v28 }
0x171b   : > { %v1941_v29 = vpack.c.bf16 %v1940_v25, %v1940_v25 }
0x171d   : > { %2587 = vmatmul.mubr.msk.bf16.vlgmr.msra.gmra.mrb[44].mxu1 %vm807_vm5, %v1941_v29 }
0x171e   : > { %2599 = vmatpush3.bf16.msra.mxu1 %v3075_v61  ;;  %2602 = vmatprep.mubr.msk.bf16.mxu1 %vm2698_vm1, %v2697_v45 }
0x171f   : > { %2600 = vmatprep.subr.bf16.mxu1 %v2697_v45 }
0x1722   : > { %2601 = vmatpush3.bf16.msra.mxu1 %v3085_v63 }
0x1723   : > { %2612 = vmatprep.subr.bf16.mxu1 %v2697_v45 }
0x1725   : > { %2603 = vmatmul.mubr.msk.bf16.vlgmr.msra.gmra.mrb[48].mxu1 %vm720_vm2, %v1943_v34 }
0x1726   : > { %2613 = vmatpush3.bf16.msra.mxu1 %v3141_v26  ;;  %2616 = vmatprep.mubr.msk.bf16.mxu1 %vm2698_vm1, %v2697_v45 }
0x1727   : > { %2614 = vmatprep.subr.bf16.mxu1 %v2697_v45 }
0x172a   : > { %2615 = vmatpush3.bf16.msra.mxu1 %v3151_v31 }
0x17f0   : > { %v1984_v51 = vpop.f32.mrb[44].mxu1 }
0x17f1   : > { %v1990_v61 = vmul.f32 0.95, %v1984_v51  ;;  %v2588_v30 = vpop.f32.mrb[45].mxu1 }
0x17f2   : > { %v1987_v32 = vpop.f32.mrb[46].mxu1 }
0x17f3   : > { %1992 = vrot.lane.b32.xlu1 %v1990_v61, %s2707_s28  ;;  %v2589_v63 = vpop.f32.mrb[47].mxu1  ;;  %v2220_v61 = vld [vmem:[%s3333_s15] sm:$0xff] }
0x17f4   : > { %v2222_v32 = vld [vmem:[%s3334_s16] sm:$0xff] }
0x17f8   : > { %v2079_v33 = vpop.f32.mrb[48].mxu1 }
0x17f9   : > { %v2604_v35 = vpop.f32.mrb[49].mxu1 }
0x17fa   : > { %v2082_v36 = vpop.f32.mrb[50].mxu1 }
0x17fb   : > { %v2605_v37 = vpop.f32.mrb[51].mxu1 }
0x1865   : > { %v1993_v38 = vpop.permute.xlu1 %1992 }
0x1866   : > { %v1995_v26 = vadd.f32 %v1993_v38, %v3117_v7 }
0x1868   : > { %v1996_v39 = vpack.c.bf16 %v1995_v26, %v1995_v26 }
0x186a   : > { %1998 = vrot.lane.b32.xlu0 %v1996_v39, %s2707_s28 }
0x18dc   : > { %v1999_v40 = vpop.permute.xlu0 %1998 }
0x18dd   : > { %v2085_v31 = vsel %vm811_vm4, %v1999_v40, 0  ;;  %2595 = vmatmul.mubr.msk.bf16.vlgmr.msra.gmra.mrb[44].mxu0 %vm720_vm2, %v1999_v40 }
0x18de   : > { %2607 = vmatpush3.bf16.msra.mxu0 %v2085_v31  ;;  %2608 = vmatprep.mubr.msk.bf16.mxu0 %vm2698_vm1, %v2697_v45  ;;  %v1757_v45 = vadd.f32 %v2349_v52, %v3243_v56 }
0x18e5   : > { %2609 = vmatmul.mubr.msk.bf16.vlgmr.msra.gmra.mrb[48].mxu0 %vm807_vm5, %v1941_v29 }
0x19b0   : > { %v2037_v60 = vpop.f32.mrb[44].mxu0 }
0x19b1   : > { %v2080_v41 = vadd.f32 %v2079_v33, %v2037_v60  ;;  %v2596_v42 = vpop.f32.mrb[45].mxu0 }
0x19b2   : > { %v2040_v43 = vpop.f32.mrb[46].mxu0 }
0x19b3   : > { %v2597_v44 = vpop.f32.mrb[47].mxu0 }
0x19b8   : > { %v2121_v46 = vpop.f32.mrb[48].mxu0 }
0x19b9   : > { %v2127_v47 = vmul.f32 0.95, %v2121_v46  ;;  %v2610_v48 = vpop.f32.mrb[49].mxu0 }
0x19ba   : > { %v2124_v49 = vpop.f32.mrb[50].mxu0 }
0x19bb   : > { %2129 = vrot.lane.b32.xlu1 %v2127_v47, %s2707_s28  ;;  %v2611_v50 = vpop.f32.mrb[51].mxu0 }
0x19bf   : > { %2183 = vrot.lane.b32.xlu1 %v1757_v45, %s3344_s21  ;;  %s594_s21 = scalar_lea.vmem %s3335_s17, %s2893_s29 }
0x1a2d   : > { %v2130_v54 = vpop.permute.xlu1 %2129 }
0x1a2e   : > { %v2132_v53 = vadd.f32 %v2130_v54, %v3117_v7  ;;  %v1331_v7 = vadd.f32 %v2349_v52, %v3165_v1 }
0x1a30   : > { %v2133_v55 = vpack.c.bf16 %v2132_v53, %v2132_v53 }
0x1a31   : > { %v2184_v56 = vpop.permute.xlu1 %2183 }
0x1a32   : > { %2135 = vrot.lane.b32.xlu0 %v2133_v55, %s2707_s28  ;;  %v2190_v4 = vsel %vm720_vm2, %v1331_v7, %v2184_v56 }
0x1aa4   : > { %v2136_v14 = vpop.permute.xlu0 %2135 }
0x1aa5   : > { %2617 = vmatmul.mubr.msk.bf16.vlgmr.msra.gmra.mrb[52].mxu1 %vm720_vm2, %v2136_v14 }
0x1b78   : > { %v2174_v57 = vpop.f32.mrb[52].mxu1 }
0x1b79   : > { %v2180_v58 = vadd.f32 %v2174_v57, %v2080_v41  ;;  %v2618_v59 = vpop.f32.mrb[53].mxu1 }
0x1b7a   : > { %v2177_v62 = vpop.f32.mrb[54].mxu1 }
0x1b7b   : > { %v2181_v0 = vadd.f32 %v2349_v52, %v2180_v58  ;;  %v2619_v16 = vpop.f32.mrb[55].mxu1 }
0x1b7d   : > { %2187 = vrot.lane.b32.xlu0 %v2181_v0, %s2707_s28 }
0x1bef   : > { %v2188_v6 = vpop.permute.xlu0 %2187 }
0x1bf0   : > { %v2192_v8 = vsel %vm2191_vm8, %v2190_v4, %v2188_v6 }
0x1bf1   : > { %v2194_v9 = vadd.f32 %v2193_v3, %v2192_v8 }
0x1bf3   : > { %v2195_v24 = vsel %vm750_vm3, %v2194_v9, 0.0 }
0x1bf4   : > { %2196 = vadd.xlane.f32.xlu1 %v2195_v24 }
0x1c81   : > { %v2197_v10 = vpop.xlane.xlu1 %2196 }
0x1c82   : > { %v2198_v11 = vrot.slane %v2197_v10, 4 }
0x1c84   : > { %v2199_v12 = vadd.f32 %v2198_v11, %v2197_v10 }
0x1c86   : > { %v2200_v13 = vrot.slane %v2199_v12, 2 }
0x1c88   : > { %v2201_v15 = vadd.f32 %v2200_v13, %v2199_v12 }
0x1c8a   : > { %v2202_v17 = vrot.slane %v2201_v15, 1 }
0x1c8c   : > { %v2203_v2 = vadd.f32 %v2202_v17, %v2201_v15 }
0x1c8e   : > { %v2204_v27 = vmul.f32 0.0013020834, %v2203_v2 }
0x1c90   : > { %v2205_v18 = vsub.f32 %v2194_v9, %v2204_v27 }
0x1c92   : > { %v2206_v1 = vmul.f32 %v2205_v18, %v2205_v18 }
0x1c94   : > { %v2207_v34 = vsel %vm750_vm3, %v2206_v1, 0.0 }
0x1c95   : > { %2208 = vadd.xlane.f32.xlu0 %v2207_v34 }
0x1d22   : > { %v2209_v5 = vpop.xlane.xlu0 %2208 }
0x1d23   : > { %v2210_v19 = vrot.slane %v2209_v5, 4 }
0x1d25   : > { %v2211_v21 = vadd.f32 %v2210_v19, %v2209_v5 }
0x1d27   : > { %v2212_v22 = vrot.slane %v2211_v21, 2 }
0x1d29   : > { %v2213_v20 = vadd.f32 %v2212_v22, %v2211_v21 }
0x1d2b   : > { %v2214_v23 = vrot.slane %v2213_v20, 1 }
0x1d2d   : > { %v2215_v28 = vadd.f32 %v2214_v23, %v2213_v20 }
0x1d2f   : > { %v2216_v25 = vmul.f32 0.0013020834, %v2215_v28 }
0x1d31   : > { %v2217_v29 = vadd.f32 1e-05, %v2216_v25 }
0x1d33   : > { %2686 = vrsqrt.f32 %v2217_v29 }
0x1d3d   : > { %v2687_v51 = vpop.eup %2686 }
0x1d3e   : > { %v2219_v30 = vmul.f32 %v2687_v51, %v2205_v18 }
0x1d40   : > { %v2221_v63 = vmul.f32 %v2220_v61, %v2219_v30 }
0x1d42   : > { %v2223_v33 = vadd.f32 %v2222_v32, %v2221_v63 }
0x1d44   : > { %2224 = vst.msk [vmem:[%s594_s21] sm:$0xff] %vm750_vm3, %v2223_v33 }
0x1d45 PF: > { %s29_s27 = sadd.s32 1, %s2694_s27  }
0x1d46   : > { %p26_p4 = scmp.ge.s32.totalorder %s29_s27, 4  }
0x1d48   :  { %28 = sbr.rel (!%p26_p4) target bundleno = 4 (0x4), region = 133 }

// kernel: _lambda_.5
= control target key start
LH: loop header
LB: loop body
LE: loop exit
PB: predicated region body
PF: predicated region fallthrough
CT: control target
= control target key end

     0   :  { %s3327_s27 = smov 0   ;;  %s3935_s0 = inlined_call_operand.vmem [shape: f32[2,8,128], index: 0, kind: input, shape index: {}]   ;;  %s3936_s1 = inlined_call_operand.vmem [shape: f32[2,8,112], index: 1, kind: input, shape index: {}]   ;;  %s3937_s2 = inlined_call_operand.vmem [shape: f32[8,8], index: 2, kind: input, shape index: {}]   ;;  %s3938_s3 = inlined_call_operand.vmem [shape: f32[8,8], index: 3, kind: input, shape index: {}]   ;;  %s3939_s4 = inlined_call_operand.vmem [shape: f32[1,8], index: 4, kind: input, shape index: {}]   ;;  %s3940_s5 = inlined_call_operand.vmem [shape: f32[128,224], index: 5, kind: input, shape index: {}]   ;;  %s3941_s6 = inlined_call_operand.vmem [shape: f32[1,224], index: 6, kind: input, shape index: {}]   ;;  %s3942_s7 = inlined_call_operand.vmem [shape: f32[112,16], index: 7, kind: input, shape index: {}]   ;;  %s3943_s8 = inlined_call_operand.vmem [shape: f32[1,16], index: 8, kind: input, shape index: {}]   ;;  %s3944_s9 = inlined_call_operand.vmem [shape: f32[16,48], index: 9, kind: input, shape index: {}]   ;;  %s3945_s10 = inlined_call_operand.vmem [shape: f32[1,48], index: 10, kind: input, shape index: {}]   ;;  %s3946_s11 = inlined_call_operand.vmem [shape: f32[8,8], index: 11, kind: input, shape index: {}]   ;;  %s3947_s12 = inlined_call_operand.vmem [shape: f32[1,8], index: 12, kind: input, shape index: {}]   ;;  %s3948_s13 = inlined_call_operand.vmem [shape: f32[96,32], index: 13, kind: input, shape index: {}]   ;;  %s3949_s14 = inlined_call_operand.vmem [shape: f32[1,32], index: 14, kind: input, shape index: {}]   ;;  %s3950_s15 = inlined_call_operand.vmem [shape: f32[8,112], index: 15, kind: input, shape index: {}]   ;;  %s3951_s16 = inlined_call_operand.vmem [shape: f32[8,112], index: 16, kind: input, shape index: {}]   ;;  %s3952_s17 = inlined_call_operand.vmem [shape: f32[2,8,112], index: 17, kind: output, shape index: {0}]   ;;  %s3953_s18 = inlined_call_operand.vmem [shape: f32[2,8,16], index: 18, kind: output, shape index: {1}]  }
   0x1   :  { %3954 = sst [smem:[#allocation2_spill]] %s3935_s0 }
   0x2   :  { %3955 = sst [smem:[#allocation3_spill]] %s3936_s1 }
   0x3   :  { %3956 = sst [smem:[#allocation4_spill]] %s3937_s2 }
   0x4 LB: > { %s2758_s28 = sadd.s32 4294967295, %s3218_s27   ;;  %p2762_p0 = scmp.ge.s32.totalorder %s3218_s27, 1  ;;  %s3218_s27 = sphi %s3327_s27, %s29_s27  }
   0x5   : > { %p523_p1 = scmp.lt.s32.totalorder %s3218_s27, 3 }
   0x7   : > { %p524_p2 = pnand %p2762_p0, %p523_p1 }
   0x8   : > { %v602_v0 = vld [vmem:[%s3940_s5 + $0x8] sm:$0xff] (!%p524_p2)  ;;  %v604_v1 = vld [vmem:[%s3940_s5 + $0x18] sm:$0xff] (!%p524_p2)  ;;  %v601_v2 = vld [vmem:[%s3940_s5] sm:$0xff] (!%p524_p2)  ;;  %v3220_v7 = vmov (!%p524_p2), 0   ;;  %p583_p3 = scmp.lt.s32.totalorder (!%p524_p2), %s2758_s28, 1  ;;  %s3957_s0 = sld [smem:[#allocation2_spill]] (!%p524_p2) }
   0x9   : > { %527 = sbr.rel (%p524_p2) target bundleno = 9453 (0x24ed), region = 88  ;;  %v635_v3 = vpack.c.bf16 (!%p524_p2), %v604_v1, %v602_v0  ;;  %v603_v4 = vld [vmem:[%s3940_s5 + $0x10] sm:$0xff] (!%p524_p2)  ;;  %v606_v5 = vld [vmem:[%s3940_s5 + $0x28] sm:$0xff] (!%p524_p2)  ;;  %v608_v6 = vld [vmem:[%s3940_s5 + $0x38] sm:$0xff] (!%p524_p2)  ;;  %694 = vmatprep.mubr.bf16.mxu0 (!%p524_p2), %v3220_v7  ;;  %v3221_v51 = vmov (!%p524_p2), 0.0   ;;  %vm3222_vm0 = vmmov (!%p524_p2), 0  }
   0xa   : > { %v634_v8 = vpack.c.bf16 (!%p524_p2), %v603_v4, %v601_v2  ;;  %v637_v9 = vpack.c.bf16 (!%p524_p2), %v608_v6, %v606_v5  ;;  %v605_v10 = vld [vmem:[%s3940_s5 + $0x20] sm:$0xff] (!%p524_p2)  ;;  %v607_v11 = vld [vmem:[%s3940_s5 + $0x30] sm:$0xff] (!%p524_p2)  ;;  %v610_v12 = vld [vmem:[%s3940_s5 + $0x48] sm:$0xff] (!%p524_p2)  ;;  %2898 = vmatprep.subr.bf16.mxu1 (!%p524_p2), %v3221_v51  ;;  %2912 = vmatprep.mubr.msk.bf16.mxu1 (!%p524_p2), %vm3222_vm0, %v3221_v51  ;;  %s3223_s22 = smov (!%p524_p2), 16   ;;  %vm722_vm1 = vcmask (!%p524_p2), 130048   ;;  %vm755_vm2 = vcmask (!%p524_p2), 916480  }
   0xb   : > { %662 = vmatprep.subr.bf16.mxu0 (!%p524_p2), %v635_v3  ;;  %v612_v13 = vld [vmem:[%s3940_s5 + $0x58] sm:$0xff] (!%p524_p2)  ;;  %v636_v14 = vpack.c.bf16 (!%p524_p2), %v607_v11, %v605_v10  ;;  %v609_v16 = vld [vmem:[%s3940_s5 + $0x40] sm:$0xff] (!%p524_p2)  ;;  %v611_v17 = vld [vmem:[%s3940_s5 + $0x50] sm:$0xff] (!%p524_p2)  ;;  %v652_v3 = vlaneseq (!%p524_p2)  ;;  %vm815_vm3 = vcmask (!%p524_p2), 1043456   ;;  %s3224_s25 = smov (!%p524_p2), 104   ;;  %s3225_s26 = smov (!%p524_p2), 120  }
   0xc   : > { %663 = vmatpush1.bf16.msra.mxu0 (!%p524_p2), %v634_v8  ;;  %v639_v15 = vpack.c.bf16 (!%p524_p2), %v612_v13, %v610_v12  ;;  %v614_v18 = vld [vmem:[%s3940_s5 + $0x68] sm:$0xff] (!%p524_p2)  ;;  %v616_v19 = vld [vmem:[%s3940_s5 + $0x78] sm:$0xff] (!%p524_p2)  ;;  %v638_v20 = vpack.c.bf16 (!%p524_p2), %v611_v17, %v609_v16  ;;  %v613_v22 = vld [vmem:[%s3940_s5 + $0x60] sm:$0xff] (!%p524_p2)  ;;  %vm811_vm4 = vcmask (!%p524_p2), 64512   ;;  %s3227_s1 = smov (!%p524_p2), 8   ;;  %s3228_s23 = smov (!%p524_p2), 88  }
   0xd   : > { %664 = vmatprep.subr.bf16.mxu0 (!%p524_p2), %v637_v9  ;;  %v641_v21 = vpack.c.bf16 (!%p524_p2), %v616_v19, %v614_v18  ;;  %v615_v23 = vld [vmem:[%s3940_s5 + $0x70] sm:$0xff] (!%p524_p2)  ;;  %v618_v24 = vld [vmem:[%s3940_s5 + $0x88] sm:$0xff] (!%p524_p2)  ;;  %v620_v25 = vld [vmem:[%s3940_s5 + $0x98] sm:$0xff] (!%p524_p2)  ;;  %v3479_v4 = vshrl.u32 (!%p524_p2), %v652_v3, 7  ;;  %vm1152_vm6 = vcmask (!%p524_p2), 261120   ;;  %s3959_s20 = sld [smem:[#allocation3_spill]] (!%p524_p2) }
   0xe   : > { %v640_v26 = vpack.c.bf16 (!%p524_p2), %v615_v23, %v613_v22  ;;  %v643_v27 = vpack.c.bf16 (!%p524_p2), %v620_v25, %v618_v24  ;;  %v617_v28 = vld [vmem:[%s3940_s5 + $0x80] sm:$0xff] (!%p524_p2)  ;;  %v619_v29 = vld [vmem:[%s3940_s5 + $0x90] sm:$0xff] (!%p524_p2)  ;;  %v622_v30 = vld [vmem:[%s3940_s5 + $0xa8] sm:$0xff] (!%p524_p2)  ;;  %vm2626_vm7 = vcmask (!%p524_p2), 523264   ;;  %vm2628_vm8 = vcmask (!%p524_p2), 785408  }
   0xf   : > { %v624_v31 = vld [vmem:[%s3940_s5 + $0xb8] sm:$0xff] (!%p524_p2)  ;;  %v642_v32 = vpack.c.bf16 (!%p524_p2), %v619_v29, %v617_v28  ;;  %v621_v34 = vld [vmem:[%s3940_s5 + $0xa0] sm:$0xff] (!%p524_p2)  ;;  %v623_v35 = vld [vmem:[%s3940_s5 + $0xb0] sm:$0xff] (!%p524_p2)  ;;  %v654_v5 = vsub.s32 (!%p524_p2), 0, %v3479_v4  ;;  %v658_v7 = vsub.s32 (!%p524_p2), 1, %v3479_v4 }
  0x10   : > { %665 = vmatpush1.bf16.msra.mxu0 %v636_v14  ;;  %v645_v33 = vpack.c.bf16 %v624_v31, %v622_v30  ;;  %v626_v36 = vld [vmem:[%s3940_s5 + $0xc8] sm:$0xff]  ;;  %v628_v37 = vld [vmem:[%s3940_s5 + $0xd8] sm:$0xff]  ;;  %s3961_s28 = smov (!%p583_p3, %s2758_s28), 1  ;;  %v644_v38 = vpack.c.bf16 %v623_v35, %v621_v34  ;;  %v625_v40 = vld [vmem:[%s3940_s5 + $0xc0] sm:$0xff] }
  0x11   : > { %666 = vmatprep.subr.bf16.mxu0 %v639_v15  ;;  %v647_v39 = vpack.c.bf16 %v628_v37, %v626_v36  ;;  %v627_v41 = vld [vmem:[%s3940_s5 + $0xd0] sm:$0xff]  ;;  %v630_v42 = vld [vmem:[%s3940_s5 + $0xe8] sm:$0xff]  ;;  %v632_v43 = vld [vmem:[%s3940_s5 + $0xf8] sm:$0xff]  ;;  %s3429_s2 = sshll.u32 %s3961_s28, 3  ;;  %s3230_s28 = smov 64  }
  0x12   : > { %v646_v44 = vpack.c.bf16 %v627_v41, %v625_v40  ;;  %v649_v45 = vpack.c.bf16 %v632_v43, %v630_v42  ;;  %v629_v46 = vld [vmem:[%s3940_s5 + $0xe0] sm:$0xff]  ;;  %v631_v47 = vld [vmem:[%s3940_s5 + $0xf0] sm:$0xff]  ;;  %s586_s19 = scalar_lea.vmem %s3957_s0, %s3429_s2  ;;  %v727_v53 = vld [vmem:[%s3942_s7 + $0x8] sm:$0xff]  ;;  %s3958_s0 = sld [smem:[#allocation4_spill]] }
  0x13   : > { %v648_v48 = vpack.c.bf16 %v631_v47, %v629_v46  ;;  %v600_v49 = vld [vmem:[%s586_s19] sm:$0xff]  ;;  %v728_v54 = vld [vmem:[%s3942_s7 + $0x10] sm:$0xff]  ;;  %v729_v56 = vld [vmem:[%s3942_s7 + $0x18] sm:$0xff]  ;;  %s3226_s19 = smov 112   ;;  %s590_s21 = scalar_lea.vmem %s3959_s20, %s3429_s2 }
  0x14   : > { %667 = vmatpush1.bf16.msra.mxu0 %v638_v20  ;;  %v633_v50 = vpack.c.bf16 %v600_v49, %v600_v49  ;;  %v726_v52 = vld [vmem:[%s3942_s7] sm:$0xff]  ;;  %v742_v57 = vpack.c.bf16 %v729_v56, %v728_v54  ;;  %v731_v59 = vld [vmem:[%s3942_s7 + $0x28] sm:$0xff]  ;;  %v732_v61 = vld [vmem:[%s3942_s7 + $0x30] sm:$0xff] }
  0x15   : > { %668 = vmatprep.subr.bf16.mxu0 %v641_v21  ;;  %v741_v55 = vpack.c.bf16 %v727_v53, %v726_v52  ;;  %v730_v58 = vld [vmem:[%s3942_s7 + $0x20] sm:$0xff]  ;;  %v733_v62 = vld [vmem:[%s3942_s7 + $0x38] sm:$0xff]  ;;  %v735_v1 = vld [vmem:[%s3942_s7 + $0x48] sm:$0xff] }
  0x16   : > { %v743_v60 = vpack.c.bf16 %v731_v59, %v730_v58  ;;  %v744_v63 = vpack.c.bf16 %v733_v62, %v732_v61  ;;  %v734_v0 = vld [vmem:[%s3942_s7 + $0x40] sm:$0xff]  ;;  %v736_v19 = vld [vmem:[%s3942_s7 + $0x50] sm:$0xff]  ;;  %v737_v20 = vld [vmem:[%s3942_s7 + $0x58] sm:$0xff] }
  0x17   : > { %2899 = vmatpush3.bf16.msra.mxu1 %v741_v55  ;;  %v745_v2 = vpack.c.bf16 %v735_v1, %v734_v0  ;;  %v650_v6 = vld [vmem:[%s3941_s6] sm:$0x3]  ;;  %v746_v23 = vpack.c.bf16 %v737_v20, %v736_v19  ;;  %v898_v42 = vld [vmem:[%s3944_s9 + $0x8] sm:$0xff] }
  0x18   : > { %669 = vmatpush1.bf16.msra.mxu0 %v640_v26  ;;  %2900 = vmatprep.subr.bf16.mxu1 %v3221_v51  ;;  %v655_v8 = vrot.slane %v650_v6, %v654_v5  ;;  %v659_v9 = vrot.slane %v650_v6, %v658_v7  ;;  %v738_v25 = vld [vmem:[%s3942_s7 + $0x60] sm:$0xff]  ;;  %v739_v26 = vld [vmem:[%s3942_s7 + $0x68] sm:$0xff] }
  0x19   : > { %670 = vmatprep.subr.bf16.mxu0 %v643_v27  ;;  %v747_v27 = vpack.c.bf16 %v739_v26, %v738_v25  ;;  %v801_v31 = vld [vmem:[%s3938_s3] sm:$0xff] }
  0x1a   : > { %v897_v41 = vld [vmem:[%s3944_s9] sm:$0xff] }
  0x1b   : > { %2901 = vmatpush3.bf16.msra.mxu1 %v742_v57  ;;  %v3539_v43 = vpack.c.bf16 %v898_v42, %v897_v41  ;;  %v3568_v5 = vld [vmem:[%s3945_s10] ss:$0 sm:$0xff] }
  0x1c   : > { %671 = vmatpush1.bf16.msra.mxu0 %v642_v32  ;;  %2902 = vmatprep.subr.bf16.mxu1 %v3221_v51 }
  0x1d   : > { %672 = vmatprep.subr.bf16.mxu0 %v645_v33  ;;  %v803_v33 = vpack.c.bf16 %v801_v31, %v801_v31 }
  0x1f   : > { %2903 = vmatpush3.bf16.msra.mxu1 %v743_v60 }
  0x20   : > { %673 = vmatpush1.bf16.msra.mxu0 %v644_v38  ;;  %2904 = vmatprep.subr.bf16.mxu1 %v3221_v51  ;;  %v817_v38 = vsel %vm815_vm3, %v803_v33, 0  ;;  %v3597_v33 = vld [vmem:[%s3947_s12] ss:$0 sm:$0xff] }
  0x21   : > { %674 = vmatprep.subr.bf16.mxu0 %v647_v39  ;;  %v800_v39 = vld [vmem:[%s3958_s0] sm:$0xff]  ;;  %s598_s0 = scalar_lea.vmem %s3953_s18, %s3429_s2 }
  0x22   : > { %v802_v40 = vpack.c.bf16 %v800_v39, %v800_v39 }
  0x23   : > { %2905 = vmatpush3.bf16.msra.mxu1 %v744_v63 }
  0x24   : > { %675 = vmatpush1.bf16.msra.mxu0 %v646_v44  ;;  %2906 = vmatprep.subr.bf16.mxu1 %v3221_v51  ;;  %v2769_v44 = vld [vmem:[%s3943_s8] ss:$0 sm:$0xff] }
  0x25   : > { %676 = vmatprep.subr.bf16.mxu0 %v649_v45 }
  0x27   : > { %2907 = vmatpush3.bf16.msra.mxu1 %v745_v2 }
  0x28   : > { %677 = vmatpush1.bf16.msra.mxu0 %v648_v48  ;;  %2908 = vmatprep.subr.bf16.mxu1 %v3221_v51 }
  0x29   : > { %2922 = vmatprep.subr.bf16.mxu0 %v3221_v51 }
  0x2b   : > { %695 = vmatmul.mubr.bf16.vlgmr.msra.gmra.mrb[0].mxu0 %v633_v50  ;;  %2909 = vmatpush3.bf16.msra.mxu1 %v746_v23  ;;  %v2771_v50 = vld [vmem:[%s3939_s4] ss:$0 sm:$0xff] }
  0x2c   : > { %2910 = vmatprep.subr.bf16.mxu1 %v3221_v51  ;;  %2924 = vmatprep.mubr.msk.bf16.mxu0 %vm3222_vm0, %v3221_v51 }
  0x2d   : > { %2923 = vmatpush3.bf16.msra.mxu0 %v3539_v43 }
  0x2e   : > { %2934 = vmatprep.subr.bf16.mxu0 %v3221_v51 }
  0x2f   : > { %2911 = vmatpush3.bf16.msra.mxu1 %v747_v27 }
  0x30   : > { %2916 = vmatprep.subr.bf16.mxu1 %v3221_v51 }
  0xfe   : > { %v696_v10 = vpop.f32.mrb[0].mxu0 }
  0xff   : > { %v697_v11 = vadd.f32 %v696_v10, %v655_v8  ;;  %v698_v12 = vpop.f32.mrb[1].mxu0 }
 0x100   : > { %v699_v13 = vadd.f32 %v698_v12, %v659_v9  ;;  %v700_v14 = vpop.f32.mrb[2].mxu0 }
 0x101   : > { %v2767_v15 = vmul.f32 -1.442695, %v697_v11  ;;  %v701_v16 = vpop.f32.mrb[3].mxu0 }
 0x102   : > { %v2768_v17 = vmul.f32 -1.442695, %v699_v13 }
 0x103   : > { %3152 = vpow2.f32 %v2767_v15 }
 0x104   : > { %3154 = vpow2.f32 %v2768_v17 }
 0x10d   : > { %v3153_v18 = vpop.eup %3152 }
 0x10e   : > { %v3155_v21 = vpop.eup %3154  ;;  %v710_v22 = vadd.f32 1.0, %v3153_v18 }
 0x10f   : > { %v711_v24 = vadd.f32 1.0, %v3155_v21  ;;  %v980_v21 = vld [vmem:[%s3946_s11] sm:$0xff] }
 0x110   : > { %3156 = vrcp.f32 %v710_v22  ;;  %v982_v22 = vpack.c.bf16 %v980_v21, %v980_v21 }
 0x111   : > { %3158 = vrcp.f32 %v711_v24 }
 0x112   : > { %3160 = vtanh.f32 %v697_v11  ;;  %v3578_v23 = vsel %vm815_vm3, %v982_v22, 0 }
 0x11a   : > { %v3157_v28 = vpop.eup %3156 }
 0x11b   : > { %718 = vrot.lane.b32.xlu0 %v3157_v28, %s3223_s22  ;;  %v3159_v29 = vpop.eup %3158 }
 0x11c   : > { %v3161_v34 = vpop.eup %3160 }
 0x11f   : > { %720 = vrot.lane.b32.xlu0 %v3159_v29, %s3223_s22 }
 0x18d   : > { %v719_v30 = vpop.permute.xlu0 %718 }
 0x191   : > { %v721_v32 = vpop.permute.xlu0 %720 }
 0x192   : > { %v723_v35 = vsel %vm722_vm1, %v719_v30, %v721_v32 }
 0x193   : > { %v3510_v36 = vmul.f32 %v3161_v34, %v723_v35 }
 0x195   : > { %887 = vrot.lane.b32.xlu0 %v3510_v36, %s3224_s25  ;;  %879 = vrot.lane.b32.xlu1 %v3510_v36, %s3225_s26  ;;  %v3518_v37 = vpack.c.bf16 %v3510_v36, %v3510_v36 }
 0x197   : > { %2913 = vmatmul.mubr.msk.bf16.vlgmr.msra.gmra.mrb[0].mxu1 %vm755_vm2, %v3518_v37  ;;  %v1105_v32 = vsel %vm815_vm3, %v3518_v37, 0 }
 0x198   : > { %2917 = vmatpush3.bf16.msra.mxu1 %v817_v38  ;;  %2918 = vmatprep.mubr.msk.bf16.mxu1 %vm3222_vm0, %v3221_v51 }
 0x199   : > { %883 = vrot.lane.b32.xlu1 %v3510_v36, %s3226_s19  ;;  %2928 = vmatprep.subr.bf16.mxu1 %v3221_v51  ;;  %s3229_s19 = smov 96  }
 0x19f   : > { %2919 = vmatmul.mubr.msk.bf16.vlgmr.msra.gmra.mrb[4].mxu1 %vm811_vm4, %v802_v40 }
 0x1a0   : > { %2930 = vmatprep.mubr.msk.bf16.mxu1 %vm3222_vm0, %v3221_v51  ;;  %2929 = vmatpush3.bf16.msra.mxu1 %v3578_v23 }
 0x1a1   : > { %2940 = vmatprep.subr.bf16.mxu1 %v3221_v51 }
 0x207   : > { %v880_v57 = vpop.permute.xlu1 %879  ;;  %v888_v61 = vpop.permute.xlu0 %887 }
 0x208   : > { %v3555_v59 = vadd.f32 %v880_v57, %v3510_v36 }
 0x20b   : > { %v884_v58 = vpop.permute.xlu1 %883 }
 0x20c   : > { %v886_v60 = vadd.f32 %v884_v58, %v3555_v59  ;;  %v862_v58 = vand.u32 127, %v652_v3 }
 0x20e   : > { %v890_v62 = vadd.f32 %v888_v61, %v886_v60  ;;  %vm863_vm5 = vcmp.eq.s32.totalorder %v3479_v4, %v862_v58  ;;  %v868_v4 = vld [vmem:[%s3948_s13 + $0x10] sm:$0xff] }
 0x20f   : > { %v3612_v61 = vsel %vm863_vm5, 1.0, %v3221_v51 }
 0x210   : > { %v3558_v63 = vmul.f32 0.25, %v890_v62 }
 0x26a   : > { %v793_v45 = vpop.f32.mrb[0].mxu1 }
 0x26b   : > { %v794_v46 = vadd.f32 %v2769_v44, %v793_v45  ;;  %v2914_v47 = vpop.f32.mrb[1].mxu1 }
 0x26c   : > { %v796_v48 = vpop.f32.mrb[2].mxu1 }
 0x26d   : > { %799 = vst.msk [vmem:[%s598_s0] sm:$0xff] %vm722_vm1, %v794_v46  ;;  %v2915_v49 = vpop.f32.mrb[3].mxu1 }
 0x272   : > { %v853_v52 = vpop.f32.mrb[4].mxu1 }
 0x273   : > { %v854_v53 = vadd.f32 %v2771_v50, %v853_v52  ;;  %v2920_v54 = vpop.f32.mrb[5].mxu1 }
 0x274   : > { %v856_v55 = vpop.f32.mrb[6].mxu1 }
 0x275   : > { %893 = vrot.lane.b32.xlu1 %v854_v53, %s3227_s1  ;;  %v2921_v56 = vpop.f32.mrb[7].mxu1  ;;  %s3231_s1 = smov 32  }
 0x2e7   : > { %v894_v0 = vpop.permute.xlu1 %893 }
 0x2e8   : > { %v896_v1 = vsel %vm811_vm4, %v3558_v63, %v894_v0 }
 0x2e9   : > { %v899_v2 = vpack.c.bf16 %v896_v1, %v896_v1  ;;  %v866_v1 = vld [vmem:[%s3948_s13] sm:$0xff] }
 0x2eb   : > { %2925 = vmatmul.mubr.msk.bf16.vlgmr.msra.gmra.mrb[4].mxu0 %vm722_vm1, %v899_v2  ;;  %v867_v2 = vld [vmem:[%s3948_s13 + $0x8] sm:$0xff] }
 0x2ec   : > { %2936 = vmatprep.mubr.msk.bf16.mxu0 %vm3222_vm0, %v3221_v51 }
 0x3be   : > { %v945_v6 = vpop.f32.mrb[4].mxu0 }
 0x3bf   : > { %v946_v7 = vadd.f32 %v3568_v5, %v945_v6  ;;  %v2926_v8 = vpop.f32.mrb[5].mxu0 }
 0x3c0   : > { %v948_v9 = vpop.f32.mrb[6].mxu0  ;;  %v869_v8 = vld [vmem:[%s3948_s13 + $0x18] sm:$0xff] }
 0x3c1   : > { %962 = vrot.lane.b32.xlu1 %v946_v7, %s3228_s23  ;;  %952 = vrot.lane.b32.xlu0 %v946_v7, %s3224_s25  ;;  %v2927_v10 = vpop.f32.mrb[7].mxu0  ;;  %v3631_v9 = vpack.c.bf16 %v869_v8, %v868_v4 }
 0x3c2   : > { %v870_v10 = vld [vmem:[%s3948_s13 + $0x20] sm:$0xff] }
 0x433   : > { %v953_v11 = vpop.permute.xlu0 %952  ;;  %v963_v17 = vpop.permute.xlu1 %962 }
 0x434   : > { %v955_v12 = vadd.f32 %v953_v11, %v946_v7  ;;  %v871_v11 = vld [vmem:[%s3948_s13 + $0x28] sm:$0xff] }
 0x436   : > { %v2776_v13 = vmul.f32 -1.442695, %v955_v12  ;;  %v3648_v12 = vpack.c.bf16 %v871_v11, %v870_v10 }
 0x438   : > { %3162 = vpow2.f32 %v2776_v13  ;;  %v872_v13 = vld [vmem:[%s3948_s13 + $0x30] sm:$0xff] }
 0x442   : > { %v3163_v14 = vpop.eup %3162 }
 0x443   : > { %v959_v15 = vadd.f32 1.0, %v3163_v14  ;;  %v873_v14 = vld [vmem:[%s3948_s13 + $0x38] sm:$0xff] }
 0x445   : > { %3164 = vrcp.f32 %v959_v15  ;;  %v3658_v15 = vpack.c.bf16 %v873_v14, %v872_v13 }
 0x44f   : > { %v3165_v16 = vpop.eup %3164 }
 0x450   : > { %v965_v18 = vmul.f32 %v3165_v16, %v963_v17  ;;  %v972_v25 = vsub.f32 1.0, %v3165_v16  ;;  %v978_v27 = vmul.f32 %v3165_v16, %v894_v0  ;;  %v3663_v17 = vmul.f32 0.05, %v3510_v36 }
 0x452   : > { %967 = vrot.lane.b32.xlu0 %v965_v18, %s3223_s22 }
 0x4c4   : > { %v968_v19 = vpop.permute.xlu0 %967 }
 0x4c5   : > { %v970_v20 = vadd.f32 %v968_v19, %v946_v7  ;;  %v3621_v7 = vpack.c.bf16 %v867_v2, %v866_v1 }
 0x4c7   : > { %3166 = vtanh.f32 %v970_v20 }
 0x4d1   : > { %v3167_v24 = vpop.eup %3166 }
 0x4d2   : > { %974 = vrot.lane.b32.xlu1 %v3167_v24, %s3225_s26 }
 0x544   : > { %v975_v26 = vpop.permute.xlu1 %974 }
 0x545   : > { %v977_v28 = vmul.f32 %v975_v26, %v972_v25 }
 0x547   : > { %v3583_v29 = vadd.f32 %v978_v27, %v977_v28 }
 0x549   : > { %v981_v30 = vpack.c.bf16 %v3583_v29, %v3583_v29 }
 0x54b   : > { %991 = vrot.lane.b32.xlu0 %v981_v30, %s3225_s26 }
 0x5bd   : > { %v992_v31 = vpop.permute.xlu0 %991 }
 0x5be   : > { %2931 = vmatmul.mubr.msk.bf16.vlgmr.msra.gmra.mrb[8].mxu1 %vm811_vm4, %v992_v31 }
 0x5bf   : > { %2941 = vmatpush3.bf16.msra.mxu1 %v1105_v32  ;;  %2942 = vmatprep.mubr.msk.bf16.mxu1 %vm3222_vm0, %v3221_v51 }
 0x5c0   : > { %2954 = vmatprep.subr.bf16.mxu1 %v3221_v51 }
 0x691   : > { %v1033_v34 = vpop.f32.mrb[8].mxu1 }
 0x692   : > { %v1034_v35 = vadd.f32 %v3597_v33, %v1033_v34  ;;  %v2932_v38 = vpop.f32.mrb[9].mxu1  ;;  %v874_v34 = vld [vmem:[%s3948_s13 + $0x40] sm:$0xff] }
 0x693   : > { %v1036_v39 = vpop.f32.mrb[10].mxu1 }
 0x694   : > { %v1039_v40 = vpack.c.bf16 %v1034_v35, %v1034_v35  ;;  %v2933_v41 = vpop.f32.mrb[11].mxu1  ;;  %v875_v35 = vld [vmem:[%s3948_s13 + $0x48] sm:$0xff]  ;;  %v876_v39 = vld [vmem:[%s3948_s13 + $0x50] sm:$0xff] }
 0x695   : > { %v3687_v38 = vpack.c.bf16 %v875_v35, %v874_v34 }
 0x696   : > { %v1041_v42 = vsel %vm811_vm4, %v1039_v40, 0  ;;  %v877_v40 = vld [vmem:[%s3948_s13 + $0x58] sm:$0xff] }
 0x697   : > { %2935 = vmatpush3.bf16.xpose.msra.mxu0 %v1041_v42  ;;  %v3697_v41 = vpack.c.bf16 %v877_v40, %v876_v39 }
 0x698   : > { %2946 = vmatprep.subr.bf16.mxu0 %v3221_v51 }
 0x69e   : > { %2937 = vmatmul.mubr.msk.bf16.vlgmr.msra.gmra.mrb[8].mxu0 %vm811_vm4, %v992_v31 }
 0x69f   : > { %2950 = vmatprep.mubr.msk.bf16.mxu0 %vm3222_vm0, %v3221_v51  ;;  %2947 = vmatpush3.bf16.msra.mxu0 %v3648_v12 }
 0x6a0   : > { %2948 = vmatprep.subr.bf16.mxu0 %v3221_v51 }
 0x6a3   : > { %2949 = vmatpush3.bf16.msra.mxu0 %v3658_v15 }
 0x6a4   : > { %2962 = vmatprep.subr.bf16.mxu0 %v3221_v51 }
 0x771   : > { %v1077_v44 = vpop.f32.mrb[8].mxu0 }
 0x772   : > { %3168 = vtanh.f32 %v1077_v44  ;;  %v2938_v45 = vpop.f32.mrb[9].mxu0 }
 0x773   : > { %v1080_v46 = vpop.f32.mrb[10].mxu0 }
 0x774   : > { %v2939_v47 = vpop.f32.mrb[11].mxu0 }
 0x77c   : > { %v3169_v48 = vpop.eup %3168 }
 0x77d   : > { %v1084_v49 = vmax.f32 %v3169_v48, 0.0 }
 0x77f   : > { %v1085_v50 = vsel %vm811_vm4, %v1084_v49, -inf }
 0x780   : > { %1086 = vmax.xlane.f32.xlu1 %v1085_v50 }
 0x80d   : > { %v1087_v52 = vpop.xlane.xlu1 %1086 }
 0x80e   : > { %v1088_v53 = vsub.f32 %v1084_v49, %v1087_v52 }
 0x810   : > { %v1089_v54 = vmul.f32 1.442695, %v1088_v53 }
 0x812   : > { %3170 = vpow2.f32 %v1089_v54 }
 0x81c   : > { %v3171_v55 = vpop.eup %3170 }
 0x81d   : > { %v1091_v56 = vsel %vm811_vm4, %v3171_v55, 0.0 }
 0x81e   : > { %1092 = vadd.xlane.f32.xlu0 %v1091_v56 }
 0x834   : > { %1338 = vrot.lane.b32.xlu0 %v3558_v63, %s3229_s19 }
 0x8ab   : > { %v1093_v57 = vpop.xlane.xlu0 %1092 }
 0x8ac   : > { %3172 = vrcp.f32 %v1093_v57 }
 0x8af   : > { %v1339_v30 = vpop.permute.xlu0 %1338 }
 0x8b0   : > { %v1341_v31 = vsel %vm811_vm4, %v1339_v30, %v3583_v29 }
 0x8b1   : > { %v1342_v32 = vpack.c.bf16 %v1341_v31, %v1341_v31 }
 0x8b6   : > { %v3173_v60 = vpop.eup %3172 }
 0x8b7   : > { %v1095_v62 = vmul.f32 %v3173_v60, %v3171_v55 }
 0x8b9   : > { %v1096_v0 = vadd.f32 %v3612_v61, %v1095_v62 }
 0x8bb   : > { %v1097_v6 = vmul.f32 0.5, %v1096_v0 }
 0x8bd   : > { %v1101_v3 = vpack.c.bf16 %v1097_v6, %v1097_v6 }
 0x8bf   : > { %2943 = vmatmul.mubr.msk.bf16.vlgmr.msra.gmra.mrb[12].mxu1 %vm811_vm4, %v1101_v3 }
 0x8c0   : > { %2955 = vmatpush3.bf16.msra.mxu1 %v3621_v7  ;;  %2958 = vmatprep.mubr.msk.bf16.mxu1 %vm3222_vm0, %v3221_v51 }
 0x8c1   : > { %2956 = vmatprep.subr.bf16.mxu1 %v3221_v51 }
 0x8c4   : > { %2957 = vmatpush3.bf16.msra.mxu1 %v3631_v9 }
 0x8c5   : > { %2968 = vmatprep.subr.bf16.mxu1 %v3221_v51 }
 0x8c7   : > { %2959 = vmatmul.mubr.msk.bf16.vlgmr.msra.gmra.mrb[16].mxu1 %vm1152_vm6, %v3518_v37 }
 0x8c8   : > { %2972 = vmatprep.mubr.msk.bf16.mxu1 %vm3222_vm0, %v3221_v51  ;;  %2969 = vmatpush3.bf16.msra.mxu1 %v3687_v38 }
 0x8c9   : > { %2970 = vmatprep.subr.bf16.mxu1 %v3221_v51 }
 0x8cc   : > { %2971 = vmatpush3.bf16.msra.mxu1 %v3697_v41 }
 0x8cd   : > { %2982 = vmatprep.subr.bf16.mxu1 %v3221_v51 }
 0x992   : > { %v1141_v16 = vpop.f32.mrb[12].mxu1 }
 0x993   : > { %v1147_v18 = vmul.f32 0.95, %v1141_v16  ;;  %v2944_v19 = vpop.f32.mrb[13].mxu1 }
 0x994   : > { %v1144_v20 = vpop.f32.mrb[14].mxu1 }
 0x995   : > { %v1148_v21 = vadd.f32 %v1147_v18, %v3663_v17  ;;  %v2945_v22 = vpop.f32.mrb[15].mxu1 }
 0x997   : > { %v1149_v24 = vpack.c.bf16 %v1148_v21, %v1148_v21 }
 0x999   : > { %2951 = vmatmul.mubr.msk.bf16.vlgmr.msra.gmra.mrb[12].mxu0 %vm1152_vm6, %v1149_v24  ;;  %v1238_v25 = vsel %vm815_vm3, %v1149_v24, 0 }
 0x99a   : > { %v1232_v26 = vpop.f32.mrb[16].mxu1  ;;  %2963 = vmatpush3.bf16.msra.mxu0 %v1238_v25  ;;  %2964 = vmatprep.mubr.msk.bf16.mxu0 %vm3222_vm0, %v3221_v51 }
 0x99b   : > { %v2960_v27 = vpop.f32.mrb[17].mxu1  ;;  %2976 = vmatprep.subr.bf16.mxu0 %v3221_v51 }
 0x99c   : > { %v1235_v36 = vpop.f32.mrb[18].mxu1 }
 0x99d   : > { %v2961_v28 = vpop.f32.mrb[19].mxu1 }
 0x9a1   : > { %2965 = vmatmul.mubr.msk.bf16.vlgmr.msra.gmra.mrb[16].mxu0 %vm811_vm4, %v1101_v3 }
 0x9a2   : > { %2977 = vmatpush3.bf16.msra.mxu0 %v3539_v43  ;;  %2978 = vmatprep.mubr.msk.bf16.mxu0 %vm3222_vm0, %v3221_v51 }
 0x9a3   : > { %2988 = vmatprep.subr.bf16.mxu0 %v3221_v51 }
 0x9a9   : > { %2979 = vmatmul.mubr.msk.bf16.vlgmr.msra.gmra.mrb[20].mxu0 %vm722_vm1, %v1342_v32 }
 0x9aa   : > { %2990 = vmatprep.mubr.msk.bf16.mxu0 %vm3222_vm0, %v3221_v51 }
 0xa6c   : > { %v1190_v42 = vpop.f32.mrb[12].mxu0 }
 0xa6d   : > { %v1233_v44 = vadd.f32 %v1232_v26, %v1190_v42  ;;  %v2952_v45 = vpop.f32.mrb[13].mxu0 }
 0xa6e   : > { %v1193_v46 = vpop.f32.mrb[14].mxu0 }
 0xa6f   : > { %v2953_v47 = vpop.f32.mrb[15].mxu0 }
 0xa74   : > { %v1274_v48 = vpop.f32.mrb[16].mxu0 }
 0xa75   : > { %v1280_v49 = vmul.f32 0.95, %v1274_v48  ;;  %v2966_v50 = vpop.f32.mrb[17].mxu0 }
 0xa76   : > { %v1277_v52 = vpop.f32.mrb[18].mxu0 }
 0xa77   : > { %v1281_v53 = vadd.f32 %v1280_v49, %v3663_v17  ;;  %v2967_v54 = vpop.f32.mrb[19].mxu0 }
 0xa79   : > { %v1282_v55 = vpack.c.bf16 %v1281_v53, %v1281_v53 }
 0xa7b   : > { %2973 = vmatmul.mubr.msk.bf16.vlgmr.msra.gmra.mrb[20].mxu1 %vm1152_vm6, %v1282_v55 }
 0xa7c   : > { %v1380_v56 = vpop.f32.mrb[20].mxu0  ;;  %2983 = vmatpush3.bf16.msra.mxu1 %v3578_v23  ;;  %2984 = vmatprep.mubr.msk.bf16.mxu1 %vm3222_vm0, %v3221_v51 }
 0xa7d   : > { %v1381_v57 = vadd.f32 %v3568_v5, %v1380_v56  ;;  %v2980_v58 = vpop.f32.mrb[21].mxu0  ;;  %2994 = vmatprep.subr.bf16.mxu1 %v3221_v51 }
 0xa7e   : > { %v1383_v60 = vpop.f32.mrb[22].mxu0 }
 0xa7f   : > { %1387 = vrot.lane.b32.xlu1 %v1381_v57, %s3224_s25  ;;  %v2981_v62 = vpop.f32.mrb[23].mxu0 }
 0xa83   : > { %1397 = vrot.lane.b32.xlu1 %v1381_v57, %s3228_s23 }
 0xaf1   : > { %v1388_v0 = vpop.permute.xlu1 %1387 }
 0xaf2   : > { %v1390_v1 = vadd.f32 %v1388_v0, %v1381_v57 }
 0xaf4   : > { %v2787_v2 = vmul.f32 -1.442695, %v1390_v1 }
 0xaf5   : > { %v1398_v8 = vpop.permute.xlu1 %1397 }
 0xaf6   : > { %3174 = vpow2.f32 %v2787_v2 }
 0xb00   : > { %v3175_v6 = vpop.eup %3174 }
 0xb01   : > { %v1394_v3 = vadd.f32 1.0, %v3175_v6 }
 0xb03   : > { %3176 = vrcp.f32 %v1394_v3 }
 0xb0d   : > { %v3177_v4 = vpop.eup %3176 }
 0xb0e   : > { %v1400_v10 = vmul.f32 %v3177_v4, %v1398_v8  ;;  %v1407_v22 = vsub.f32 1.0, %v3177_v4  ;;  %v1413_v25 = vmul.f32 %v3177_v4, %v3583_v29 }
 0xb10   : > { %1402 = vrot.lane.b32.xlu0 %v1400_v10, %s3223_s22 }
 0xb4e   : > { %v1322_v11 = vpop.f32.mrb[20].mxu1 }
 0xb4f   : > { %v3711_v13 = vadd.f32 %v1322_v11, %v1233_v44  ;;  %v2974_v14 = vpop.f32.mrb[21].mxu1 }
 0xb50   : > { %v1325_v16 = vpop.f32.mrb[22].mxu1 }
 0xb51   : > { %v2975_v18 = vpop.f32.mrb[23].mxu1 }
 0xb82   : > { %v1403_v19 = vpop.permute.xlu0 %1402 }
 0xb83   : > { %v1405_v20 = vadd.f32 %v1403_v19, %v1381_v57 }
 0xb85   : > { %3178 = vtanh.f32 %v1405_v20 }
 0xb8f   : > { %v3179_v21 = vpop.eup %3178 }
 0xb90   : > { %1409 = vrot.lane.b32.xlu1 %v3179_v21, %s3225_s26 }
 0xc02   : > { %v1410_v24 = vpop.permute.xlu1 %1409 }
 0xc03   : > { %v1412_v26 = vmul.f32 %v1410_v24, %v1407_v22 }
 0xc05   : > { %v3715_v27 = vadd.f32 %v1413_v25, %v1412_v26 }
 0xc07   : > { %v1415_v36 = vpack.c.bf16 %v3715_v27, %v3715_v27 }
 0xc09   : > { %1417 = vrot.lane.b32.xlu0 %v1415_v36, %s3225_s26 }
 0xc7b   : > { %v1418_v28 = vpop.permute.xlu0 %1417 }
 0xc7c   : > { %2985 = vmatmul.mubr.msk.bf16.vlgmr.msra.gmra.mrb[24].mxu1 %vm811_vm4, %v1418_v28 }
 0xc7d   : > { %2996 = vmatprep.mubr.msk.bf16.mxu1 %vm3222_vm0, %v3221_v51 }
 0xd4f   : > { %v1456_v30 = vpop.f32.mrb[24].mxu1 }
 0xd50   : > { %v1457_v31 = vadd.f32 %v3597_v33, %v1456_v30  ;;  %v2986_v32 = vpop.f32.mrb[25].mxu1 }
 0xd51   : > { %v1459_v34 = vpop.f32.mrb[26].mxu1 }
 0xd52   : > { %v1462_v29 = vpack.c.bf16 %v1457_v31, %v1457_v31  ;;  %v2987_v35 = vpop.f32.mrb[27].mxu1 }
 0xd54   : > { %v1464_v39 = vsel %vm811_vm4, %v1462_v29, 0 }
 0xd55   : > { %2989 = vmatpush3.bf16.xpose.msra.mxu0 %v1464_v39 }
 0xd56   : > { %3000 = vmatprep.subr.bf16.mxu0 %v3221_v51 }
 0xd5c   : > { %2991 = vmatmul.mubr.msk.bf16.vlgmr.msra.gmra.mrb[24].mxu0 %vm811_vm4, %v1418_v28 }
 0xd5d   : > { %3001 = vmatpush3.bf16.msra.mxu0 %v3648_v12  ;;  %3004 = vmatprep.mubr.msk.bf16.mxu0 %vm3222_vm0, %v3221_v51 }
 0xd5e   : > { %3002 = vmatprep.subr.bf16.mxu0 %v3221_v51 }
 0xd61   : > { %3003 = vmatpush3.bf16.msra.mxu0 %v3658_v15 }
 0xd62   : > { %3016 = vmatprep.subr.bf16.mxu0 %v3221_v51 }
 0xe2f   : > { %v1500_v40 = vpop.f32.mrb[24].mxu0 }
 0xe30   : > { %3180 = vtanh.f32 %v1500_v40  ;;  %v2992_v42 = vpop.f32.mrb[25].mxu0 }
 0xe31   : > { %v1503_v44 = vpop.f32.mrb[26].mxu0 }
 0xe32   : > { %v2993_v45 = vpop.f32.mrb[27].mxu0 }
 0xe3a   : > { %v3181_v46 = vpop.eup %3180 }
 0xe3b   : > { %v1507_v47 = vmax.f32 %v3181_v46, 0.0 }
 0xe3d   : > { %v1508_v48 = vsel %vm811_vm4, %v1507_v47, -inf }
 0xe3e   : > { %1509 = vmax.xlane.f32.xlu1 %v1508_v48 }
 0xecb   : > { %v1510_v49 = vpop.xlane.xlu1 %1509 }
 0xecc   : > { %v1511_v50 = vsub.f32 %v1507_v47, %v1510_v49 }
 0xece   : > { %v1512_v52 = vmul.f32 1.442695, %v1511_v50 }
 0xed0   : > { %3182 = vpow2.f32 %v1512_v52 }
 0xeda   : > { %v3183_v53 = vpop.eup %3182 }
 0xedb   : > { %v1514_v54 = vsel %vm811_vm4, %v3183_v53, 0.0 }
 0xedc   : > { %1515 = vadd.xlane.f32.xlu0 %v1514_v54 }
 0xef2   : > { %1523 = vrot.lane.b32.xlu0 %v3518_v37, %s3229_s19 }
 0xef6   : > { %1763 = vrot.lane.b32.xlu0 %v3558_v63, %s3230_s28 }
 0xf69   : > { %v1516_v55 = vpop.xlane.xlu0 %1515 }
 0xf6a   : > { %3184 = vrcp.f32 %v1516_v55 }
 0xf6d   : > { %v1524_v56 = vpop.permute.xlu0 %1523 }
 0xf6e   : > { %v1529_v57 = vsel %vm815_vm3, %v1524_v56, 0 }
 0xf6f   : > { %2995 = vmatpush3.bf16.msra.mxu1 %v1529_v57 }
 0xf70   : > { %3008 = vmatprep.subr.bf16.mxu1 %v3221_v51 }
 0xf71   : > { %v1764_v22 = vpop.permute.xlu0 %1763 }
 0xf72   : > { %v1766_v24 = vsel %vm811_vm4, %v1764_v22, %v3715_v27 }
 0xf73   : > { %v1767_v25 = vpack.c.bf16 %v1766_v24, %v1766_v24 }
 0xf74   : > { %v3185_v58 = vpop.eup %3184 }
 0xf75   : > { %v1518_v60 = vmul.f32 %v3185_v58, %v3183_v53 }
 0xf77   : > { %v1519_v62 = vadd.f32 %v3612_v61, %v1518_v60 }
 0xf79   : > { %v1520_v0 = vmul.f32 0.5, %v1519_v62 }
 0xf7b   : > { %v1521_v1 = vpack.c.bf16 %v1520_v0, %v1520_v0 }
 0xf7d   : > { %2997 = vmatmul.mubr.msk.bf16.vlgmr.msra.gmra.mrb[28].mxu1 %vm811_vm4, %v1521_v1 }
 0xf7e   : > { %3009 = vmatpush3.bf16.msra.mxu1 %v3621_v7  ;;  %3012 = vmatprep.mubr.msk.bf16.mxu1 %vm3222_vm0, %v3221_v51 }
 0xf7f   : > { %3010 = vmatprep.subr.bf16.mxu1 %v3221_v51 }
 0xf82   : > { %3011 = vmatpush3.bf16.msra.mxu1 %v3631_v9 }
 0xf83   : > { %3022 = vmatprep.subr.bf16.mxu1 %v3221_v51 }
 0xf85   : > { %3013 = vmatmul.mubr.msk.bf16.vlgmr.msra.gmra.mrb[32].mxu1 %vm1152_vm6, %v1524_v56 }
 0xf86   : > { %3023 = vmatpush3.bf16.msra.mxu1 %v3687_v38  ;;  %3026 = vmatprep.mubr.msk.bf16.mxu1 %vm3222_vm0, %v3221_v51 }
 0xf87   : > { %3024 = vmatprep.subr.bf16.mxu1 %v3221_v51 }
 0xf8a   : > { %3025 = vmatpush3.bf16.msra.mxu1 %v3697_v41 }
 0xf8b   : > { %3036 = vmatprep.subr.bf16.mxu1 %v3221_v51 }
0x1050   : > { %v1565_v63 = vpop.f32.mrb[28].mxu1 }
0x1051   : > { %v1571_v2 = vmul.f32 0.95, %v1565_v63  ;;  %v2998_v6 = vpop.f32.mrb[29].mxu1 }
0x1052   : > { %v1568_v3 = vpop.f32.mrb[30].mxu1 }
0x1053   : > { %1573 = vrot.lane.b32.xlu1 %v1571_v2, %s3231_s1  ;;  %v2999_v4 = vpop.f32.mrb[31].mxu1 }
0x1058   : > { %v1660_v8 = vpop.f32.mrb[32].mxu1 }
0x1059   : > { %v3014_v10 = vpop.f32.mrb[33].mxu1 }
0x105a   : > { %v1663_v11 = vpop.f32.mrb[34].mxu1 }
0x105b   : > { %v3015_v14 = vpop.f32.mrb[35].mxu1 }
0x10c5   : > { %v1574_v16 = vpop.permute.xlu1 %1573 }
0x10c6   : > { %v1576_v18 = vadd.f32 %v1574_v16, %v3663_v17 }
0x10c8   : > { %v1577_v19 = vpack.c.bf16 %v1576_v18, %v1576_v18 }
0x10ca   : > { %1579 = vrot.lane.b32.xlu1 %v1577_v19, %s3229_s19 }
0x113c   : > { %v1580_v20 = vpop.permute.xlu1 %1579 }
0x113d   : > { %v1666_v21 = vsel %vm815_vm3, %v1580_v20, 0  ;;  %3005 = vmatmul.mubr.msk.bf16.vlgmr.msra.gmra.mrb[28].mxu0 %vm1152_vm6, %v1580_v20 }
0x113e   : > { %3017 = vmatpush3.bf16.msra.mxu0 %v1666_v21  ;;  %3018 = vmatprep.mubr.msk.bf16.mxu0 %vm3222_vm0, %v3221_v51 }
0x113f   : > { %3030 = vmatprep.subr.bf16.mxu0 %v3221_v51 }
0x1145   : > { %3019 = vmatmul.mubr.msk.bf16.vlgmr.msra.gmra.mrb[32].mxu0 %vm811_vm4, %v1521_v1 }
0x1146   : > { %3031 = vmatpush3.bf16.msra.mxu0 %v3539_v43  ;;  %3032 = vmatprep.mubr.msk.bf16.mxu0 %vm3222_vm0, %v3221_v51 }
0x1147   : > { %3042 = vmatprep.subr.bf16.mxu0 %v3221_v51 }
0x114d   : > { %3033 = vmatmul.mubr.msk.bf16.vlgmr.msra.gmra.mrb[36].mxu0 %vm722_vm1, %v1767_v25 }
0x114e   : > { %3044 = vmatprep.mubr.msk.bf16.mxu0 %vm3222_vm0, %v3221_v51 }
0x1210   : > { %v1618_v26 = vpop.f32.mrb[28].mxu0 }
0x1211   : > { %v1661_v36 = vadd.f32 %v1660_v8, %v1618_v26  ;;  %v3006_v28 = vpop.f32.mrb[29].mxu0 }
0x1212   : > { %v1621_v30 = vpop.f32.mrb[30].mxu0 }
0x1213   : > { %v3007_v31 = vpop.f32.mrb[31].mxu0 }
0x1218   : > { %v1702_v32 = vpop.f32.mrb[32].mxu0 }
0x1219   : > { %v3020_v34 = vpop.f32.mrb[33].mxu0  ;;  %v1708_v46 = vmul.f32 0.95, %v1702_v32 }
0x121a   : > { %v1705_v29 = vpop.f32.mrb[34].mxu0 }
0x121b   : > { %v3021_v35 = vpop.f32.mrb[35].mxu0 }
0x1220   : > { %v1805_v39 = vpop.f32.mrb[36].mxu0 }
0x1221   : > { %v1806_v40 = vadd.f32 %v3568_v5, %v1805_v39  ;;  %v3034_v42 = vpop.f32.mrb[37].mxu0 }
0x1222   : > { %v1808_v44 = vpop.f32.mrb[38].mxu0 }
0x1223   : > { %1822 = vrot.lane.b32.xlu0 %v1806_v40, %s3228_s23  ;;  %1812 = vrot.lane.b32.xlu1 %v1806_v40, %s3224_s25  ;;  %v3035_v45 = vpop.f32.mrb[39].mxu0 }
0x1227   : > { %1710 = vrot.lane.b32.xlu0 %v1708_v46, %s3231_s1 }
0x1295   : > { %v1823_v47 = vpop.permute.xlu0 %1822  ;;  %v1813_v48 = vpop.permute.xlu1 %1812 }
0x1296   : > { %v1815_v49 = vadd.f32 %v1813_v48, %v1806_v40 }
0x1298   : > { %v2796_v50 = vmul.f32 -1.442695, %v1815_v49 }
0x1299   : > { %v1711_v52 = vpop.permute.xlu0 %1710 }
0x129a   : > { %3186 = vpow2.f32 %v2796_v50  ;;  %v1713_v53 = vadd.f32 %v1711_v52, %v3663_v17 }
0x129c   : > { %v1714_v54 = vpack.c.bf16 %v1713_v53, %v1713_v53 }
0x129e   : > { %1716 = vrot.lane.b32.xlu0 %v1714_v54, %s3229_s19 }
0x12a4   : > { %v3187_v55 = vpop.eup %3186 }
0x12a5   : > { %v1819_v56 = vadd.f32 1.0, %v3187_v55 }
0x12a7   : > { %3188 = vrcp.f32 %v1819_v56 }
0x12b1   : > { %v3189_v57 = vpop.eup %3188 }
0x12b2   : > { %v1825_v58 = vmul.f32 %v3189_v57, %v1823_v47  ;;  %v1832_v63 = vsub.f32 1.0, %v3189_v57  ;;  %v1838_v6 = vmul.f32 %v3189_v57, %v3715_v27  ;;  %v2187_v57 = vmul.f32 0.5, %v3555_v59 }
0x12b4   : > { %1827 = vrot.lane.b32.xlu1 %v1825_v58, %s3223_s22 }
0x1310   : > { %v1717_v60 = vpop.permute.xlu0 %1716 }
0x1311   : > { %3027 = vmatmul.mubr.msk.bf16.vlgmr.msra.gmra.mrb[36].mxu1 %vm1152_vm6, %v1717_v60 }
0x1312   : > { %3037 = vmatpush3.bf16.msra.mxu1 %v3578_v23  ;;  %3038 = vmatprep.mubr.msk.bf16.mxu1 %vm3222_vm0, %v3221_v51 }
0x1313   : > { %3048 = vmatprep.subr.bf16.mxu1 %v3221_v51 }
0x1326   : > { %v1828_v62 = vpop.permute.xlu1 %1827 }
0x1327   : > { %v1830_v0 = vadd.f32 %v1828_v62, %v1806_v40 }
0x1329   : > { %3190 = vtanh.f32 %v1830_v0 }
0x1333   : > { %v3191_v1 = vpop.eup %3190 }
0x1334   : > { %1834 = vrot.lane.b32.xlu1 %v3191_v1, %s3225_s26 }
0x13a6   : > { %v1835_v2 = vpop.permute.xlu1 %1834 }
0x13a7   : > { %v1837_v3 = vmul.f32 %v1835_v2, %v1832_v63 }
0x13a9   : > { %v3788_v4 = vadd.f32 %v1838_v6, %v1837_v3 }
0x13ab   : > { %v1840_v8 = vpack.c.bf16 %v3788_v4, %v3788_v4 }
0x13ad   : > { %1842 = vrot.lane.b32.xlu1 %v1840_v8, %s3225_s26 }
0x13e4   : > { %v1755_v10 = vpop.f32.mrb[36].mxu1 }
0x13e5   : > { %v3793_v11 = vadd.f32 %v1755_v10, %v1661_v36  ;;  %v3028_v14 = vpop.f32.mrb[37].mxu1 }
0x13e6   : > { %v1758_v16 = vpop.f32.mrb[38].mxu1 }
0x13e7   : > { %v3029_v18 = vpop.f32.mrb[39].mxu1 }
0x141f   : > { %v1843_v19 = vpop.permute.xlu1 %1842 }
0x1420   : > { %3039 = vmatmul.mubr.msk.bf16.vlgmr.msra.gmra.mrb[40].mxu1 %vm811_vm4, %v1843_v19 }
0x1421   : > { %3050 = vmatprep.mubr.msk.bf16.mxu1 %vm3222_vm0, %v3221_v51 }
0x14f3   : > { %v1881_v27 = vpop.f32.mrb[40].mxu1 }
0x14f4   : > { %v1882_v20 = vadd.f32 %v3597_v33, %v1881_v27  ;;  %v3040_v21 = vpop.f32.mrb[41].mxu1 }
0x14f5   : > { %v1884_v22 = vpop.f32.mrb[42].mxu1 }
0x14f6   : > { %v1887_v24 = vpack.c.bf16 %v1882_v20, %v1882_v20  ;;  %v3041_v25 = vpop.f32.mrb[43].mxu1 }
0x14f8   : > { %v1889_v26 = vsel %vm811_vm4, %v1887_v24, 0 }
0x14f9   : > { %3043 = vmatpush3.bf16.xpose.msra.mxu0 %v1889_v26 }
0x14fa   : > { %3054 = vmatprep.subr.bf16.mxu0 %v3221_v51 }
0x1500   : > { %3045 = vmatmul.mubr.msk.bf16.vlgmr.msra.gmra.mrb[40].mxu0 %vm811_vm4, %v1843_v19 }
0x1501   : > { %3055 = vmatpush3.bf16.msra.mxu0 %v3648_v12  ;;  %3058 = vmatprep.mubr.msk.bf16.mxu0 %vm3222_vm0, %v3221_v51 }
0x1502   : > { %3056 = vmatprep.subr.bf16.mxu0 %v3221_v51 }
0x1505   : > { %3057 = vmatpush3.bf16.msra.mxu0 %v3658_v15 }
0x1506   : > { %3070 = vmatprep.subr.bf16.mxu0 %v3221_v51 }
0x15d3   : > { %v1925_v36 = vpop.f32.mrb[40].mxu0 }
0x15d4   : > { %3192 = vtanh.f32 %v1925_v36  ;;  %v3046_v28 = vpop.f32.mrb[41].mxu0 }
0x15d5   : > { %v1928_v30 = vpop.f32.mrb[42].mxu0 }
0x15d6   : > { %v3047_v31 = vpop.f32.mrb[43].mxu0 }
0x15de   : > { %v3193_v32 = vpop.eup %3192 }
0x15df   : > { %v1932_v34 = vmax.f32 %v3193_v32, 0.0 }
0x15e1   : > { %v1933_v29 = vsel %vm811_vm4, %v1932_v34, -inf }
0x15e2   : > { %1934 = vmax.xlane.f32.xlu0 %v1933_v29 }
0x15f8   : > { %1947 = vrot.lane.b32.xlu0 %v3518_v37, %s3230_s28 }
0x166f   : > { %v1935_v35 = vpop.xlane.xlu0 %1934 }
0x1670   : > { %v1936_v39 = vsub.f32 %v1932_v34, %v1935_v35 }
0x1672   : > { %v1937_v40 = vmul.f32 1.442695, %v1936_v39 }
0x1673   : > { %v1948_v42 = vpop.permute.xlu0 %1947 }
0x1674   : > { %3194 = vpow2.f32 %v1937_v40  ;;  %v1953_v15 = vsel %vm815_vm3, %v1948_v42, 0 }
0x1675   : > { %3049 = vmatpush3.bf16.msra.mxu1 %v1953_v15 }
0x1676   : > { %3062 = vmatprep.subr.bf16.mxu1 %v3221_v51 }
0x167e   : > { %v3195_v44 = vpop.eup %3194 }
0x167f   : > { %v1939_v45 = vsel %vm811_vm4, %v3195_v44, 0.0 }
0x1680   : > { %1940 = vadd.xlane.f32.xlu1 %v1939_v45 }
0x170d   : > { %v1941_v46 = vpop.xlane.xlu1 %1940 }
0x170e   : > { %3196 = vrcp.f32 %v1941_v46 }
0x1718   : > { %v3197_v47 = vpop.eup %3196 }
0x1719   : > { %v1943_v48 = vmul.f32 %v3197_v47, %v3195_v44 }
0x171b   : > { %v1944_v49 = vadd.f32 %v3612_v61, %v1943_v48 }
0x171d   : > { %v1945_v50 = vmul.f32 0.5, %v1944_v49 }
0x171f   : > { %v1946_v52 = vpack.c.bf16 %v1945_v50, %v1945_v50 }
0x1721   : > { %3051 = vmatmul.mubr.msk.bf16.vlgmr.msra.gmra.mrb[44].mxu1 %vm811_vm4, %v1946_v52 }
0x1722   : > { %3063 = vmatpush3.bf16.msra.mxu1 %v3621_v7  ;;  %3066 = vmatprep.mubr.msk.bf16.mxu1 %vm3222_vm0, %v3221_v51 }
0x1723   : > { %3064 = vmatprep.subr.bf16.mxu1 %v3221_v51 }
0x1726   : > { %3065 = vmatpush3.bf16.msra.mxu1 %v3631_v9 }
0x1727   : > { %3076 = vmatprep.subr.bf16.mxu1 %v3221_v51 }
0x1729   : > { %3067 = vmatmul.mubr.msk.bf16.vlgmr.msra.gmra.mrb[48].mxu1 %vm1152_vm6, %v1948_v42 }
0x172a   : > { %3077 = vmatpush3.bf16.msra.mxu1 %v3687_v38  ;;  %3080 = vmatprep.mubr.msk.bf16.mxu1 %vm3222_vm0, %v3221_v51 }
0x172b   : > { %3078 = vmatprep.subr.bf16.mxu1 %v3221_v51 }
0x172e   : > { %3079 = vmatpush3.bf16.msra.mxu1 %v3697_v41 }
0x172f   : > { %3090 = vmatprep.subr.bf16.mxu1 %v3221_v51 }
0x17f4   : > { %v1989_v53 = vpop.f32.mrb[44].mxu1 }
0x17f5   : > { %v1995_v54 = vmul.f32 0.95, %v1989_v53  ;;  %v3052_v55 = vpop.f32.mrb[45].mxu1 }
0x17f6   : > { %v1992_v56 = vpop.f32.mrb[46].mxu1 }
0x17f7   : > { %1997 = vrot.lane.b32.xlu1 %v1995_v54, %s3230_s28  ;;  %v3053_v9 = vpop.f32.mrb[47].mxu1 }
0x17fb   : > { %2189 = vrot.lane.b32.xlu1 %v2187_v57, %s3231_s1 }
0x17fc   : > { %v2084_v58 = vpop.f32.mrb[48].mxu1 }
0x17fd   : > { %v3068_v60 = vpop.f32.mrb[49].mxu1 }
0x17fe   : > { %v2087_v62 = vpop.f32.mrb[50].mxu1 }
0x17ff   : > { %v3069_v0 = vpop.f32.mrb[51].mxu1 }
0x1869   : > { %v1998_v1 = vpop.permute.xlu1 %1997 }
0x186a   : > { %v2000_v41 = vadd.f32 %v1998_v1, %v3663_v17 }
0x186c   : > { %v2001_v63 = vpack.c.bf16 %v2000_v41, %v2000_v41 }
0x186d   : > { %v2190_v59 = vpop.permute.xlu1 %2189 }
0x186e   : > { %2003 = vrot.lane.b32.xlu0 %v2001_v63, %s3230_s28  ;;  %v2192_v3 = vsel %vm811_vm4, %v2190_v59, %v3788_v4 }
0x186f   : > { %v2193_v8 = vpack.c.bf16 %v2192_v3, %v2192_v3 }
0x18e0   : > { %v2004_v2 = vpop.permute.xlu0 %2003 }
0x18e1   : > { %v2090_v6 = vsel %vm815_vm3, %v2004_v2, 0  ;;  %3059 = vmatmul.mubr.msk.bf16.vlgmr.msra.gmra.mrb[44].mxu0 %vm1152_vm6, %v2004_v2 }
0x18e2   : > { %3071 = vmatpush3.bf16.msra.mxu0 %v2090_v6  ;;  %3072 = vmatprep.mubr.msk.bf16.mxu0 %vm3222_vm0, %v3221_v51 }
0x18e3   : > { %3084 = vmatprep.subr.bf16.mxu0 %v3221_v51 }
0x18e9   : > { %3073 = vmatmul.mubr.msk.bf16.vlgmr.msra.gmra.mrb[48].mxu0 %vm811_vm4, %v1946_v52 }
0x18ea   : > { %3085 = vmatpush3.bf16.msra.mxu0 %v3539_v43  ;;  %3086 = vmatprep.mubr.msk.bf16.mxu0 %vm3222_vm0, %v3221_v51 }
0x18eb   : > { %3096 = vmatprep.subr.bf16.mxu0 %v3221_v51 }
0x18f1   : > { %3087 = vmatmul.mubr.msk.bf16.vlgmr.msra.gmra.mrb[52].mxu0 %vm722_vm1, %v2193_v8 }
0x18f2   : > { %3098 = vmatprep.mubr.msk.bf16.mxu0 %vm3222_vm0, %v3221_v51 }
0x19b4   : > { %v2042_v10 = vpop.f32.mrb[44].mxu0 }
0x19b5   : > { %v2085_v14 = vadd.f32 %v2084_v58, %v2042_v10  ;;  %v3060_v16 = vpop.f32.mrb[45].mxu0 }
0x19b6   : > { %v2045_v18 = vpop.f32.mrb[46].mxu0 }
0x19b7   : > { %v3061_v19 = vpop.f32.mrb[47].mxu0 }
0x19bc   : > { %v2126_v43 = vpop.f32.mrb[48].mxu0 }
0x19bd   : > { %v3074_v27 = vpop.f32.mrb[49].mxu0  ;;  %v2132_v28 = vmul.f32 0.95, %v2126_v43 }
0x19be   : > { %v2129_v20 = vpop.f32.mrb[50].mxu0 }
0x19bf   : > { %v3075_v21 = vpop.f32.mrb[51].mxu0 }
0x19c4   : > { %v2231_v22 = vpop.f32.mrb[52].mxu0 }
0x19c5   : > { %v2232_v24 = vadd.f32 %v3568_v5, %v2231_v22  ;;  %v3088_v25 = vpop.f32.mrb[53].mxu0 }
0x19c6   : > { %v2234_v26 = vpop.f32.mrb[54].mxu0 }
0x19c7   : > { %2248 = vrot.lane.b32.xlu1 %v2232_v24, %s3228_s23  ;;  %2238 = vrot.lane.b32.xlu0 %v2232_v24, %s3224_s25  ;;  %v3089_v36 = vpop.f32.mrb[55].mxu0 }
0x19cb   : > { %2134 = vrot.lane.b32.xlu1 %v2132_v28, %s3230_s28 }
0x1a39   : > { %v2249_v30 = vpop.permute.xlu1 %2248  ;;  %v2239_v31 = vpop.permute.xlu0 %2238 }
0x1a3a   : > { %v2241_v32 = vadd.f32 %v2239_v31, %v2232_v24 }
0x1a3c   : > { %v2805_v34 = vmul.f32 -1.442695, %v2241_v32 }
0x1a3d   : > { %v2135_v29 = vpop.permute.xlu1 %2134 }
0x1a3e   : > { %3198 = vpow2.f32 %v2805_v34  ;;  %v2137_v35 = vadd.f32 %v2135_v29, %v3663_v17 }
0x1a40   : > { %v2138_v39 = vpack.c.bf16 %v2137_v35, %v2137_v35 }
0x1a42   : > { %2140 = vrot.lane.b32.xlu1 %v2138_v39, %s3230_s28 }
0x1a48   : > { %v3199_v5 = vpop.eup %3198 }
0x1a49   : > { %v2245_v40 = vadd.f32 1.0, %v3199_v5 }
0x1a4b   : > { %3200 = vrcp.f32 %v2245_v40 }
0x1a55   : > { %v3201_v42 = vpop.eup %3200 }
0x1a56   : > { %v2251_v15 = vmul.f32 %v3201_v42, %v2249_v30  ;;  %v2258_v48 = vsub.f32 1.0, %v3201_v42  ;;  %v2264_v50 = vmul.f32 %v3201_v42, %v3788_v4 }
0x1a58   : > { %2253 = vrot.lane.b32.xlu0 %v2251_v15, %s3223_s22 }
0x1ab4   : > { %v2141_v44 = vpop.permute.xlu1 %2140 }
0x1ab5   : > { %3081 = vmatmul.mubr.msk.bf16.vlgmr.msra.gmra.mrb[52].mxu1 %vm1152_vm6, %v2141_v44 }
0x1ab6   : > { %3091 = vmatpush3.bf16.msra.mxu1 %v3578_v23  ;;  %3092 = vmatprep.mubr.msk.bf16.mxu1 %vm3222_vm0, %v3221_v51 }
0x1ab7   : > { %3102 = vmatprep.subr.bf16.mxu1 %v3221_v51 }
0x1aca   : > { %v2254_v45 = vpop.permute.xlu0 %2253 }
0x1acb   : > { %v2256_v46 = vadd.f32 %v2254_v45, %v2232_v24 }
0x1acd   : > { %3202 = vtanh.f32 %v2256_v46 }
0x1ad7   : > { %v3203_v47 = vpop.eup %3202 }
0x1ad8   : > { %2260 = vrot.lane.b32.xlu0 %v3203_v47, %s3225_s26 }
0x1b4a   : > { %v2261_v49 = vpop.permute.xlu0 %2260 }
0x1b4b   : > { %v2263_v52 = vmul.f32 %v2261_v49, %v2258_v48 }
0x1b4d   : > { %v2265_v53 = vadd.f32 %v2264_v50, %v2263_v52  ;;  %v2785_v52 = vld [vmem:[%s3949_s14] ss:$0 sm:$0xff] }
0x1b4f   : > { %v2266_v54 = vpack.c.bf16 %v2265_v53, %v2265_v53 }
0x1b51   : > { %2268 = vrot.lane.b32.xlu0 %v2266_v54, %s3225_s26 }
0x1b88   : > { %v2179_v23 = vpop.f32.mrb[52].mxu1 }
0x1b89   : > { %v3864_v55 = vadd.f32 %v2179_v23, %v2085_v14  ;;  %v3082_v56 = vpop.f32.mrb[53].mxu1 }
0x1b8a   : > { %v2182_v9 = vpop.f32.mrb[54].mxu1 }
0x1b8b   : > { %v3083_v57 = vpop.f32.mrb[55].mxu1  ;;  %v2186_v56 = vadd.f32 %v2785_v52, %v3864_v55 }
0x1bc3   : > { %v2269_v58 = vpop.permute.xlu0 %2268 }
0x1bc4   : > { %3093 = vmatmul.mubr.msk.bf16.vlgmr.msra.gmra.mrb[56].mxu1 %vm811_vm4, %v2269_v58 }
0x1bc5   : > { %3104 = vmatprep.mubr.msk.bf16.mxu1 %vm3222_vm0, %v3221_v51 }
0x1c97   : > { %v2307_v60 = vpop.f32.mrb[56].mxu1 }
0x1c98   : > { %v2308_v4 = vadd.f32 %v3597_v33, %v2307_v60  ;;  %v3094_v62 = vpop.f32.mrb[57].mxu1 }
0x1c99   : > { %v2310_v0 = vpop.f32.mrb[58].mxu1 }
0x1c9a   : > { %v2313_v1 = vpack.c.bf16 %v2308_v4, %v2308_v4  ;;  %v3095_v41 = vpop.f32.mrb[59].mxu1 }
0x1c9b   : > { %v2630_v41 = vld [vmem:[%s590_s21] sm:$0xff] }
0x1c9c   : > { %v2315_v63 = vsel %vm811_vm4, %v2313_v1, 0 }
0x1c9d   : > { %3097 = vmatpush3.bf16.xpose.msra.mxu0 %v2315_v63 }
0x1c9e   : > { %3108 = vmatprep.subr.bf16.mxu0 %v3221_v51 }
0x1ca4   : > { %3099 = vmatmul.mubr.msk.bf16.vlgmr.msra.gmra.mrb[56].mxu0 %vm811_vm4, %v2269_v58 }
0x1ca5   : > { %3109 = vmatpush3.bf16.msra.mxu0 %v3648_v12  ;;  %3110 = vmatprep.mubr.msk.bf16.mxu0 %vm3222_vm0, %v3221_v51 }
0x1ca6   : > { %3120 = vmatprep.subr.bf16.mxu0 %v3221_v51 }
0x1d77   : > { %v2351_v2 = vpop.f32.mrb[56].mxu0 }
0x1d78   : > { %3204 = vtanh.f32 %v2351_v2  ;;  %v3100_v33 = vpop.f32.mrb[57].mxu0 }
0x1d79   : > { %v2354_v6 = vpop.f32.mrb[58].mxu0 }
0x1d7a   : > { %v3101_v59 = vpop.f32.mrb[59].mxu0 }
0x1d82   : > { %v3205_v3 = vpop.eup %3204 }
0x1d83   : > { %v2358_v8 = vmax.f32 %v3205_v3, 0.0 }
0x1d85   : > { %v2359_v10 = vsel %vm811_vm4, %v2358_v8, -inf }
0x1d86   : > { %2360 = vmax.xlane.f32.xlu1 %v2359_v10 }
0x1e13   : > { %v2361_v14 = vpop.xlane.xlu1 %2360 }
0x1e14   : > { %v2362_v16 = vsub.f32 %v2358_v8, %v2361_v14 }
0x1e16   : > { %v2363_v18 = vmul.f32 1.442695, %v2362_v16 }
0x1e18   : > { %3206 = vpow2.f32 %v2363_v18 }
0x1e22   : > { %v3207_v12 = vpop.eup %3206 }
0x1e23   : > { %v2365_v19 = vsel %vm811_vm4, %v3207_v12, 0.0 }
0x1e24   : > { %2366 = vadd.xlane.f32.xlu0 %v2365_v19 }
0x1e3a   : > { %2373 = vrot.lane.b32.xlu0 %v3518_v37, %s3231_s1 }
0x1eb1   : > { %v2367_v43 = vpop.xlane.xlu0 %2366 }
0x1eb2   : > { %3208 = vrcp.f32 %v2367_v43 }
0x1eb5   : > { %v2374_v27 = vpop.permute.xlu0 %2373 }
0x1eb6   : > { %v2379_v20 = vsel %vm815_vm3, %v2374_v27, 0 }
0x1eb7   : > { %3103 = vmatpush3.bf16.msra.mxu1 %v2379_v20 }
0x1eb8   : > { %3114 = vmatprep.subr.bf16.mxu1 %v3221_v51 }
0x1ebc   : > { %v3209_v21 = vpop.eup %3208 }
0x1ebd   : > { %v2369_v22 = vmul.f32 %v3209_v21, %v3207_v12 }
0x1ebf   : > { %v2370_v24 = vadd.f32 %v3612_v61, %v2369_v22 }
0x1ec1   : > { %v2371_v25 = vmul.f32 0.5, %v2370_v24 }
0x1ec3   : > { %v2372_v26 = vpack.c.bf16 %v2371_v25, %v2371_v25 }
0x1ec5   : > { %3105 = vmatmul.mubr.msk.bf16.vlgmr.msra.gmra.mrb[60].mxu1 %vm811_vm4, %v2372_v26 }
0x1ec6   : > { %3115 = vmatpush3.bf16.msra.mxu1 %v3621_v7  ;;  %3116 = vmatprep.mubr.msk.bf16.mxu1 %vm3222_vm0, %v3221_v51 }
0x1ec7   : > { %3126 = vmatprep.subr.bf16.mxu1 %v3221_v51 }
0x1ecd   : > { %3117 = vmatmul.mubr.msk.bf16.vlgmr.msra.gmra.mrb[64].mxu1 %vm722_vm1, %v2374_v27 }
0x1ece   : > { %3127 = vmatpush3.bf16.msra.mxu1 %v3687_v38  ;;  %3128 = vmatprep.mubr.msk.bf16.mxu1 %vm3222_vm0, %v3221_v51 }
0x1f98   : > { %v2415_v37 = vpop.f32.mrb[60].mxu1 }
0x1f99   : > { %v2421_v61 = vmul.f32 0.95, %v2415_v37  ;;  %v3106_v36 = vpop.f32.mrb[61].mxu1 }
0x1f9a   : > { %v2418_v28 = vpop.f32.mrb[62].mxu1 }
0x1f9b   : > { %2423 = vrot.lane.b32.xlu1 %v2421_v61, %s3229_s19  ;;  %v3107_v30 = vpop.f32.mrb[63].mxu1 }
0x1f9c   : > { %v2657_v30 = vld [vmem:[%s3950_s15] sm:$0xff] }
0x1fa0   : > { %v2510_v7 = vpop.f32.mrb[64].mxu1 }
0x1fa1   : > { %v3118_v31 = vpop.f32.mrb[65].mxu1 }
0x1fa2   : > { %v2513_v32 = vpop.f32.mrb[66].mxu1  ;;  %v2659_v31 = vld [vmem:[%s3951_s16] sm:$0xff] }
0x1fa3   : > { %v3119_v34 = vpop.f32.mrb[67].mxu1 }
0x200d   : > { %v2424_v29 = vpop.permute.xlu1 %2423 }
0x200e   : > { %v2426_v35 = vadd.f32 %v2424_v29, %v3663_v17 }
0x2010   : > { %v2427_v39 = vpack.c.bf16 %v2426_v35, %v2426_v35 }
0x2012   : > { %2429 = vrot.lane.b32.xlu1 %v2427_v39, %s3231_s1 }
0x2084   : > { %v2430_v38 = vpop.permute.xlu1 %2429 }
0x2085   : > { %v2516_v5 = vsel %vm815_vm3, %v2430_v38, 0  ;;  %3111 = vmatmul.mubr.msk.bf16.vlgmr.msra.gmra.mrb[60].mxu0 %vm722_vm1, %v2430_v38 }
0x2086   : > { %3121 = vmatpush3.bf16.msra.mxu0 %v2516_v5  ;;  %3122 = vmatprep.mubr.msk.bf16.mxu0 %vm3222_vm0, %v3221_v51  ;;  %v1762_v51 = vadd.f32 %v2785_v52, %v3793_v11 }
0x208d   : > { %3123 = vmatmul.mubr.msk.bf16.vlgmr.msra.gmra.mrb[64].mxu0 %vm811_vm4, %v2372_v26 }
0x2158   : > { %v2468_v40 = vpop.f32.mrb[60].mxu0 }
0x2159   : > { %v2511_v42 = vadd.f32 %v2510_v7, %v2468_v40  ;;  %v3112_v15 = vpop.f32.mrb[61].mxu0 }
0x215a   : > { %v2471_v44 = vpop.f32.mrb[62].mxu0 }
0x215b   : > { %v3113_v45 = vpop.f32.mrb[63].mxu0 }
0x2160   : > { %v2552_v46 = vpop.f32.mrb[64].mxu0 }
0x2161   : > { %v2558_v47 = vmul.f32 0.95, %v2552_v46  ;;  %v3124_v48 = vpop.f32.mrb[65].mxu0 }
0x2162   : > { %v2555_v49 = vpop.f32.mrb[66].mxu0 }
0x2163   : > { %2560 = vrot.lane.b32.xlu0 %v2558_v47, %s3229_s19  ;;  %v3125_v50 = vpop.f32.mrb[67].mxu0 }
0x2167   : > { %2614 = vrot.lane.b32.xlu0 %v1762_v51, %s3231_s1 }
0x21d5   : > { %v2561_v53 = vpop.permute.xlu0 %2560 }
0x21d6   : > { %v2563_v54 = vadd.f32 %v2561_v53, %v3663_v17  ;;  %v1336_v17 = vadd.f32 %v2785_v52, %v3711_v13 }
0x21d8   : > { %v2564_v23 = vpack.c.bf16 %v2563_v54, %v2563_v54 }
0x21d9   : > { %v2615_v0 = vpop.permute.xlu0 %2614 }
0x21da   : > { %2566 = vrot.lane.b32.xlu1 %v2564_v23, %s3231_s1  ;;  %v2625_v1 = vsel %vm1152_vm6, %v1336_v17, %v2615_v0  ;;  %s594_s1 = scalar_lea.vmem %s3952_s17, %s3429_s2 }
0x21de   : > { %2618 = vrot.lane.b32.xlu1 %v2186_v56, %s3230_s28 }
0x224c   : > { %v2567_v9 = vpop.permute.xlu1 %2566 }
0x224d   : > { %3129 = vmatmul.mubr.msk.bf16.vlgmr.msra.gmra.mrb[68].mxu1 %vm722_vm1, %v2567_v9 }
0x2250   : > { %v2619_v55 = vpop.permute.xlu1 %2618 }
0x2251   : > { %v2627_v63 = vsel %vm2626_vm7, %v2625_v1, %v2619_v55 }
0x2320   : > { %v2605_v57 = vpop.f32.mrb[68].mxu1 }
0x2321   : > { %v2611_v58 = vadd.f32 %v2605_v57, %v2511_v42  ;;  %v3130_v60 = vpop.f32.mrb[69].mxu1 }
0x2322   : > { %v2608_v11 = vpop.f32.mrb[70].mxu1 }
0x2323   : > { %v2612_v4 = vadd.f32 %v2785_v52, %v2611_v58  ;;  %v3131_v62 = vpop.f32.mrb[71].mxu1 }
0x2325   : > { %2622 = vrot.lane.b32.xlu0 %v2612_v4, %s3229_s19 }
0x2397   : > { %v2623_v2 = vpop.permute.xlu0 %2622 }
0x2398   : > { %v2629_v33 = vsel %vm2628_vm8, %v2627_v63, %v2623_v2 }
0x2399   : > { %v2631_v6 = vadd.f32 %v2630_v41, %v2629_v33 }
0x239b   : > { %v2632_v59 = vsel %vm755_vm2, %v2631_v6, 0.0 }
0x239c   : > { %2633 = vadd.xlane.f32.xlu1 %v2632_v59 }
0x2429   : > { %v2634_v3 = vpop.xlane.xlu1 %2633 }
0x242a   : > { %v2635_v8 = vrot.slane %v2634_v3, 4 }
0x242c   : > { %v2636_v10 = vadd.f32 %v2635_v8, %v2634_v3 }
0x242e   : > { %v2637_v14 = vrot.slane %v2636_v10, 2 }
0x2430   : > { %v2638_v16 = vadd.f32 %v2637_v14, %v2636_v10 }
0x2432   : > { %v2639_v18 = vrot.slane %v2638_v16, 1 }
0x2434   : > { %v2640_v13 = vadd.f32 %v2639_v18, %v2638_v16 }
0x2436   : > { %v2641_v12 = vmul.f32 0.0011160715, %v2640_v13 }
0x2438   : > { %v2642_v19 = vsub.f32 %v2631_v6, %v2641_v12 }
0x243a   : > { %v2643_v43 = vmul.f32 %v2642_v19, %v2642_v19 }
0x243c   : > { %v2644_v27 = vsel %vm755_vm2, %v2643_v43, 0.0 }
0x243d   : > { %2645 = vadd.xlane.f32.xlu0 %v2644_v27 }
0x24ca   : > { %v2646_v20 = vpop.xlane.xlu0 %2645 }
0x24cb   : > { %v2647_v21 = vrot.slane %v2646_v20, 4 }
0x24cd   : > { %v2648_v22 = vadd.f32 %v2647_v21, %v2646_v20 }
0x24cf   : > { %v2649_v24 = vrot.slane %v2648_v22, 2 }
0x24d1   : > { %v2650_v25 = vadd.f32 %v2649_v24, %v2648_v22 }
0x24d3   : > { %v2651_v26 = vrot.slane %v2650_v25, 1 }
0x24d5   : > { %v2652_v37 = vadd.f32 %v2651_v26, %v2650_v25 }
0x24d7   : > { %v2653_v61 = vmul.f32 0.0011160715, %v2652_v37 }
0x24d9   : > { %v2654_v36 = vadd.f32 1e-05, %v2653_v61 }
0x24db   : > { %3210 = vrsqrt.f32 %v2654_v36 }
0x24e5   : > { %v3211_v28 = vpop.eup %3210 }
0x24e6   : > { %v2656_v7 = vmul.f32 %v3211_v28, %v2642_v19 }
0x24e8   : > { %v2658_v32 = vmul.f32 %v2657_v30, %v2656_v7 }
0x24ea   : > { %v2660_v34 = vadd.f32 %v2659_v31, %v2658_v32 }
0x24ec   : > { %2661 = vst.msk [vmem:[%s594_s1] sm:$0xff] %vm755_vm2, %v2660_v34 }
0x24ed PF: > { %s29_s27 = sadd.s32 1, %s3218_s27  }
0x24ee   : > { %p26_p4 = scmp.ge.s32.totalorder %s29_s27, 4  }
0x24f0   :  { %28 = sbr.rel (!%p26_p4) target bundleno = 4 (0x4), region = 133 }

</bundles_post_ra>
